<compile_context>
chip_gen: v7x
topology: tpu7x:2x2x1
jax: 0.10.0
libtpu: 0.0.40
codegen_flags: <defaults>
</compile_context>

<pallas_src>
import jax
import jax.numpy as jnp
from jax import lax
from jax.experimental import pallas as pl
from jax.experimental.pallas import tpu as pltpu


HP = 128  # one lane-padded hidden slab (== TPU vreg lane count)
OP = 128  # lane-padded logit / rule slab


def gvae_kernel(
    # inputs
    x_ref,        # (T*Bp, R)    bf16  time-major, batch-flattened one-hot rules
    start_ref,    # (1, HP)      f32   start token one-hot placed at lanes HP-R:HP
    eps_ref,      # (Bp, L)      f32   reparameterization noise
    e_wih_ref,    # (R, 3*HP)    bf16  encoder W_ih^T, gates [r|z|n] slabs
    e_bih_ref,    # (1, 3*HP)    f32   [bir+bhr | biz+bhz | bin]
    e_whh_ref,    # (HP, 3*HP)   bf16  encoder W_hh^T (rows H:HP zero)
    e_bhn_ref,    # (1, HP)      f32   encoder n-gate hidden bias
    wmulv_ref,    # (HP, 2*HP)   bf16  [fc_mu^T | fc_logvar^T]
    bmulv_ref,    # (1, 2*HP)    f32
    dfc_w_ref,    # (L, HP)      bf16  decoder fc^T (cols H:HP zero)
    dfc_b_ref,    # (1, HP)      f32
    wdec_ref,     # (HP, 4*HP)   bf16  fused decoder GRU: rows 0:H hidden W,
                  #                    rows HP-R:HP input W, slabs [r|z|i_n|h_n]
    bdec_ref,     # (1, 4*HP)    f32   [bir+bhr | biz+bhz | bin | bhn]
    out_w_ref,    # (HP, OP)     bf16  decoder out^T (rows H:HP zero, cols R:OP zero)
    out_b_ref,    # (1, OP)      f32   (cols R:OP zero)
    # outputs
    recon_ref,    # (T, Bp, OP)
    mu_ref,       # (Bp, L)
    lv_ref,       # (Bp, L)
):
    T, Bp, _ = recon_ref.shape
    R = x_ref.shape[1]
    L = eps_ref.shape[1]
    f32 = jnp.float32
    bf16 = jnp.bfloat16
    OFF = HP - R                       # lane offset of the packed one-hot input

    # ---------------- encoder ------------------------------------------------
    # All T input projections in one bf16 MXU pass, off the serial critical path.
    gi_all = (jnp.dot(x_ref[...], e_wih_ref[...], preferred_element_type=f32)
              + e_bih_ref[...])                                  # (T*Bp, 3*HP) f32

    bhn = e_bhn_ref[...]
    h = jnp.zeros((Bp, HP), f32)
    for t in range(T):                 # fully unrolled: static slices/indices
        gi = gi_all[t * Bp:(t + 1) * Bp, :]
        gh = jnp.dot(h.astype(bf16), e_whh_ref[...],
                     preferred_element_type=f32)                 # (Bp, 3*HP)
        r = jax.nn.sigmoid(gi[:, 0:HP] + gh[:, 0:HP])
        z = jax.nn.sigmoid(gi[:, HP:2 * HP] + gh[:, HP:2 * HP])
        n = jnp.tanh(gi[:, 2 * HP:3 * HP] + r * (gh[:, 2 * HP:3 * HP] + bhn))
        h = (1.0 - z) * n + z * h      # pad lanes H:HP remain exactly 0

    # fused fc_mu / fc_logvar: one MXU pass, vreg-aligned split
    ml = (jnp.dot(h.astype(bf16), wmulv_ref[...], preferred_element_type=f32)
          + bmulv_ref[...])
    mu = ml[:, 0:L]
    lv = ml[:, HP:HP + L]
    mu_ref[...] = mu
    lv_ref[...] = lv

    # ---------------- reparameterize -----------------------------------------
    z_lat = mu + eps_ref[...] * jnp.exp(0.5 * lv)

    # ---------------- decoder (autoregressive GRU) ----------------------------
    h_dec = (jnp.dot(z_lat.astype(bf16), dfc_w_ref[...],
                     preferred_element_type=f32)
             + dfc_b_ref[...])                                   # (Bp, HP), lanes H:HP == 0
    # pack the start token into the zero padding lanes OFF:HP (exact add)
    h_dec = h_dec + start_ref[...]

    lane_h = lax.broadcasted_iota(jnp.int32, (Bp, HP), 1)        # hoisted iotas
    lane_o = lax.broadcasted_iota(jnp.int32, (Bp, OP), 1)

    idx_bits = max(1, (R - 1).bit_length())
    low_mask = (1 << idx_bits) - 1
    int_min = jnp.int32(-2147483648)

    for t in range(T):                 # fully unrolled: static stores
        # single fused K=128 GRU matmul per step (no concat: one-hot lives in
        # lanes OFF:HP of h_dec, matching input-weight rows of wdec)
        g = (jnp.dot(h_dec.astype(bf16), wdec_ref[...],
                     preferred_element_type=f32)
             + bdec_ref[...])                                    # (Bp, 4*HP)
        r = jax.nn.sigmoid(g[:, 0:HP])
        z = jax.nn.sigmoid(g[:, HP:2 * HP])
        n = jnp.tanh(g[:, 2 * HP:3 * HP] + r * g[:, 3 * HP:4 * HP])
        h_dec = (1.0 - z) * n + z * h_dec
        # lanes 0:H now hold the true hidden state; lanes OFF:HP hold junk that
        # is overwritten below and never leaks (out_w rows H:HP are zero).

        logits = (jnp.dot(h_dec.astype(bf16), out_w_ref[...],
                          preferred_element_type=f32)
                  + out_b_ref[...])                              # (Bp, OP)
        # TODO(synk): the grammar mask (mask_fn: a per-sample Python stack
        # machine) has no clean Pallas equivalent; a zero mask is used here.
        logits = jnp.clip(logits, -10.0, 10.0)
        recon_ref[t] = logits                                    # full-lane store

        # argmax via ONE cross-lane reduction over a composite key:
        # monotone-int(logit) in the high bits, (R-1-lane) in the low bits.
        # Padded lanes (>= R) are forced to int_min so they can never win.
        bits = pltpu.bitcast(logits, jnp.int32)
        mono = jnp.where(bits >= 0, bits, int_min - bits)        # order-preserving
        key = (mono & jnp.int32(~low_mask)) | (jnp.int32(R - 1) - lane_o)
        key = jnp.where(lane_o < R, key, int_min)
        best = jnp.max(key, axis=1, keepdims=True)               # single reduction
        nxt = jnp.int32(R - 1) - (best & jnp.int32(low_mask))    # (Bp, 1)

        # write the next one-hot into lanes OFF:HP of the carried state
        h_dec = jnp.where(lane_h >= OFF,
                          (lane_h == nxt + OFF).astype(f32),
                          h_dec)


# ------------------------- one-time weight preparation ------------------------

def _pad2(m, rows, cols):
    m = jnp.asarray(m, jnp.float32)
    return jnp.pad(m, ((0, rows - m.shape[0]), (0, cols - m.shape[1])))


def _padrow(v, cols):
    v = jnp.asarray(v, jnp.float32).reshape(1, -1)
    return jnp.pad(v, ((0, 0), (0, cols - v.shape[1])))


def prepare_params(params):
    """One-time conversion of PyTorch-layout GVAE params into the fused,
    gate-lane-padded, bf16 weights the kernel consumes (hoisted off the
    per-call path)."""
    H = params["e_whh"].shape[1]
    R = params["e_wih"].shape[1]
    L = params["wmu"].shape[0]
    bf16 = jnp.bfloat16
    assert H <= HP and L <= HP and R <= OP
    assert H + R <= HP, "hidden lanes and packed one-hot lanes must not overlap"

    def gates(w):   # (3H, in) -> three (in, H) transposed blocks, gate order r,z,n
        return [jnp.asarray(w[g * H:(g + 1) * H], jnp.float32).T for g in range(3)]

    def gbias(b):
        return [jnp.asarray(b[g * H:(g + 1) * H], jnp.float32) for g in range(3)]

    # encoder GRU: each gate in its own 128-lane slab
    ewr, ewz, ewn = gates(params["e_wih"])          # (R, H)
    ehr, ehz, ehn = gates(params["e_whh"])          # (H, H)
    ebir, ebiz, ebin = gbias(params["e_bih"])
    ebhr, ebhz, ebhn = gbias(params["e_bhh"])
    e_wih = jnp.concatenate([_pad2(w, R, HP) for w in (ewr, ewz, ewn)], axis=1)
    e_whh = jnp.concatenate([_pad2(w, HP, HP) for w in (ehr, ehz, ehn)], axis=1)
    # r/z hidden biases pre-summed into the input bias; n hidden bias kept apart
    e_bih = jnp.concatenate([_padrow(ebir + ebhr, HP), _padrow(ebiz + ebhz, HP),
                             _padrow(ebin, HP)], axis=1)
    e_bhn = _padrow(ebhn, HP)

    # fc_mu / fc_logvar fused into one weight
    wmulv = jnp.concatenate(
        [_pad2(jnp.asarray(params["wmu"], jnp.float32).T, HP, HP),
         _pad2(jnp.asarray(params["wlv"], jnp.float32).T, HP, HP)], axis=1)
    bmulv = jnp.concatenate([_padrow(params["bmu"], HP),
                             _padrow(params["blv"], HP)], axis=1)

    # decoder fc
    dfc_w = _pad2(jnp.asarray(params["dfc_w"], jnp.float32).T, L, HP)
    dfc_b = _padrow(params["dfc_b"], HP)

    # decoder GRU: one (HP, 4*HP) block weight; hidden rows at 0:H, input rows
    # at HP-R:HP (where the one-hot is packed inside h_dec)
    dwr, dwz, dwn = gates(params["d_wih"])          # (R, H)
    dhr, dhz, dhn = gates(params["d_whh"])          # (H, H)
    dbir, dbiz, dbin = gbias(params["d_bih"])
    dbhr, dbhz, dbhn = gbias(params["d_bhh"])

    def dec_slab(hh, xx):
        slab = jnp.zeros((HP, HP), jnp.float32)
        if hh is not None:
            slab = slab.at[:H, :H].set(jnp.asarray(hh, jnp.float32))
        if xx is not None:
            slab = slab.at[HP - R:HP, :H].set(jnp.asarray(xx, jnp.float32))
        return slab

    wdec = jnp.concatenate([dec_slab(dhr, dwr),      # r gate:  W_hr h + W_ir x
                            dec_slab(dhz, dwz),      # z gate:  W_hz h + W_iz x
                            dec_slab(None, dwn),     # i_n:     W_in x
                            dec_slab(dhn, None)],    # h_n:     W_hn h
                           axis=1)                   # (HP, 4*HP)
    bdec = jnp.concatenate([_padrow(dbir + dbhr, HP), _padrow(dbiz + dbhz, HP),
                            _padrow(dbin, HP), _padrow(dbhn, HP)], axis=1)

    # output projection, lane-padded to OP=128 (rows H:HP zero, cols R:OP zero)
    out_w = _pad2(jnp.asarray(params["out_w"], jnp.float32).T, HP, OP)
    out_b = _padrow(params["out_b"], OP)

    return dict(
        e_wih=e_wih.astype(bf16), e_bih=e_bih,
        e_whh=e_whh.astype(bf16), e_bhn=e_bhn,
        wmulv=wmulv.astype(bf16), bmulv=bmulv,
        dfc_w=dfc_w.astype(bf16), dfc_b=dfc_b,
        wdec=wdec.astype(bf16), bdec=bdec,
        out_w=out_w.astype(bf16), out_b=out_b,
    )


# ------------------------------- forward wrapper ------------------------------

@jax.jit
def gvae_forward(x, start_token, eps, kparams):
    """x: (B, T, R) float32 one-hot, start_token: (R,) one-hot, eps: (B, L)."""
    B, T, R = x.shape
    L = eps.shape[1]
    Bp = ((B + 7) // 8) * 8                     # sublane-aligned batch
    OFF = HP - R

    xt = jnp.transpose(x, (1, 0, 2))                             # (T, B, R)
    eps_p = eps.astype(jnp.float32)
    if Bp != B:
        xt = jnp.pad(xt, ((0, 0), (0, Bp - B), (0, 0)))
        eps_p = jnp.pad(eps_p, ((0, Bp - B), (0, 0)))
    x2d = xt.reshape(T * Bp, R).astype(jnp.bfloat16)             # one-hot: exact in bf16
    # start token placed at lanes OFF:HP (kernel adds it into zero pad lanes)
    start_slab = jnp.zeros((1, HP), jnp.float32).at[0, OFF:OFF + R].set(
        start_token.astype(jnp.float32))

    inputs = (
        x2d, start_slab, eps_p,
        kparams["e_wih"], kparams["e_bih"], kparams["e_whh"], kparams["e_bhn"],
        kparams["wmulv"], kparams["bmulv"],
        kparams["dfc_w"], kparams["dfc_b"],
        kparams["wdec"], kparams["bdec"],
        kparams["out_w"], kparams["out_b"],
    )

    vmem = pl.BlockSpec(memory_space=pltpu.MemorySpace.VMEM)
    # NOTE: latency-bound on 2*T serial GRU steps; throughput scales by raising
    # B (near-free up to the MXU height) and, on v7x, adding a parallel batch
    # grid to engage both TensorCores.  At B=4 a single gridless call suffices.
    recon_tbr, mu, lv = pl.pallas_call(
        gvae_kernel,
        out_shape=(
            jax.ShapeDtypeStruct((T, Bp, OP), jnp.float32),
            jax.ShapeDtypeStruct((Bp, L), jnp.float32),
            jax.ShapeDtypeStruct((Bp, L), jnp.float32),
        ),
        in_specs=[vmem] * len(inputs),
        out_specs=(vmem, vmem, vmem),
    )(*inputs)

    recon = jnp.transpose(recon_tbr[:, :B, :R], (1, 0, 2))       # (B, T, R)
    return recon, mu[:B], lv[:B]


# --------------------------------- parameters ---------------------------------

def init_params(key, rule_dim, hidden_dim, latent_dim):
    ks = jax.random.split(key, 16)
    s = 0.1
    f32 = jnp.float32
    return {
        # encoder GRU (PyTorch shapes, gate order r,z,n)
        "e_wih": jax.random.normal(ks[0], (3 * hidden_dim, rule_dim), f32) * s,
        "e_whh": jax.random.normal(ks[1], (3 * hidden_dim, hidden_dim), f32) * s,
        "e_bih": jax.random.normal(ks[2], (3 * hidden_dim,), f32) * s,
        "e_bhh": jax.random.normal(ks[3], (3 * hidden_dim,), f32) * s,
        # fc_mu / fc_logvar
        "wmu": jax.random.normal(ks[4], (latent_dim, hidden_dim), f32) * s,
        "bmu": jax.random.normal(ks[5], (latent_dim,), f32) * s,
        "wlv": jax.random.normal(ks[6], (latent_dim, hidden_dim), f32) * s,
        "blv": jax.random.normal(ks[7], (latent_dim,), f32) * s,
        # decoder fc
        "dfc_w": jax.random.normal(ks[8], (hidden_dim, latent_dim), f32) * s,
        "dfc_b": jax.random.normal(ks[9], (hidden_dim,), f32) * s,
        # decoder GRU
        "d_wih": jax.random.normal(ks[10], (3 * hidden_dim, rule_dim), f32) * s,
        "d_whh": jax.random.normal(ks[11], (3 * hidden_dim, hidden_dim), f32) * s,
        "d_bih": jax.random.normal(ks[12], (3 * hidden_dim,), f32) * s,
        "d_bhh": jax.random.normal(ks[13], (3 * hidden_dim,), f32) * s,
        # decoder output projection
        "out_w": jax.random.normal(ks[14], (rule_dim, hidden_dim), f32) * s,
        "out_b": jax.random.normal(ks[15], (rule_dim,), f32) * s,
    }


if __name__ == "__main__":
    # small, module-consistent shapes
    B, T, R, H, L = 4, 8, 16, 32, 32

    key = jax.random.PRNGKey(0)
    k_params, k_x, k_eps = jax.random.split(key, 3)

    params = init_params(k_params, R, H, L)
    kparams = prepare_params(params)            # one-time weight fusion/padding/bf16

    # x: batch of one-hot rule sequences (B, T, R)
    tok_ids = jax.random.randint(k_x, (B, T), 0, R)
    x = jax.nn.one_hot(tok_ids, R, dtype=jnp.float32)
    start_token = jax.nn.one_hot(0, R, dtype=jnp.float32)        # (R,)
    eps = jax.random.normal(k_eps, (B, L), jnp.float32)

    recon_logits, mu, logvar = gvae_forward(x, start_token, eps, kparams)
    jax.block_until_ready((recon_logits, mu, logvar))

    assert recon_logits.shape == (B, T, R)
    assert mu.shape == (B, L) and logvar.shape == (B, L)
    assert bool(jnp.all(jnp.isfinite(recon_logits)))
    print("KERNEL_OK")
</pallas_src>

<mosaic_0001>
module attributes {stable_mosaic.version = 11 : i64} {
  func.func @gvae_kernel(%arg0: memref<64x16xbf16, #tpu.memory_space<vmem>>, %arg1: memref<1x128xf32, #tpu.memory_space<vmem>>, %arg2: memref<8x32xf32, #tpu.memory_space<vmem>>, %arg3: memref<16x384xbf16, #tpu.memory_space<vmem>>, %arg4: memref<1x384xf32, #tpu.memory_space<vmem>>, %arg5: memref<128x384xbf16, #tpu.memory_space<vmem>>, %arg6: memref<1x128xf32, #tpu.memory_space<vmem>>, %arg7: memref<128x256xbf16, #tpu.memory_space<vmem>>, %arg8: memref<1x256xf32, #tpu.memory_space<vmem>>, %arg9: memref<32x128xbf16, #tpu.memory_space<vmem>>, %arg10: memref<1x128xf32, #tpu.memory_space<vmem>>, %arg11: memref<128x512xbf16, #tpu.memory_space<vmem>>, %arg12: memref<1x512xf32, #tpu.memory_space<vmem>>, %arg13: memref<128x128xbf16, #tpu.memory_space<vmem>>, %arg14: memref<1x128xf32, #tpu.memory_space<vmem>>, %arg15: memref<8x8x128xf32, #tpu.memory_space<vmem>>, %arg16: memref<8x32xf32, #tpu.memory_space<vmem>>, %arg17: memref<8x32xf32, #tpu.memory_space<vmem>>) attributes {dimension_semantics = [], scalar_prefetch = 0 : i64, scratch_operands = 0 : i64, tpu.core_type = #tpu.core_type<tc>} {
    %c0 = arith.constant 0 : index
    %c0_0 = arith.constant 0 : index
    %0 = vector.load %arg0[%c0, %c0_0] : memref<64x16xbf16, #tpu.memory_space<vmem>>, vector<64x16xbf16>
    %c0_1 = arith.constant 0 : index
    %c0_2 = arith.constant 0 : index
    %1 = vector.load %arg3[%c0_1, %c0_2] : memref<16x384xbf16, #tpu.memory_space<vmem>>, vector<16x384xbf16>
    %cst = arith.constant dense<0.000000e+00> : vector<64x384xf32>
    %2 = tpu.matmul %0, %1, %cst {dimension_numbers = #tpu.dot_dimension_numbers<[1], [0], [0], [1], [0, 0, 1, 1], [], []>} : vector<64x16xbf16>, vector<16x384xbf16>, vector<64x384xf32> -> vector<64x384xf32>
    %c0_3 = arith.constant 0 : index
    %c0_4 = arith.constant 0 : index
    %3 = vector.load %arg4[%c0_3, %c0_4] : memref<1x384xf32, #tpu.memory_space<vmem>>, vector<1x384xf32>
    %4 = vector.broadcast %3 : vector<1x384xf32> to vector<64x384xf32>
    %5 = arith.addf %2, %4 : vector<64x384xf32>
    %c0_5 = arith.constant 0 : index
    %c0_6 = arith.constant 0 : index
    %6 = vector.load %arg6[%c0_5, %c0_6] : memref<1x128xf32, #tpu.memory_space<vmem>>, vector<1x128xf32>
    %cst_7 = arith.constant 0.000000e+00 : f32
    %7 = vector.broadcast %cst_7 : f32 to vector<8x128xf32>
    %8 = vector.extract_strided_slice %5 {offsets = [0, 0], sizes = [8, 384], strides = [1, 1]} : vector<64x384xf32> to vector<8x384xf32>
    %9 = arith.truncf %7 : vector<8x128xf32> to vector<8x128xbf16>
    %c0_8 = arith.constant 0 : index
    %c0_9 = arith.constant 0 : index
    %10 = vector.load %arg5[%c0_8, %c0_9] : memref<128x384xbf16, #tpu.memory_space<vmem>>, vector<128x384xbf16>
    %cst_10 = arith.constant dense<0.000000e+00> : vector<8x384xf32>
    %11 = tpu.matmul %9, %10, %cst_10 {dimension_numbers = #tpu.dot_dimension_numbers<[1], [0], [0], [1], [0, 0, 1, 1], [], []>} : vector<8x128xbf16>, vector<128x384xbf16>, vector<8x384xf32> -> vector<8x384xf32>
    %12 = vector.extract_strided_slice %8 {offsets = [0, 0], sizes = [8, 128], strides = [1, 1]} : vector<8x384xf32> to vector<8x128xf32>
    %13 = vector.extract_strided_slice %11 {offsets = [0, 0], sizes = [8, 128], strides = [1, 1]} : vector<8x384xf32> to vector<8x128xf32>
    %14 = arith.addf %12, %13 : vector<8x128xf32>
    %15 = arith.negf %14 : vector<8x128xf32>
    %16 = math.exp %15 : vector<8x128xf32>
    %cst_11 = arith.constant 1.000000e+00 : f32
    %17 = vector.broadcast %cst_11 : f32 to vector<8x128xf32>
    %18 = arith.addf %17, %16 : vector<8x128xf32>
    %19 = arith.divf %17, %18 : vector<8x128xf32>
    %20 = vector.extract_strided_slice %8 {offsets = [0, 128], sizes = [8, 128], strides = [1, 1]} : vector<8x384xf32> to vector<8x128xf32>
    %21 = vector.extract_strided_slice %11 {offsets = [0, 128], sizes = [8, 128], strides = [1, 1]} : vector<8x384xf32> to vector<8x128xf32>
    %22 = arith.addf %20, %21 : vector<8x128xf32>
    %23 = arith.negf %22 : vector<8x128xf32>
    %24 = math.exp %23 : vector<8x128xf32>
    %cst_12 = arith.constant 1.000000e+00 : f32
    %25 = vector.broadcast %cst_12 : f32 to vector<8x128xf32>
    %26 = arith.addf %25, %24 : vector<8x128xf32>
    %27 = arith.divf %25, %26 : vector<8x128xf32>
    %28 = vector.extract_strided_slice %8 {offsets = [0, 256], sizes = [8, 128], strides = [1, 1]} : vector<8x384xf32> to vector<8x128xf32>
    %29 = vector.extract_strided_slice %11 {offsets = [0, 256], sizes = [8, 128], strides = [1, 1]} : vector<8x384xf32> to vector<8x128xf32>
    %30 = vector.broadcast %6 : vector<1x128xf32> to vector<8x128xf32>
    %31 = arith.addf %29, %30 : vector<8x128xf32>
    %32 = arith.mulf %19, %31 : vector<8x128xf32>
    %33 = arith.addf %28, %32 : vector<8x128xf32>
    %34 = math.tanh %33 : vector<8x128xf32>
    %cst_13 = arith.constant 1.000000e+00 : f32
    %35 = vector.broadcast %cst_13 : f32 to vector<8x128xf32>
    %36 = arith.subf %35, %27 : vector<8x128xf32>
    %37 = arith.mulf %36, %34 : vector<8x128xf32>
    %38 = arith.mulf %27, %7 : vector<8x128xf32>
    %39 = arith.addf %37, %38 : vector<8x128xf32>
    %40 = vector.extract_strided_slice %5 {offsets = [8, 0], sizes = [8, 384], strides = [1, 1]} : vector<64x384xf32> to vector<8x384xf32>
    %41 = arith.truncf %39 : vector<8x128xf32> to vector<8x128xbf16>
    %c0_14 = arith.constant 0 : index
    %c0_15 = arith.constant 0 : index
    %42 = vector.load %arg5[%c0_14, %c0_15] : memref<128x384xbf16, #tpu.memory_space<vmem>>, vector<128x384xbf16>
    %cst_16 = arith.constant dense<0.000000e+00> : vector<8x384xf32>
    %43 = tpu.matmul %41, %42, %cst_16 {dimension_numbers = #tpu.dot_dimension_numbers<[1], [0], [0], [1], [0, 0, 1, 1], [], []>} : vector<8x128xbf16>, vector<128x384xbf16>, vector<8x384xf32> -> vector<8x384xf32>
    %44 = vector.extract_strided_slice %40 {offsets = [0, 0], sizes = [8, 128], strides = [1, 1]} : vector<8x384xf32> to vector<8x128xf32>
    %45 = vector.extract_strided_slice %43 {offsets = [0, 0], sizes = [8, 128], strides = [1, 1]} : vector<8x384xf32> to vector<8x128xf32>
    %46 = arith.addf %44, %45 : vector<8x128xf32>
    %47 = arith.negf %46 : vector<8x128xf32>
    %48 = math.exp %47 : vector<8x128xf32>
    %cst_17 = arith.constant 1.000000e+00 : f32
    %49 = vector.broadcast %cst_17 : f32 to vector<8x128xf32>
    %50 = arith.addf %49, %48 : vector<8x128xf32>
    %51 = arith.divf %49, %50 : vector<8x128xf32>
    %52 = vector.extract_strided_slice %40 {offsets = [0, 128], sizes = [8, 128], strides = [1, 1]} : vector<8x384xf32> to vector<8x128xf32>
    %53 = vector.extract_strided_slice %43 {offsets = [0, 128], sizes = [8, 128], strides = [1, 1]} : vector<8x384xf32> to vector<8x128xf32>
    %54 = arith.addf %52, %53 : vector<8x128xf32>
    %55 = arith.negf %54 : vector<8x128xf32>
    %56 = math.exp %55 : vector<8x128xf32>
    %cst_18 = arith.constant 1.000000e+00 : f32
    %57 = vector.broadcast %cst_18 : f32 to vector<8x128xf32>
    %58 = arith.addf %57, %56 : vector<8x128xf32>
    %59 = arith.divf %57, %58 : vector<8x128xf32>
    %60 = vector.extract_strided_slice %40 {offsets = [0, 256], sizes = [8, 128], strides = [1, 1]} : vector<8x384xf32> to vector<8x128xf32>
    %61 = vector.extract_strided_slice %43 {offsets = [0, 256], sizes = [8, 128], strides = [1, 1]} : vector<8x384xf32> to vector<8x128xf32>
    %62 = vector.broadcast %6 : vector<1x128xf32> to vector<8x128xf32>
    %63 = arith.addf %61, %62 : vector<8x128xf32>
    %64 = arith.mulf %51, %63 : vector<8x128xf32>
    %65 = arith.addf %60, %64 : vector<8x128xf32>
    %66 = math.tanh %65 : vector<8x128xf32>
    %cst_19 = arith.constant 1.000000e+00 : f32
    %67 = vector.broadcast %cst_19 : f32 to vector<8x128xf32>
    %68 = arith.subf %67, %59 : vector<8x128xf32>
    %69 = arith.mulf %68, %66 : vector<8x128xf32>
    %70 = arith.mulf %59, %39 : vector<8x128xf32>
    %71 = arith.addf %69, %70 : vector<8x128xf32>
    %72 = vector.extract_strided_slice %5 {offsets = [16, 0], sizes = [8, 384], strides = [1, 1]} : vector<64x384xf32> to vector<8x384xf32>
    %73 = arith.truncf %71 : vector<8x128xf32> to vector<8x128xbf16>
    %c0_20 = arith.constant 0 : index
    %c0_21 = arith.constant 0 : index
    %74 = vector.load %arg5[%c0_20, %c0_21] : memref<128x384xbf16, #tpu.memory_space<vmem>>, vector<128x384xbf16>
    %cst_22 = arith.constant dense<0.000000e+00> : vector<8x384xf32>
    %75 = tpu.matmul %73, %74, %cst_22 {dimension_numbers = #tpu.dot_dimension_numbers<[1], [0], [0], [1], [0, 0, 1, 1], [], []>} : vector<8x128xbf16>, vector<128x384xbf16>, vector<8x384xf32> -> vector<8x384xf32>
    %76 = vector.extract_strided_slice %72 {offsets = [0, 0], sizes = [8, 128], strides = [1, 1]} : vector<8x384xf32> to vector<8x128xf32>
    %77 = vector.extract_strided_slice %75 {offsets = [0, 0], sizes = [8, 128], strides = [1, 1]} : vector<8x384xf32> to vector<8x128xf32>
    %78 = arith.addf %76, %77 : vector<8x128xf32>
    %79 = arith.negf %78 : vector<8x128xf32>
    %80 = math.exp %79 : vector<8x128xf32>
    %cst_23 = arith.constant 1.000000e+00 : f32
    %81 = vector.broadcast %cst_23 : f32 to vector<8x128xf32>
    %82 = arith.addf %81, %80 : vector<8x128xf32>
    %83 = arith.divf %81, %82 : vector<8x128xf32>
    %84 = vector.extract_strided_slice %72 {offsets = [0, 128], sizes = [8, 128], strides = [1, 1]} : vector<8x384xf32> to vector<8x128xf32>
    %85 = vector.extract_strided_slice %75 {offsets = [0, 128], sizes = [8, 128], strides = [1, 1]} : vector<8x384xf32> to vector<8x128xf32>
    %86 = arith.addf %84, %85 : vector<8x128xf32>
    %87 = arith.negf %86 : vector<8x128xf32>
    %88 = math.exp %87 : vector<8x128xf32>
    %cst_24 = arith.constant 1.000000e+00 : f32
    %89 = vector.broadcast %cst_24 : f32 to vector<8x128xf32>
    %90 = arith.addf %89, %88 : vector<8x128xf32>
    %91 = arith.divf %89, %90 : vector<8x128xf32>
    %92 = vector.extract_strided_slice %72 {offsets = [0, 256], sizes = [8, 128], strides = [1, 1]} : vector<8x384xf32> to vector<8x128xf32>
    %93 = vector.extract_strided_slice %75 {offsets = [0, 256], sizes = [8, 128], strides = [1, 1]} : vector<8x384xf32> to vector<8x128xf32>
    %94 = vector.broadcast %6 : vector<1x128xf32> to vector<8x128xf32>
    %95 = arith.addf %93, %94 : vector<8x128xf32>
    %96 = arith.mulf %83, %95 : vector<8x128xf32>
    %97 = arith.addf %92, %96 : vector<8x128xf32>
    %98 = math.tanh %97 : vector<8x128xf32>
    %cst_25 = arith.constant 1.000000e+00 : f32
    %99 = vector.broadcast %cst_25 : f32 to vector<8x128xf32>
    %100 = arith.subf %99, %91 : vector<8x128xf32>
    %101 = arith.mulf %100, %98 : vector<8x128xf32>
    %102 = arith.mulf %91, %71 : vector<8x128xf32>
    %103 = arith.addf %101, %102 : vector<8x128xf32>
    %104 = vector.extract_strided_slice %5 {offsets = [24, 0], sizes = [8, 384], strides = [1, 1]} : vector<64x384xf32> to vector<8x384xf32>
    %105 = arith.truncf %103 : vector<8x128xf32> to vector<8x128xbf16>
    %c0_26 = arith.constant 0 : index
    %c0_27 = arith.constant 0 : index
    %106 = vector.load %arg5[%c0_26, %c0_27] : memref<128x384xbf16, #tpu.memory_space<vmem>>, vector<128x384xbf16>
    %cst_28 = arith.constant dense<0.000000e+00> : vector<8x384xf32>
    %107 = tpu.matmul %105, %106, %cst_28 {dimension_numbers = #tpu.dot_dimension_numbers<[1], [0], [0], [1], [0, 0, 1, 1], [], []>} : vector<8x128xbf16>, vector<128x384xbf16>, vector<8x384xf32> -> vector<8x384xf32>
    %108 = vector.extract_strided_slice %104 {offsets = [0, 0], sizes = [8, 128], strides = [1, 1]} : vector<8x384xf32> to vector<8x128xf32>
    %109 = vector.extract_strided_slice %107 {offsets = [0, 0], sizes = [8, 128], strides = [1, 1]} : vector<8x384xf32> to vector<8x128xf32>
    %110 = arith.addf %108, %109 : vector<8x128xf32>
    %111 = arith.negf %110 : vector<8x128xf32>
    %112 = math.exp %111 : vector<8x128xf32>
    %cst_29 = arith.constant 1.000000e+00 : f32
    %113 = vector.broadcast %cst_29 : f32 to vector<8x128xf32>
    %114 = arith.addf %113, %112 : vector<8x128xf32>
    %115 = arith.divf %113, %114 : vector<8x128xf32>
    %116 = vector.extract_strided_slice %104 {offsets = [0, 128], sizes = [8, 128], strides = [1, 1]} : vector<8x384xf32> to vector<8x128xf32>
    %117 = vector.extract_strided_slice %107 {offsets = [0, 128], sizes = [8, 128], strides = [1, 1]} : vector<8x384xf32> to vector<8x128xf32>
    %118 = arith.addf %116, %117 : vector<8x128xf32>
    %119 = arith.negf %118 : vector<8x128xf32>
    %120 = math.exp %119 : vector<8x128xf32>
    %cst_30 = arith.constant 1.000000e+00 : f32
    %121 = vector.broadcast %cst_30 : f32 to vector<8x128xf32>
    %122 = arith.addf %121, %120 : vector<8x128xf32>
    %123 = arith.divf %121, %122 : vector<8x128xf32>
    %124 = vector.extract_strided_slice %104 {offsets = [0, 256], sizes = [8, 128], strides = [1, 1]} : vector<8x384xf32> to vector<8x128xf32>
    %125 = vector.extract_strided_slice %107 {offsets = [0, 256], sizes = [8, 128], strides = [1, 1]} : vector<8x384xf32> to vector<8x128xf32>
    %126 = vector.broadcast %6 : vector<1x128xf32> to vector<8x128xf32>
    %127 = arith.addf %125, %126 : vector<8x128xf32>
    %128 = arith.mulf %115, %127 : vector<8x128xf32>
    %129 = arith.addf %124, %128 : vector<8x128xf32>
    %130 = math.tanh %129 : vector<8x128xf32>
    %cst_31 = arith.constant 1.000000e+00 : f32
    %131 = vector.broadcast %cst_31 : f32 to vector<8x128xf32>
    %132 = arith.subf %131, %123 : vector<8x128xf32>
    %133 = arith.mulf %132, %130 : vector<8x128xf32>
    %134 = arith.mulf %123, %103 : vector<8x128xf32>
    %135 = arith.addf %133, %134 : vector<8x128xf32>
    %136 = vector.extract_strided_slice %5 {offsets = [32, 0], sizes = [8, 384], strides = [1, 1]} : vector<64x384xf32> to vector<8x384xf32>
    %137 = arith.truncf %135 : vector<8x128xf32> to vector<8x128xbf16>
    %c0_32 = arith.constant 0 : index
    %c0_33 = arith.constant 0 : index
    %138 = vector.load %arg5[%c0_32, %c0_33] : memref<128x384xbf16, #tpu.memory_space<vmem>>, vector<128x384xbf16>
    %cst_34 = arith.constant dense<0.000000e+00> : vector<8x384xf32>
    %139 = tpu.matmul %137, %138, %cst_34 {dimension_numbers = #tpu.dot_dimension_numbers<[1], [0], [0], [1], [0, 0, 1, 1], [], []>} : vector<8x128xbf16>, vector<128x384xbf16>, vector<8x384xf32> -> vector<8x384xf32>
    %140 = vector.extract_strided_slice %136 {offsets = [0, 0], sizes = [8, 128], strides = [1, 1]} : vector<8x384xf32> to vector<8x128xf32>
    %141 = vector.extract_strided_slice %139 {offsets = [0, 0], sizes = [8, 128], strides = [1, 1]} : vector<8x384xf32> to vector<8x128xf32>
    %142 = arith.addf %140, %141 : vector<8x128xf32>
    %143 = arith.negf %142 : vector<8x128xf32>
    %144 = math.exp %143 : vector<8x128xf32>
    %cst_35 = arith.constant 1.000000e+00 : f32
    %145 = vector.broadcast %cst_35 : f32 to vector<8x128xf32>
    %146 = arith.addf %145, %144 : vector<8x128xf32>
    %147 = arith.divf %145, %146 : vector<8x128xf32>
    %148 = vector.extract_strided_slice %136 {offsets = [0, 128], sizes = [8, 128], strides = [1, 1]} : vector<8x384xf32> to vector<8x128xf32>
    %149 = vector.extract_strided_slice %139 {offsets = [0, 128], sizes = [8, 128], strides = [1, 1]} : vector<8x384xf32> to vector<8x128xf32>
    %150 = arith.addf %148, %149 : vector<8x128xf32>
    %151 = arith.negf %150 : vector<8x128xf32>
    %152 = math.exp %151 : vector<8x128xf32>
    %cst_36 = arith.constant 1.000000e+00 : f32
    %153 = vector.broadcast %cst_36 : f32 to vector<8x128xf32>
    %154 = arith.addf %153, %152 : vector<8x128xf32>
    %155 = arith.divf %153, %154 : vector<8x128xf32>
    %156 = vector.extract_strided_slice %136 {offsets = [0, 256], sizes = [8, 128], strides = [1, 1]} : vector<8x384xf32> to vector<8x128xf32>
    %157 = vector.extract_strided_slice %139 {offsets = [0, 256], sizes = [8, 128], strides = [1, 1]} : vector<8x384xf32> to vector<8x128xf32>
    %158 = vector.broadcast %6 : vector<1x128xf32> to vector<8x128xf32>
    %159 = arith.addf %157, %158 : vector<8x128xf32>
    %160 = arith.mulf %147, %159 : vector<8x128xf32>
    %161 = arith.addf %156, %160 : vector<8x128xf32>
    %162 = math.tanh %161 : vector<8x128xf32>
    %cst_37 = arith.constant 1.000000e+00 : f32
    %163 = vector.broadcast %cst_37 : f32 to vector<8x128xf32>
    %164 = arith.subf %163, %155 : vector<8x128xf32>
    %165 = arith.mulf %164, %162 : vector<8x128xf32>
    %166 = arith.mulf %155, %135 : vector<8x128xf32>
    %167 = arith.addf %165, %166 : vector<8x128xf32>
    %168 = vector.extract_strided_slice %5 {offsets = [40, 0], sizes = [8, 384], strides = [1, 1]} : vector<64x384xf32> to vector<8x384xf32>
    %169 = arith.truncf %167 : vector<8x128xf32> to vector<8x128xbf16>
    %c0_38 = arith.constant 0 : index
    %c0_39 = arith.constant 0 : index
    %170 = vector.load %arg5[%c0_38, %c0_39] : memref<128x384xbf16, #tpu.memory_space<vmem>>, vector<128x384xbf16>
    %cst_40 = arith.constant dense<0.000000e+00> : vector<8x384xf32>
    %171 = tpu.matmul %169, %170, %cst_40 {dimension_numbers = #tpu.dot_dimension_numbers<[1], [0], [0], [1], [0, 0, 1, 1], [], []>} : vector<8x128xbf16>, vector<128x384xbf16>, vector<8x384xf32> -> vector<8x384xf32>
    %172 = vector.extract_strided_slice %168 {offsets = [0, 0], sizes = [8, 128], strides = [1, 1]} : vector<8x384xf32> to vector<8x128xf32>
    %173 = vector.extract_strided_slice %171 {offsets = [0, 0], sizes = [8, 128], strides = [1, 1]} : vector<8x384xf32> to vector<8x128xf32>
    %174 = arith.addf %172, %173 : vector<8x128xf32>
    %175 = arith.negf %174 : vector<8x128xf32>
    %176 = math.exp %175 : vector<8x128xf32>
    %cst_41 = arith.constant 1.000000e+00 : f32
    %177 = vector.broadcast %cst_41 : f32 to vector<8x128xf32>
    %178 = arith.addf %177, %176 : vector<8x128xf32>
    %179 = arith.divf %177, %178 : vector<8x128xf32>
    %180 = vector.extract_strided_slice %168 {offsets = [0, 128], sizes = [8, 128], strides = [1, 1]} : vector<8x384xf32> to vector<8x128xf32>
    %181 = vector.extract_strided_slice %171 {offsets = [0, 128], sizes = [8, 128], strides = [1, 1]} : vector<8x384xf32> to vector<8x128xf32>
    %182 = arith.addf %180, %181 : vector<8x128xf32>
    %183 = arith.negf %182 : vector<8x128xf32>
    %184 = math.exp %183 : vector<8x128xf32>
    %cst_42 = arith.constant 1.000000e+00 : f32
    %185 = vector.broadcast %cst_42 : f32 to vector<8x128xf32>
    %186 = arith.addf %185, %184 : vector<8x128xf32>
    %187 = arith.divf %185, %186 : vector<8x128xf32>
    %188 = vector.extract_strided_slice %168 {offsets = [0, 256], sizes = [8, 128], strides = [1, 1]} : vector<8x384xf32> to vector<8x128xf32>
    %189 = vector.extract_strided_slice %171 {offsets = [0, 256], sizes = [8, 128], strides = [1, 1]} : vector<8x384xf32> to vector<8x128xf32>
    %190 = vector.broadcast %6 : vector<1x128xf32> to vector<8x128xf32>
    %191 = arith.addf %189, %190 : vector<8x128xf32>
    %192 = arith.mulf %179, %191 : vector<8x128xf32>
    %193 = arith.addf %188, %192 : vector<8x128xf32>
    %194 = math.tanh %193 : vector<8x128xf32>
    %cst_43 = arith.constant 1.000000e+00 : f32
    %195 = vector.broadcast %cst_43 : f32 to vector<8x128xf32>
    %196 = arith.subf %195, %187 : vector<8x128xf32>
    %197 = arith.mulf %196, %194 : vector<8x128xf32>
    %198 = arith.mulf %187, %167 : vector<8x128xf32>
    %199 = arith.addf %197, %198 : vector<8x128xf32>
    %200 = vector.extract_strided_slice %5 {offsets = [48, 0], sizes = [8, 384], strides = [1, 1]} : vector<64x384xf32> to vector<8x384xf32>
    %201 = arith.truncf %199 : vector<8x128xf32> to vector<8x128xbf16>
    %c0_44 = arith.constant 0 : index
    %c0_45 = arith.constant 0 : index
    %202 = vector.load %arg5[%c0_44, %c0_45] : memref<128x384xbf16, #tpu.memory_space<vmem>>, vector<128x384xbf16>
    %cst_46 = arith.constant dense<0.000000e+00> : vector<8x384xf32>
    %203 = tpu.matmul %201, %202, %cst_46 {dimension_numbers = #tpu.dot_dimension_numbers<[1], [0], [0], [1], [0, 0, 1, 1], [], []>} : vector<8x128xbf16>, vector<128x384xbf16>, vector<8x384xf32> -> vector<8x384xf32>
    %204 = vector.extract_strided_slice %200 {offsets = [0, 0], sizes = [8, 128], strides = [1, 1]} : vector<8x384xf32> to vector<8x128xf32>
    %205 = vector.extract_strided_slice %203 {offsets = [0, 0], sizes = [8, 128], strides = [1, 1]} : vector<8x384xf32> to vector<8x128xf32>
    %206 = arith.addf %204, %205 : vector<8x128xf32>
    %207 = arith.negf %206 : vector<8x128xf32>
    %208 = math.exp %207 : vector<8x128xf32>
    %cst_47 = arith.constant 1.000000e+00 : f32
    %209 = vector.broadcast %cst_47 : f32 to vector<8x128xf32>
    %210 = arith.addf %209, %208 : vector<8x128xf32>
    %211 = arith.divf %209, %210 : vector<8x128xf32>
    %212 = vector.extract_strided_slice %200 {offsets = [0, 128], sizes = [8, 128], strides = [1, 1]} : vector<8x384xf32> to vector<8x128xf32>
    %213 = vector.extract_strided_slice %203 {offsets = [0, 128], sizes = [8, 128], strides = [1, 1]} : vector<8x384xf32> to vector<8x128xf32>
    %214 = arith.addf %212, %213 : vector<8x128xf32>
    %215 = arith.negf %214 : vector<8x128xf32>
    %216 = math.exp %215 : vector<8x128xf32>
    %cst_48 = arith.constant 1.000000e+00 : f32
    %217 = vector.broadcast %cst_48 : f32 to vector<8x128xf32>
    %218 = arith.addf %217, %216 : vector<8x128xf32>
    %219 = arith.divf %217, %218 : vector<8x128xf32>
    %220 = vector.extract_strided_slice %200 {offsets = [0, 256], sizes = [8, 128], strides = [1, 1]} : vector<8x384xf32> to vector<8x128xf32>
    %221 = vector.extract_strided_slice %203 {offsets = [0, 256], sizes = [8, 128], strides = [1, 1]} : vector<8x384xf32> to vector<8x128xf32>
    %222 = vector.broadcast %6 : vector<1x128xf32> to vector<8x128xf32>
    %223 = arith.addf %221, %222 : vector<8x128xf32>
    %224 = arith.mulf %211, %223 : vector<8x128xf32>
    %225 = arith.addf %220, %224 : vector<8x128xf32>
    %226 = math.tanh %225 : vector<8x128xf32>
    %cst_49 = arith.constant 1.000000e+00 : f32
    %227 = vector.broadcast %cst_49 : f32 to vector<8x128xf32>
    %228 = arith.subf %227, %219 : vector<8x128xf32>
    %229 = arith.mulf %228, %226 : vector<8x128xf32>
    %230 = arith.mulf %219, %199 : vector<8x128xf32>
    %231 = arith.addf %229, %230 : vector<8x128xf32>
    %232 = vector.extract_strided_slice %5 {offsets = [56, 0], sizes = [8, 384], strides = [1, 1]} : vector<64x384xf32> to vector<8x384xf32>
    %233 = arith.truncf %231 : vector<8x128xf32> to vector<8x128xbf16>
    %c0_50 = arith.constant 0 : index
    %c0_51 = arith.constant 0 : index
    %234 = vector.load %arg5[%c0_50, %c0_51] : memref<128x384xbf16, #tpu.memory_space<vmem>>, vector<128x384xbf16>
    %cst_52 = arith.constant dense<0.000000e+00> : vector<8x384xf32>
    %235 = tpu.matmul %233, %234, %cst_52 {dimension_numbers = #tpu.dot_dimension_numbers<[1], [0], [0], [1], [0, 0, 1, 1], [], []>} : vector<8x128xbf16>, vector<128x384xbf16>, vector<8x384xf32> -> vector<8x384xf32>
    %236 = vector.extract_strided_slice %232 {offsets = [0, 0], sizes = [8, 128], strides = [1, 1]} : vector<8x384xf32> to vector<8x128xf32>
    %237 = vector.extract_strided_slice %235 {offsets = [0, 0], sizes = [8, 128], strides = [1, 1]} : vector<8x384xf32> to vector<8x128xf32>
    %238 = arith.addf %236, %237 : vector<8x128xf32>
    %239 = arith.negf %238 : vector<8x128xf32>
    %240 = math.exp %239 : vector<8x128xf32>
    %cst_53 = arith.constant 1.000000e+00 : f32
    %241 = vector.broadcast %cst_53 : f32 to vector<8x128xf32>
    %242 = arith.addf %241, %240 : vector<8x128xf32>
    %243 = arith.divf %241, %242 : vector<8x128xf32>
    %244 = vector.extract_strided_slice %232 {offsets = [0, 128], sizes = [8, 128], strides = [1, 1]} : vector<8x384xf32> to vector<8x128xf32>
    %245 = vector.extract_strided_slice %235 {offsets = [0, 128], sizes = [8, 128], strides = [1, 1]} : vector<8x384xf32> to vector<8x128xf32>
    %246 = arith.addf %244, %245 : vector<8x128xf32>
    %247 = arith.negf %246 : vector<8x128xf32>
    %248 = math.exp %247 : vector<8x128xf32>
    %cst_54 = arith.constant 1.000000e+00 : f32
    %249 = vector.broadcast %cst_54 : f32 to vector<8x128xf32>
    %250 = arith.addf %249, %248 : vector<8x128xf32>
    %251 = arith.divf %249, %250 : vector<8x128xf32>
    %252 = vector.extract_strided_slice %232 {offsets = [0, 256], sizes = [8, 128], strides = [1, 1]} : vector<8x384xf32> to vector<8x128xf32>
    %253 = vector.extract_strided_slice %235 {offsets = [0, 256], sizes = [8, 128], strides = [1, 1]} : vector<8x384xf32> to vector<8x128xf32>
    %254 = vector.broadcast %6 : vector<1x128xf32> to vector<8x128xf32>
    %255 = arith.addf %253, %254 : vector<8x128xf32>
    %256 = arith.mulf %243, %255 : vector<8x128xf32>
    %257 = arith.addf %252, %256 : vector<8x128xf32>
    %258 = math.tanh %257 : vector<8x128xf32>
    %cst_55 = arith.constant 1.000000e+00 : f32
    %259 = vector.broadcast %cst_55 : f32 to vector<8x128xf32>
    %260 = arith.subf %259, %251 : vector<8x128xf32>
    %261 = arith.mulf %260, %258 : vector<8x128xf32>
    %262 = arith.mulf %251, %231 : vector<8x128xf32>
    %263 = arith.addf %261, %262 : vector<8x128xf32>
    %264 = arith.truncf %263 : vector<8x128xf32> to vector<8x128xbf16>
    %c0_56 = arith.constant 0 : index
    %c0_57 = arith.constant 0 : index
    %265 = vector.load %arg7[%c0_56, %c0_57] : memref<128x256xbf16, #tpu.memory_space<vmem>>, vector<128x256xbf16>
    %cst_58 = arith.constant dense<0.000000e+00> : vector<8x256xf32>
    %266 = tpu.matmul %264, %265, %cst_58 {dimension_numbers = #tpu.dot_dimension_numbers<[1], [0], [0], [1], [0, 0, 1, 1], [], []>} : vector<8x128xbf16>, vector<128x256xbf16>, vector<8x256xf32> -> vector<8x256xf32>
    %c0_59 = arith.constant 0 : index
    %c0_60 = arith.constant 0 : index
    %267 = vector.load %arg8[%c0_59, %c0_60] : memref<1x256xf32, #tpu.memory_space<vmem>>, vector<1x256xf32>
    %268 = vector.broadcast %267 : vector<1x256xf32> to vector<8x256xf32>
    %269 = arith.addf %266, %268 : vector<8x256xf32>
    %270 = vector.extract_strided_slice %269 {offsets = [0, 0], sizes = [8, 32], strides = [1, 1]} : vector<8x256xf32> to vector<8x32xf32>
    %271 = vector.extract_strided_slice %269 {offsets = [0, 128], sizes = [8, 32], strides = [1, 1]} : vector<8x256xf32> to vector<8x32xf32>
    %c0_61 = arith.constant 0 : index
    %c0_62 = arith.constant 0 : index
    %272 = vector.load %arg16[%c0_61, %c0_62] : memref<8x32xf32, #tpu.memory_space<vmem>>, vector<8x32xf32>
    tpu.vector_store %arg16[%c0_61, %c0_62], %270 {strides = array<i32>} : memref<8x32xf32, #tpu.memory_space<vmem>>, vector<8x32xf32>,
    %c0_63 = arith.constant 0 : index
    %c0_64 = arith.constant 0 : index
    %273 = vector.load %arg17[%c0_63, %c0_64] : memref<8x32xf32, #tpu.memory_space<vmem>>, vector<8x32xf32>
    tpu.vector_store %arg17[%c0_63, %c0_64], %271 {strides = array<i32>} : memref<8x32xf32, #tpu.memory_space<vmem>>, vector<8x32xf32>,
    %c0_65 = arith.constant 0 : index
    %c0_66 = arith.constant 0 : index
    %274 = vector.load %arg2[%c0_65, %c0_66] : memref<8x32xf32, #tpu.memory_space<vmem>>, vector<8x32xf32>
    %cst_67 = arith.constant 5.000000e-01 : f32
    %275 = vector.broadcast %cst_67 : f32 to vector<8x32xf32>
    %276 = arith.mulf %275, %271 : vector<8x32xf32>
    %277 = math.exp %276 : vector<8x32xf32>
    %278 = arith.mulf %274, %277 : vector<8x32xf32>
    %279 = arith.addf %270, %278 : vector<8x32xf32>
    %280 = arith.truncf %279 : vector<8x32xf32> to vector<8x32xbf16>
    %c0_68 = arith.constant 0 : index
    %c0_69 = arith.constant 0 : index
    %281 = vector.load %arg9[%c0_68, %c0_69] : memref<32x128xbf16, #tpu.memory_space<vmem>>, vector<32x128xbf16>
    %cst_70 = arith.constant dense<0.000000e+00> : vector<8x128xf32>
    %282 = tpu.matmul %280, %281, %cst_70 {dimension_numbers = #tpu.dot_dimension_numbers<[1], [0], [0], [1], [0, 0, 1, 1], [], []>} : vector<8x32xbf16>, vector<32x128xbf16>, vector<8x128xf32> -> vector<8x128xf32>
    %c0_71 = arith.constant 0 : index
    %c0_72 = arith.constant 0 : index
    %283 = vector.load %arg10[%c0_71, %c0_72] : memref<1x128xf32, #tpu.memory_space<vmem>>, vector<1x128xf32>
    %284 = vector.broadcast %283 : vector<1x128xf32> to vector<8x128xf32>
    %285 = arith.addf %282, %284 : vector<8x128xf32>
    %c0_73 = arith.constant 0 : index
    %c0_74 = arith.constant 0 : index
    %286 = vector.load %arg1[%c0_73, %c0_74] : memref<1x128xf32, #tpu.memory_space<vmem>>, vector<1x128xf32>
    %287 = vector.broadcast %286 : vector<1x128xf32> to vector<8x128xf32>
    %288 = arith.addf %285, %287 : vector<8x128xf32>
    %289 = tpu.iota {dimensions = array<i32: 1>} : vector<8x128xi32>
    %290 = tpu.iota {dimensions = array<i32: 1>} : vector<8x128xi32>
    %291 = arith.truncf %288 : vector<8x128xf32> to vector<8x128xbf16>
    %c0_75 = arith.constant 0 : index
    %c0_76 = arith.constant 0 : index
    %292 = vector.load %arg11[%c0_75, %c0_76] : memref<128x512xbf16, #tpu.memory_space<vmem>>, vector<128x512xbf16>
    %cst_77 = arith.constant dense<0.000000e+00> : vector<8x512xf32>
    %293 = tpu.matmul %291, %292, %cst_77 {dimension_numbers = #tpu.dot_dimension_numbers<[1], [0], [0], [1], [0, 0, 1, 1], [], []>} : vector<8x128xbf16>, vector<128x512xbf16>, vector<8x512xf32> -> vector<8x512xf32>
    %c0_78 = arith.constant 0 : index
    %c0_79 = arith.constant 0 : index
    %294 = vector.load %arg12[%c0_78, %c0_79] : memref<1x512xf32, #tpu.memory_space<vmem>>, vector<1x512xf32>
    %295 = vector.broadcast %294 : vector<1x512xf32> to vector<8x512xf32>
    %296 = arith.addf %293, %295 : vector<8x512xf32>
    %297 = vector.extract_strided_slice %296 {offsets = [0, 0], sizes = [8, 128], strides = [1, 1]} : vector<8x512xf32> to vector<8x128xf32>
    %298 = arith.negf %297 : vector<8x128xf32>
    %299 = math.exp %298 : vector<8x128xf32>
    %cst_80 = arith.constant 1.000000e+00 : f32
    %300 = vector.broadcast %cst_80 : f32 to vector<8x128xf32>
    %301 = arith.addf %300, %299 : vector<8x128xf32>
    %302 = arith.divf %300, %301 : vector<8x128xf32>
    %303 = vector.extract_strided_slice %296 {offsets = [0, 128], sizes = [8, 128], strides = [1, 1]} : vector<8x512xf32> to vector<8x128xf32>
    %304 = arith.negf %303 : vector<8x128xf32>
    %305 = math.exp %304 : vector<8x128xf32>
    %cst_81 = arith.constant 1.000000e+00 : f32
    %306 = vector.broadcast %cst_81 : f32 to vector<8x128xf32>
    %307 = arith.addf %306, %305 : vector<8x128xf32>
    %308 = arith.divf %306, %307 : vector<8x128xf32>
    %309 = vector.extract_strided_slice %296 {offsets = [0, 256], sizes = [8, 128], strides = [1, 1]} : vector<8x512xf32> to vector<8x128xf32>
    %310 = vector.extract_strided_slice %296 {offsets = [0, 384], sizes = [8, 128], strides = [1, 1]} : vector<8x512xf32> to vector<8x128xf32>
    %311 = arith.mulf %302, %310 : vector<8x128xf32>
    %312 = arith.addf %309, %311 : vector<8x128xf32>
    %313 = math.tanh %312 : vector<8x128xf32>
    %cst_82 = arith.constant 1.000000e+00 : f32
    %314 = vector.broadcast %cst_82 : f32 to vector<8x128xf32>
    %315 = arith.subf %314, %308 : vector<8x128xf32>
    %316 = arith.mulf %315, %313 : vector<8x128xf32>
    %317 = arith.mulf %308, %288 : vector<8x128xf32>
    %318 = arith.addf %316, %317 : vector<8x128xf32>
    %319 = arith.truncf %318 : vector<8x128xf32> to vector<8x128xbf16>
    %c0_83 = arith.constant 0 : index
    %c0_84 = arith.constant 0 : index
    %320 = vector.load %arg13[%c0_83, %c0_84] : memref<128x128xbf16, #tpu.memory_space<vmem>>, vector<128x128xbf16>
    %cst_85 = arith.constant dense<0.000000e+00> : vector<8x128xf32>
    %321 = tpu.matmul %319, %320, %cst_85 {dimension_numbers = #tpu.dot_dimension_numbers<[1], [0], [0], [1], [0, 0, 1, 1], [], []>} : vector<8x128xbf16>, vector<128x128xbf16>, vector<8x128xf32> -> vector<8x128xf32>
    %c0_86 = arith.constant 0 : index
    %c0_87 = arith.constant 0 : index
    %322 = vector.load %arg14[%c0_86, %c0_87] : memref<1x128xf32, #tpu.memory_space<vmem>>, vector<1x128xf32>
    %323 = vector.broadcast %322 : vector<1x128xf32> to vector<8x128xf32>
    %324 = arith.addf %321, %323 : vector<8x128xf32>
    %cst_88 = arith.constant -1.000000e+01 : f32
    %cst_89 = arith.constant 1.000000e+01 : f32
    %325 = vector.broadcast %cst_88 : f32 to vector<8x128xf32>
    %326 = arith.maximumf %325, %324 : vector<8x128xf32>
    %327 = vector.broadcast %cst_89 : f32 to vector<8x128xf32>
    %328 = arith.minimumf %327, %326 : vector<8x128xf32>
    %c0_90 = arith.constant 0 : index
    %c0_91 = arith.constant 0 : index
    %c0_92 = arith.constant 0 : index
    %329 = vector.load %arg15[%c0_90, %c0_91, %c0_92] : memref<8x8x128xf32, #tpu.memory_space<vmem>>, vector<1x8x128xf32>
    %330 = vector.shape_cast %329 : vector<1x8x128xf32> to vector<8x128xf32>
    %331 = vector.shape_cast %328 : vector<8x128xf32> to vector<1x8x128xf32>
    tpu.vector_store %arg15[%c0_90, %c0_91, %c0_92], %331 {strides = array<i32>} : memref<8x8x128xf32, #tpu.memory_space<vmem>>, vector<1x8x128xf32>,
    %332 = tpu.bitcast %328 : vector<8x128xf32> -> vector<8x128xi32>
    %c0_i32 = arith.constant 0 : i32
    %333 = vector.broadcast %c0_i32 : i32 to vector<8x128xi32>
    %334 = arith.cmpi sge, %332, %333 : vector<8x128xi32>
    %c-2147483648_i32 = arith.constant -2147483648 : i32
    %335 = vector.broadcast %c-2147483648_i32 : i32 to vector<8x128xi32>
    %336 = arith.subi %335, %332 : vector<8x128xi32>
    %337 = arith.select %334, %332, %336 : vector<8x128xi1>, vector<8x128xi32>
    %c-16_i32 = arith.constant -16 : i32
    %338 = vector.broadcast %c-16_i32 : i32 to vector<8x128xi32>
    %339 = arith.andi %337, %338 : vector<8x128xi32>
    %c15_i32 = arith.constant 15 : i32
    %340 = vector.broadcast %c15_i32 : i32 to vector<8x128xi32>
    %341 = arith.subi %340, %290 : vector<8x128xi32>
    %342 = arith.ori %339, %341 : vector<8x128xi32>
    %c16_i32 = arith.constant 16 : i32
    %343 = vector.broadcast %c16_i32 : i32 to vector<8x128xi32>
    %344 = arith.cmpi slt, %290, %343 : vector<8x128xi32>
    %c-2147483648_i32_93 = arith.constant -2147483648 : i32
    %345 = vector.broadcast %c-2147483648_i32_93 : i32 to vector<8x128xi32>
    %346 = arith.select %344, %342, %345 : vector<8x128xi1>, vector<8x128xi32>
    %cst_94 = arith.constant dense<-2147483648> : vector<8xi32>
    %347 = vector.multi_reduction <maxsi>, %346, %cst_94 [1] : vector<8x128xi32> to vector<8xi32>
    %348 = vector.shape_cast %347 : vector<8xi32> to vector<8x1xi32>
    %c15_i32_95 = arith.constant 15 : i32
    %349 = vector.broadcast %c15_i32_95 : i32 to vector<8x1xi32>
    %350 = arith.andi %348, %349 : vector<8x1xi32>
    %c15_i32_96 = arith.constant 15 : i32
    %351 = vector.broadcast %c15_i32_96 : i32 to vector<8x1xi32>
    %352 = arith.subi %351, %350 : vector<8x1xi32>
    %c112_i32 = arith.constant 112 : i32
    %353 = vector.broadcast %c112_i32 : i32 to vector<8x128xi32>
    %354 = arith.cmpi sge, %289, %353 : vector<8x128xi32>
    %c112_i32_97 = arith.constant 112 : i32
    %355 = vector.broadcast %c112_i32_97 : i32 to vector<8x1xi32>
    %356 = arith.addi %352, %355 : vector<8x1xi32>
    %357 = vector.broadcast %356 : vector<8x1xi32> to vector<8x128xi32>
    %358 = arith.cmpi eq, %289, %357 : vector<8x128xi32>
    %359 = arith.extui %358 : vector<8x128xi1> to vector<8x128xi32>
    %360 = arith.sitofp %359 : vector<8x128xi32> to vector<8x128xf32>
    %361 = arith.select %354, %360, %318 : vector<8x128xi1>, vector<8x128xf32>
    %362 = arith.truncf %361 : vector<8x128xf32> to vector<8x128xbf16>
    %c0_98 = arith.constant 0 : index
    %c0_99 = arith.constant 0 : index
    %363 = vector.load %arg11[%c0_98, %c0_99] : memref<128x512xbf16, #tpu.memory_space<vmem>>, vector<128x512xbf16>
    %cst_100 = arith.constant dense<0.000000e+00> : vector<8x512xf32>
    %364 = tpu.matmul %362, %363, %cst_100 {dimension_numbers = #tpu.dot_dimension_numbers<[1], [0], [0], [1], [0, 0, 1, 1], [], []>} : vector<8x128xbf16>, vector<128x512xbf16>, vector<8x512xf32> -> vector<8x512xf32>
    %c0_101 = arith.constant 0 : index
    %c0_102 = arith.constant 0 : index
    %365 = vector.load %arg12[%c0_101, %c0_102] : memref<1x512xf32, #tpu.memory_space<vmem>>, vector<1x512xf32>
    %366 = vector.broadcast %365 : vector<1x512xf32> to vector<8x512xf32>
    %367 = arith.addf %364, %366 : vector<8x512xf32>
    %368 = vector.extract_strided_slice %367 {offsets = [0, 0], sizes = [8, 128], strides = [1, 1]} : vector<8x512xf32> to vector<8x128xf32>
    %369 = arith.negf %368 : vector<8x128xf32>
    %370 = math.exp %369 : vector<8x128xf32>
    %cst_103 = arith.constant 1.000000e+00 : f32
    %371 = vector.broadcast %cst_103 : f32 to vector<8x128xf32>
    %372 = arith.addf %371, %370 : vector<8x128xf32>
    %373 = arith.divf %371, %372 : vector<8x128xf32>
    %374 = vector.extract_strided_slice %367 {offsets = [0, 128], sizes = [8, 128], strides = [1, 1]} : vector<8x512xf32> to vector<8x128xf32>
    %375 = arith.negf %374 : vector<8x128xf32>
    %376 = math.exp %375 : vector<8x128xf32>
    %cst_104 = arith.constant 1.000000e+00 : f32
    %377 = vector.broadcast %cst_104 : f32 to vector<8x128xf32>
    %378 = arith.addf %377, %376 : vector<8x128xf32>
    %379 = arith.divf %377, %378 : vector<8x128xf32>
    %380 = vector.extract_strided_slice %367 {offsets = [0, 256], sizes = [8, 128], strides = [1, 1]} : vector<8x512xf32> to vector<8x128xf32>
    %381 = vector.extract_strided_slice %367 {offsets = [0, 384], sizes = [8, 128], strides = [1, 1]} : vector<8x512xf32> to vector<8x128xf32>
    %382 = arith.mulf %373, %381 : vector<8x128xf32>
    %383 = arith.addf %380, %382 : vector<8x128xf32>
    %384 = math.tanh %383 : vector<8x128xf32>
    %cst_105 = arith.constant 1.000000e+00 : f32
    %385 = vector.broadcast %cst_105 : f32 to vector<8x128xf32>
    %386 = arith.subf %385, %379 : vector<8x128xf32>
    %387 = arith.mulf %386, %384 : vector<8x128xf32>
    %388 = arith.mulf %379, %361 : vector<8x128xf32>
    %389 = arith.addf %387, %388 : vector<8x128xf32>
    %390 = arith.truncf %389 : vector<8x128xf32> to vector<8x128xbf16>
    %c0_106 = arith.constant 0 : index
    %c0_107 = arith.constant 0 : index
    %391 = vector.load %arg13[%c0_106, %c0_107] : memref<128x128xbf16, #tpu.memory_space<vmem>>, vector<128x128xbf16>
    %cst_108 = arith.constant dense<0.000000e+00> : vector<8x128xf32>
    %392 = tpu.matmul %390, %391, %cst_108 {dimension_numbers = #tpu.dot_dimension_numbers<[1], [0], [0], [1], [0, 0, 1, 1], [], []>} : vector<8x128xbf16>, vector<128x128xbf16>, vector<8x128xf32> -> vector<8x128xf32>
    %c0_109 = arith.constant 0 : index
    %c0_110 = arith.constant 0 : index
    %393 = vector.load %arg14[%c0_109, %c0_110] : memref<1x128xf32, #tpu.memory_space<vmem>>, vector<1x128xf32>
    %394 = vector.broadcast %393 : vector<1x128xf32> to vector<8x128xf32>
    %395 = arith.addf %392, %394 : vector<8x128xf32>
    %cst_111 = arith.constant -1.000000e+01 : f32
    %cst_112 = arith.constant 1.000000e+01 : f32
    %396 = vector.broadcast %cst_111 : f32 to vector<8x128xf32>
    %397 = arith.maximumf %396, %395 : vector<8x128xf32>
    %398 = vector.broadcast %cst_112 : f32 to vector<8x128xf32>
    %399 = arith.minimumf %398, %397 : vector<8x128xf32>
    %c1 = arith.constant 1 : index
    %c0_113 = arith.constant 0 : index
    %c0_114 = arith.constant 0 : index
    %400 = vector.load %arg15[%c1, %c0_113, %c0_114] : memref<8x8x128xf32, #tpu.memory_space<vmem>>, vector<1x8x128xf32>
    %401 = vector.shape_cast %400 : vector<1x8x128xf32> to vector<8x128xf32>
    %402 = vector.shape_cast %399 : vector<8x128xf32> to vector<1x8x128xf32>
    tpu.vector_store %arg15[%c1, %c0_113, %c0_114], %402 {strides = array<i32>} : memref<8x8x128xf32, #tpu.memory_space<vmem>>, vector<1x8x128xf32>,
    %403 = tpu.bitcast %399 : vector<8x128xf32> -> vector<8x128xi32>
    %c0_i32_115 = arith.constant 0 : i32
    %404 = vector.broadcast %c0_i32_115 : i32 to vector<8x128xi32>
    %405 = arith.cmpi sge, %403, %404 : vector<8x128xi32>
    %c-2147483648_i32_116 = arith.constant -2147483648 : i32
    %406 = vector.broadcast %c-2147483648_i32_116 : i32 to vector<8x128xi32>
    %407 = arith.subi %406, %403 : vector<8x128xi32>
    %408 = arith.select %405, %403, %407 : vector<8x128xi1>, vector<8x128xi32>
    %c-16_i32_117 = arith.constant -16 : i32
    %409 = vector.broadcast %c-16_i32_117 : i32 to vector<8x128xi32>
    %410 = arith.andi %408, %409 : vector<8x128xi32>
    %c15_i32_118 = arith.constant 15 : i32
    %411 = vector.broadcast %c15_i32_118 : i32 to vector<8x128xi32>
    %412 = arith.subi %411, %290 : vector<8x128xi32>
    %413 = arith.ori %410, %412 : vector<8x128xi32>
    %c16_i32_119 = arith.constant 16 : i32
    %414 = vector.broadcast %c16_i32_119 : i32 to vector<8x128xi32>
    %415 = arith.cmpi slt, %290, %414 : vector<8x128xi32>
    %c-2147483648_i32_120 = arith.constant -2147483648 : i32
    %416 = vector.broadcast %c-2147483648_i32_120 : i32 to vector<8x128xi32>
    %417 = arith.select %415, %413, %416 : vector<8x128xi1>, vector<8x128xi32>
    %cst_121 = arith.constant dense<-2147483648> : vector<8xi32>
    %418 = vector.multi_reduction <maxsi>, %417, %cst_121 [1] : vector<8x128xi32> to vector<8xi32>
    %419 = vector.shape_cast %418 : vector<8xi32> to vector<8x1xi32>
    %c15_i32_122 = arith.constant 15 : i32
    %420 = vector.broadcast %c15_i32_122 : i32 to vector<8x1xi32>
    %421 = arith.andi %419, %420 : vector<8x1xi32>
    %c15_i32_123 = arith.constant 15 : i32
    %422 = vector.broadcast %c15_i32_123 : i32 to vector<8x1xi32>
    %423 = arith.subi %422, %421 : vector<8x1xi32>
    %c112_i32_124 = arith.constant 112 : i32
    %424 = vector.broadcast %c112_i32_124 : i32 to vector<8x128xi32>
    %425 = arith.cmpi sge, %289, %424 : vector<8x128xi32>
    %c112_i32_125 = arith.constant 112 : i32
    %426 = vector.broadcast %c112_i32_125 : i32 to vector<8x1xi32>
    %427 = arith.addi %423, %426 : vector<8x1xi32>
    %428 = vector.broadcast %427 : vector<8x1xi32> to vector<8x128xi32>
    %429 = arith.cmpi eq, %289, %428 : vector<8x128xi32>
    %430 = arith.extui %429 : vector<8x128xi1> to vector<8x128xi32>
    %431 = arith.sitofp %430 : vector<8x128xi32> to vector<8x128xf32>
    %432 = arith.select %425, %431, %389 : vector<8x128xi1>, vector<8x128xf32>
    %433 = arith.truncf %432 : vector<8x128xf32> to vector<8x128xbf16>
    %c0_126 = arith.constant 0 : index
    %c0_127 = arith.constant 0 : index
    %434 = vector.load %arg11[%c0_126, %c0_127] : memref<128x512xbf16, #tpu.memory_space<vmem>>, vector<128x512xbf16>
    %cst_128 = arith.constant dense<0.000000e+00> : vector<8x512xf32>
    %435 = tpu.matmul %433, %434, %cst_128 {dimension_numbers = #tpu.dot_dimension_numbers<[1], [0], [0], [1], [0, 0, 1, 1], [], []>} : vector<8x128xbf16>, vector<128x512xbf16>, vector<8x512xf32> -> vector<8x512xf32>
    %c0_129 = arith.constant 0 : index
    %c0_130 = arith.constant 0 : index
    %436 = vector.load %arg12[%c0_129, %c0_130] : memref<1x512xf32, #tpu.memory_space<vmem>>, vector<1x512xf32>
    %437 = vector.broadcast %436 : vector<1x512xf32> to vector<8x512xf32>
    %438 = arith.addf %435, %437 : vector<8x512xf32>
    %439 = vector.extract_strided_slice %438 {offsets = [0, 0], sizes = [8, 128], strides = [1, 1]} : vector<8x512xf32> to vector<8x128xf32>
    %440 = arith.negf %439 : vector<8x128xf32>
    %441 = math.exp %440 : vector<8x128xf32>
    %cst_131 = arith.constant 1.000000e+00 : f32
    %442 = vector.broadcast %cst_131 : f32 to vector<8x128xf32>
    %443 = arith.addf %442, %441 : vector<8x128xf32>
    %444 = arith.divf %442, %443 : vector<8x128xf32>
    %445 = vector.extract_strided_slice %438 {offsets = [0, 128], sizes = [8, 128], strides = [1, 1]} : vector<8x512xf32> to vector<8x128xf32>
    %446 = arith.negf %445 : vector<8x128xf32>
    %447 = math.exp %446 : vector<8x128xf32>
    %cst_132 = arith.constant 1.000000e+00 : f32
    %448 = vector.broadcast %cst_132 : f32 to vector<8x128xf32>
    %449 = arith.addf %448, %447 : vector<8x128xf32>
    %450 = arith.divf %448, %449 : vector<8x128xf32>
    %451 = vector.extract_strided_slice %438 {offsets = [0, 256], sizes = [8, 128], strides = [1, 1]} : vector<8x512xf32> to vector<8x128xf32>
    %452 = vector.extract_strided_slice %438 {offsets = [0, 384], sizes = [8, 128], strides = [1, 1]} : vector<8x512xf32> to vector<8x128xf32>
    %453 = arith.mulf %444, %452 : vector<8x128xf32>
    %454 = arith.addf %451, %453 : vector<8x128xf32>
    %455 = math.tanh %454 : vector<8x128xf32>
    %cst_133 = arith.constant 1.000000e+00 : f32
    %456 = vector.broadcast %cst_133 : f32 to vector<8x128xf32>
    %457 = arith.subf %456, %450 : vector<8x128xf32>
    %458 = arith.mulf %457, %455 : vector<8x128xf32>
    %459 = arith.mulf %450, %432 : vector<8x128xf32>
    %460 = arith.addf %458, %459 : vector<8x128xf32>
    %461 = arith.truncf %460 : vector<8x128xf32> to vector<8x128xbf16>
    %c0_134 = arith.constant 0 : index
    %c0_135 = arith.constant 0 : index
    %462 = vector.load %arg13[%c0_134, %c0_135] : memref<128x128xbf16, #tpu.memory_space<vmem>>, vector<128x128xbf16>
    %cst_136 = arith.constant dense<0.000000e+00> : vector<8x128xf32>
    %463 = tpu.matmul %461, %462, %cst_136 {dimension_numbers = #tpu.dot_dimension_numbers<[1], [0], [0], [1], [0, 0, 1, 1], [], []>} : vector<8x128xbf16>, vector<128x128xbf16>, vector<8x128xf32> -> vector<8x128xf32>
    %c0_137 = arith.constant 0 : index
    %c0_138 = arith.constant 0 : index
    %464 = vector.load %arg14[%c0_137, %c0_138] : memref<1x128xf32, #tpu.memory_space<vmem>>, vector<1x128xf32>
    %465 = vector.broadcast %464 : vector<1x128xf32> to vector<8x128xf32>
    %466 = arith.addf %463, %465 : vector<8x128xf32>
    %cst_139 = arith.constant -1.000000e+01 : f32
    %cst_140 = arith.constant 1.000000e+01 : f32
    %467 = vector.broadcast %cst_139 : f32 to vector<8x128xf32>
    %468 = arith.maximumf %467, %466 : vector<8x128xf32>
    %469 = vector.broadcast %cst_140 : f32 to vector<8x128xf32>
    %470 = arith.minimumf %469, %468 : vector<8x128xf32>
    %c2 = arith.constant 2 : index
    %c0_141 = arith.constant 0 : index
    %c0_142 = arith.constant 0 : index
    %471 = vector.load %arg15[%c2, %c0_141, %c0_142] : memref<8x8x128xf32, #tpu.memory_space<vmem>>, vector<1x8x128xf32>
    %472 = vector.shape_cast %471 : vector<1x8x128xf32> to vector<8x128xf32>
    %473 = vector.shape_cast %470 : vector<8x128xf32> to vector<1x8x128xf32>
    tpu.vector_store %arg15[%c2, %c0_141, %c0_142], %473 {strides = array<i32>} : memref<8x8x128xf32, #tpu.memory_space<vmem>>, vector<1x8x128xf32>,
    %474 = tpu.bitcast %470 : vector<8x128xf32> -> vector<8x128xi32>
    %c0_i32_143 = arith.constant 0 : i32
    %475 = vector.broadcast %c0_i32_143 : i32 to vector<8x128xi32>
    %476 = arith.cmpi sge, %474, %475 : vector<8x128xi32>
    %c-2147483648_i32_144 = arith.constant -2147483648 : i32
    %477 = vector.broadcast %c-2147483648_i32_144 : i32 to vector<8x128xi32>
    %478 = arith.subi %477, %474 : vector<8x128xi32>
    %479 = arith.select %476, %474, %478 : vector<8x128xi1>, vector<8x128xi32>
    %c-16_i32_145 = arith.constant -16 : i32
    %480 = vector.broadcast %c-16_i32_145 : i32 to vector<8x128xi32>
    %481 = arith.andi %479, %480 : vector<8x128xi32>
    %c15_i32_146 = arith.constant 15 : i32
    %482 = vector.broadcast %c15_i32_146 : i32 to vector<8x128xi32>
    %483 = arith.subi %482, %290 : vector<8x128xi32>
    %484 = arith.ori %481, %483 : vector<8x128xi32>
    %c16_i32_147 = arith.constant 16 : i32
    %485 = vector.broadcast %c16_i32_147 : i32 to vector<8x128xi32>
    %486 = arith.cmpi slt, %290, %485 : vector<8x128xi32>
    %c-2147483648_i32_148 = arith.constant -2147483648 : i32
    %487 = vector.broadcast %c-2147483648_i32_148 : i32 to vector<8x128xi32>
    %488 = arith.select %486, %484, %487 : vector<8x128xi1>, vector<8x128xi32>
    %cst_149 = arith.constant dense<-2147483648> : vector<8xi32>
    %489 = vector.multi_reduction <maxsi>, %488, %cst_149 [1] : vector<8x128xi32> to vector<8xi32>
    %490 = vector.shape_cast %489 : vector<8xi32> to vector<8x1xi32>
    %c15_i32_150 = arith.constant 15 : i32
    %491 = vector.broadcast %c15_i32_150 : i32 to vector<8x1xi32>
    %492 = arith.andi %490, %491 : vector<8x1xi32>
    %c15_i32_151 = arith.constant 15 : i32
    %493 = vector.broadcast %c15_i32_151 : i32 to vector<8x1xi32>
    %494 = arith.subi %493, %492 : vector<8x1xi32>
    %c112_i32_152 = arith.constant 112 : i32
    %495 = vector.broadcast %c112_i32_152 : i32 to vector<8x128xi32>
    %496 = arith.cmpi sge, %289, %495 : vector<8x128xi32>
    %c112_i32_153 = arith.constant 112 : i32
    %497 = vector.broadcast %c112_i32_153 : i32 to vector<8x1xi32>
    %498 = arith.addi %494, %497 : vector<8x1xi32>
    %499 = vector.broadcast %498 : vector<8x1xi32> to vector<8x128xi32>
    %500 = arith.cmpi eq, %289, %499 : vector<8x128xi32>
    %501 = arith.extui %500 : vector<8x128xi1> to vector<8x128xi32>
    %502 = arith.sitofp %501 : vector<8x128xi32> to vector<8x128xf32>
    %503 = arith.select %496, %502, %460 : vector<8x128xi1>, vector<8x128xf32>
    %504 = arith.truncf %503 : vector<8x128xf32> to vector<8x128xbf16>
    %c0_154 = arith.constant 0 : index
    %c0_155 = arith.constant 0 : index
    %505 = vector.load %arg11[%c0_154, %c0_155] : memref<128x512xbf16, #tpu.memory_space<vmem>>, vector<128x512xbf16>
    %cst_156 = arith.constant dense<0.000000e+00> : vector<8x512xf32>
    %506 = tpu.matmul %504, %505, %cst_156 {dimension_numbers = #tpu.dot_dimension_numbers<[1], [0], [0], [1], [0, 0, 1, 1], [], []>} : vector<8x128xbf16>, vector<128x512xbf16>, vector<8x512xf32> -> vector<8x512xf32>
    %c0_157 = arith.constant 0 : index
    %c0_158 = arith.constant 0 : index
    %507 = vector.load %arg12[%c0_157, %c0_158] : memref<1x512xf32, #tpu.memory_space<vmem>>, vector<1x512xf32>
    %508 = vector.broadcast %507 : vector<1x512xf32> to vector<8x512xf32>
    %509 = arith.addf %506, %508 : vector<8x512xf32>
    %510 = vector.extract_strided_slice %509 {offsets = [0, 0], sizes = [8, 128], strides = [1, 1]} : vector<8x512xf32> to vector<8x128xf32>
    %511 = arith.negf %510 : vector<8x128xf32>
    %512 = math.exp %511 : vector<8x128xf32>
    %cst_159 = arith.constant 1.000000e+00 : f32
    %513 = vector.broadcast %cst_159 : f32 to vector<8x128xf32>
    %514 = arith.addf %513, %512 : vector<8x128xf32>
    %515 = arith.divf %513, %514 : vector<8x128xf32>
    %516 = vector.extract_strided_slice %509 {offsets = [0, 128], sizes = [8, 128], strides = [1, 1]} : vector<8x512xf32> to vector<8x128xf32>
    %517 = arith.negf %516 : vector<8x128xf32>
    %518 = math.exp %517 : vector<8x128xf32>
    %cst_160 = arith.constant 1.000000e+00 : f32
    %519 = vector.broadcast %cst_160 : f32 to vector<8x128xf32>
    %520 = arith.addf %519, %518 : vector<8x128xf32>
    %521 = arith.divf %519, %520 : vector<8x128xf32>
    %522 = vector.extract_strided_slice %509 {offsets = [0, 256], sizes = [8, 128], strides = [1, 1]} : vector<8x512xf32> to vector<8x128xf32>
    %523 = vector.extract_strided_slice %509 {offsets = [0, 384], sizes = [8, 128], strides = [1, 1]} : vector<8x512xf32> to vector<8x128xf32>
    %524 = arith.mulf %515, %523 : vector<8x128xf32>
    %525 = arith.addf %522, %524 : vector<8x128xf32>
    %526 = math.tanh %525 : vector<8x128xf32>
    %cst_161 = arith.constant 1.000000e+00 : f32
    %527 = vector.broadcast %cst_161 : f32 to vector<8x128xf32>
    %528 = arith.subf %527, %521 : vector<8x128xf32>
    %529 = arith.mulf %528, %526 : vector<8x128xf32>
    %530 = arith.mulf %521, %503 : vector<8x128xf32>
    %531 = arith.addf %529, %530 : vector<8x128xf32>
    %532 = arith.truncf %531 : vector<8x128xf32> to vector<8x128xbf16>
    %c0_162 = arith.constant 0 : index
    %c0_163 = arith.constant 0 : index
    %533 = vector.load %arg13[%c0_162, %c0_163] : memref<128x128xbf16, #tpu.memory_space<vmem>>, vector<128x128xbf16>
    %cst_164 = arith.constant dense<0.000000e+00> : vector<8x128xf32>
    %534 = tpu.matmul %532, %533, %cst_164 {dimension_numbers = #tpu.dot_dimension_numbers<[1], [0], [0], [1], [0, 0, 1, 1], [], []>} : vector<8x128xbf16>, vector<128x128xbf16>, vector<8x128xf32> -> vector<8x128xf32>
    %c0_165 = arith.constant 0 : index
    %c0_166 = arith.constant 0 : index
    %535 = vector.load %arg14[%c0_165, %c0_166] : memref<1x128xf32, #tpu.memory_space<vmem>>, vector<1x128xf32>
    %536 = vector.broadcast %535 : vector<1x128xf32> to vector<8x128xf32>
    %537 = arith.addf %534, %536 : vector<8x128xf32>
    %cst_167 = arith.constant -1.000000e+01 : f32
    %cst_168 = arith.constant 1.000000e+01 : f32
    %538 = vector.broadcast %cst_167 : f32 to vector<8x128xf32>
    %539 = arith.maximumf %538, %537 : vector<8x128xf32>
    %540 = vector.broadcast %cst_168 : f32 to vector<8x128xf32>
    %541 = arith.minimumf %540, %539 : vector<8x128xf32>
    %c3 = arith.constant 3 : index
    %c0_169 = arith.constant 0 : index
    %c0_170 = arith.constant 0 : index
    %542 = vector.load %arg15[%c3, %c0_169, %c0_170] : memref<8x8x128xf32, #tpu.memory_space<vmem>>, vector<1x8x128xf32>
    %543 = vector.shape_cast %542 : vector<1x8x128xf32> to vector<8x128xf32>
    %544 = vector.shape_cast %541 : vector<8x128xf32> to vector<1x8x128xf32>
    tpu.vector_store %arg15[%c3, %c0_169, %c0_170], %544 {strides = array<i32>} : memref<8x8x128xf32, #tpu.memory_space<vmem>>, vector<1x8x128xf32>,
    %545 = tpu.bitcast %541 : vector<8x128xf32> -> vector<8x128xi32>
    %c0_i32_171 = arith.constant 0 : i32
    %546 = vector.broadcast %c0_i32_171 : i32 to vector<8x128xi32>
    %547 = arith.cmpi sge, %545, %546 : vector<8x128xi32>
    %c-2147483648_i32_172 = arith.constant -2147483648 : i32
    %548 = vector.broadcast %c-2147483648_i32_172 : i32 to vector<8x128xi32>
    %549 = arith.subi %548, %545 : vector<8x128xi32>
    %550 = arith.select %547, %545, %549 : vector<8x128xi1>, vector<8x128xi32>
    %c-16_i32_173 = arith.constant -16 : i32
    %551 = vector.broadcast %c-16_i32_173 : i32 to vector<8x128xi32>
    %552 = arith.andi %550, %551 : vector<8x128xi32>
    %c15_i32_174 = arith.constant 15 : i32
    %553 = vector.broadcast %c15_i32_174 : i32 to vector<8x128xi32>
    %554 = arith.subi %553, %290 : vector<8x128xi32>
    %555 = arith.ori %552, %554 : vector<8x128xi32>
    %c16_i32_175 = arith.constant 16 : i32
    %556 = vector.broadcast %c16_i32_175 : i32 to vector<8x128xi32>
    %557 = arith.cmpi slt, %290, %556 : vector<8x128xi32>
    %c-2147483648_i32_176 = arith.constant -2147483648 : i32
    %558 = vector.broadcast %c-2147483648_i32_176 : i32 to vector<8x128xi32>
    %559 = arith.select %557, %555, %558 : vector<8x128xi1>, vector<8x128xi32>
    %cst_177 = arith.constant dense<-2147483648> : vector<8xi32>
    %560 = vector.multi_reduction <maxsi>, %559, %cst_177 [1] : vector<8x128xi32> to vector<8xi32>
    %561 = vector.shape_cast %560 : vector<8xi32> to vector<8x1xi32>
    %c15_i32_178 = arith.constant 15 : i32
    %562 = vector.broadcast %c15_i32_178 : i32 to vector<8x1xi32>
    %563 = arith.andi %561, %562 : vector<8x1xi32>
    %c15_i32_179 = arith.constant 15 : i32
    %564 = vector.broadcast %c15_i32_179 : i32 to vector<8x1xi32>
    %565 = arith.subi %564, %563 : vector<8x1xi32>
    %c112_i32_180 = arith.constant 112 : i32
    %566 = vector.broadcast %c112_i32_180 : i32 to vector<8x128xi32>
    %567 = arith.cmpi sge, %289, %566 : vector<8x128xi32>
    %c112_i32_181 = arith.constant 112 : i32
    %568 = vector.broadcast %c112_i32_181 : i32 to vector<8x1xi32>
    %569 = arith.addi %565, %568 : vector<8x1xi32>
    %570 = vector.broadcast %569 : vector<8x1xi32> to vector<8x128xi32>
    %571 = arith.cmpi eq, %289, %570 : vector<8x128xi32>
    %572 = arith.extui %571 : vector<8x128xi1> to vector<8x128xi32>
    %573 = arith.sitofp %572 : vector<8x128xi32> to vector<8x128xf32>
    %574 = arith.select %567, %573, %531 : vector<8x128xi1>, vector<8x128xf32>
    %575 = arith.truncf %574 : vector<8x128xf32> to vector<8x128xbf16>
    %c0_182 = arith.constant 0 : index
    %c0_183 = arith.constant 0 : index
    %576 = vector.load %arg11[%c0_182, %c0_183] : memref<128x512xbf16, #tpu.memory_space<vmem>>, vector<128x512xbf16>
    %cst_184 = arith.constant dense<0.000000e+00> : vector<8x512xf32>
    %577 = tpu.matmul %575, %576, %cst_184 {dimension_numbers = #tpu.dot_dimension_numbers<[1], [0], [0], [1], [0, 0, 1, 1], [], []>} : vector<8x128xbf16>, vector<128x512xbf16>, vector<8x512xf32> -> vector<8x512xf32>
    %c0_185 = arith.constant 0 : index
    %c0_186 = arith.constant 0 : index
    %578 = vector.load %arg12[%c0_185, %c0_186] : memref<1x512xf32, #tpu.memory_space<vmem>>, vector<1x512xf32>
    %579 = vector.broadcast %578 : vector<1x512xf32> to vector<8x512xf32>
    %580 = arith.addf %577, %579 : vector<8x512xf32>
    %581 = vector.extract_strided_slice %580 {offsets = [0, 0], sizes = [8, 128], strides = [1, 1]} : vector<8x512xf32> to vector<8x128xf32>
    %582 = arith.negf %581 : vector<8x128xf32>
    %583 = math.exp %582 : vector<8x128xf32>
    %cst_187 = arith.constant 1.000000e+00 : f32
    %584 = vector.broadcast %cst_187 : f32 to vector<8x128xf32>
    %585 = arith.addf %584, %583 : vector<8x128xf32>
    %586 = arith.divf %584, %585 : vector<8x128xf32>
    %587 = vector.extract_strided_slice %580 {offsets = [0, 128], sizes = [8, 128], strides = [1, 1]} : vector<8x512xf32> to vector<8x128xf32>
    %588 = arith.negf %587 : vector<8x128xf32>
    %589 = math.exp %588 : vector<8x128xf32>
    %cst_188 = arith.constant 1.000000e+00 : f32
    %590 = vector.broadcast %cst_188 : f32 to vector<8x128xf32>
    %591 = arith.addf %590, %589 : vector<8x128xf32>
    %592 = arith.divf %590, %591 : vector<8x128xf32>
    %593 = vector.extract_strided_slice %580 {offsets = [0, 256], sizes = [8, 128], strides = [1, 1]} : vector<8x512xf32> to vector<8x128xf32>
    %594 = vector.extract_strided_slice %580 {offsets = [0, 384], sizes = [8, 128], strides = [1, 1]} : vector<8x512xf32> to vector<8x128xf32>
    %595 = arith.mulf %586, %594 : vector<8x128xf32>
    %596 = arith.addf %593, %595 : vector<8x128xf32>
    %597 = math.tanh %596 : vector<8x128xf32>
    %cst_189 = arith.constant 1.000000e+00 : f32
    %598 = vector.broadcast %cst_189 : f32 to vector<8x128xf32>
    %599 = arith.subf %598, %592 : vector<8x128xf32>
    %600 = arith.mulf %599, %597 : vector<8x128xf32>
    %601 = arith.mulf %592, %574 : vector<8x128xf32>
    %602 = arith.addf %600, %601 : vector<8x128xf32>
    %603 = arith.truncf %602 : vector<8x128xf32> to vector<8x128xbf16>
    %c0_190 = arith.constant 0 : index
    %c0_191 = arith.constant 0 : index
    %604 = vector.load %arg13[%c0_190, %c0_191] : memref<128x128xbf16, #tpu.memory_space<vmem>>, vector<128x128xbf16>
    %cst_192 = arith.constant dense<0.000000e+00> : vector<8x128xf32>
    %605 = tpu.matmul %603, %604, %cst_192 {dimension_numbers = #tpu.dot_dimension_numbers<[1], [0], [0], [1], [0, 0, 1, 1], [], []>} : vector<8x128xbf16>, vector<128x128xbf16>, vector<8x128xf32> -> vector<8x128xf32>
    %c0_193 = arith.constant 0 : index
    %c0_194 = arith.constant 0 : index
    %606 = vector.load %arg14[%c0_193, %c0_194] : memref<1x128xf32, #tpu.memory_space<vmem>>, vector<1x128xf32>
    %607 = vector.broadcast %606 : vector<1x128xf32> to vector<8x128xf32>
    %608 = arith.addf %605, %607 : vector<8x128xf32>
    %cst_195 = arith.constant -1.000000e+01 : f32
    %cst_196 = arith.constant 1.000000e+01 : f32
    %609 = vector.broadcast %cst_195 : f32 to vector<8x128xf32>
    %610 = arith.maximumf %609, %608 : vector<8x128xf32>
    %611 = vector.broadcast %cst_196 : f32 to vector<8x128xf32>
    %612 = arith.minimumf %611, %610 : vector<8x128xf32>
    %c4 = arith.constant 4 : index
    %c0_197 = arith.constant 0 : index
    %c0_198 = arith.constant 0 : index
    %613 = vector.load %arg15[%c4, %c0_197, %c0_198] : memref<8x8x128xf32, #tpu.memory_space<vmem>>, vector<1x8x128xf32>
    %614 = vector.shape_cast %613 : vector<1x8x128xf32> to vector<8x128xf32>
    %615 = vector.shape_cast %612 : vector<8x128xf32> to vector<1x8x128xf32>
    tpu.vector_store %arg15[%c4, %c0_197, %c0_198], %615 {strides = array<i32>} : memref<8x8x128xf32, #tpu.memory_space<vmem>>, vector<1x8x128xf32>,
    %616 = tpu.bitcast %612 : vector<8x128xf32> -> vector<8x128xi32>
    %c0_i32_199 = arith.constant 0 : i32
    %617 = vector.broadcast %c0_i32_199 : i32 to vector<8x128xi32>
    %618 = arith.cmpi sge, %616, %617 : vector<8x128xi32>
    %c-2147483648_i32_200 = arith.constant -2147483648 : i32
    %619 = vector.broadcast %c-2147483648_i32_200 : i32 to vector<8x128xi32>
    %620 = arith.subi %619, %616 : vector<8x128xi32>
    %621 = arith.select %618, %616, %620 : vector<8x128xi1>, vector<8x128xi32>
    %c-16_i32_201 = arith.constant -16 : i32
    %622 = vector.broadcast %c-16_i32_201 : i32 to vector<8x128xi32>
    %623 = arith.andi %621, %622 : vector<8x128xi32>
    %c15_i32_202 = arith.constant 15 : i32
    %624 = vector.broadcast %c15_i32_202 : i32 to vector<8x128xi32>
    %625 = arith.subi %624, %290 : vector<8x128xi32>
    %626 = arith.ori %623, %625 : vector<8x128xi32>
    %c16_i32_203 = arith.constant 16 : i32
    %627 = vector.broadcast %c16_i32_203 : i32 to vector<8x128xi32>
    %628 = arith.cmpi slt, %290, %627 : vector<8x128xi32>
    %c-2147483648_i32_204 = arith.constant -2147483648 : i32
    %629 = vector.broadcast %c-2147483648_i32_204 : i32 to vector<8x128xi32>
    %630 = arith.select %628, %626, %629 : vector<8x128xi1>, vector<8x128xi32>
    %cst_205 = arith.constant dense<-2147483648> : vector<8xi32>
    %631 = vector.multi_reduction <maxsi>, %630, %cst_205 [1] : vector<8x128xi32> to vector<8xi32>
    %632 = vector.shape_cast %631 : vector<8xi32> to vector<8x1xi32>
    %c15_i32_206 = arith.constant 15 : i32
    %633 = vector.broadcast %c15_i32_206 : i32 to vector<8x1xi32>
    %634 = arith.andi %632, %633 : vector<8x1xi32>
    %c15_i32_207 = arith.constant 15 : i32
    %635 = vector.broadcast %c15_i32_207 : i32 to vector<8x1xi32>
    %636 = arith.subi %635, %634 : vector<8x1xi32>
    %c112_i32_208 = arith.constant 112 : i32
    %637 = vector.broadcast %c112_i32_208 : i32 to vector<8x128xi32>
    %638 = arith.cmpi sge, %289, %637 : vector<8x128xi32>
    %c112_i32_209 = arith.constant 112 : i32
    %639 = vector.broadcast %c112_i32_209 : i32 to vector<8x1xi32>
    %640 = arith.addi %636, %639 : vector<8x1xi32>
    %641 = vector.broadcast %640 : vector<8x1xi32> to vector<8x128xi32>
    %642 = arith.cmpi eq, %289, %641 : vector<8x128xi32>
    %643 = arith.extui %642 : vector<8x128xi1> to vector<8x128xi32>
    %644 = arith.sitofp %643 : vector<8x128xi32> to vector<8x128xf32>
    %645 = arith.select %638, %644, %602 : vector<8x128xi1>, vector<8x128xf32>
    %646 = arith.truncf %645 : vector<8x128xf32> to vector<8x128xbf16>
    %c0_210 = arith.constant 0 : index
    %c0_211 = arith.constant 0 : index
    %647 = vector.load %arg11[%c0_210, %c0_211] : memref<128x512xbf16, #tpu.memory_space<vmem>>, vector<128x512xbf16>
    %cst_212 = arith.constant dense<0.000000e+00> : vector<8x512xf32>
    %648 = tpu.matmul %646, %647, %cst_212 {dimension_numbers = #tpu.dot_dimension_numbers<[1], [0], [0], [1], [0, 0, 1, 1], [], []>} : vector<8x128xbf16>, vector<128x512xbf16>, vector<8x512xf32> -> vector<8x512xf32>
    %c0_213 = arith.constant 0 : index
    %c0_214 = arith.constant 0 : index
    %649 = vector.load %arg12[%c0_213, %c0_214] : memref<1x512xf32, #tpu.memory_space<vmem>>, vector<1x512xf32>
    %650 = vector.broadcast %649 : vector<1x512xf32> to vector<8x512xf32>
    %651 = arith.addf %648, %650 : vector<8x512xf32>
    %652 = vector.extract_strided_slice %651 {offsets = [0, 0], sizes = [8, 128], strides = [1, 1]} : vector<8x512xf32> to vector<8x128xf32>
    %653 = arith.negf %652 : vector<8x128xf32>
    %654 = math.exp %653 : vector<8x128xf32>
    %cst_215 = arith.constant 1.000000e+00 : f32
    %655 = vector.broadcast %cst_215 : f32 to vector<8x128xf32>
    %656 = arith.addf %655, %654 : vector<8x128xf32>
    %657 = arith.divf %655, %656 : vector<8x128xf32>
    %658 = vector.extract_strided_slice %651 {offsets = [0, 128], sizes = [8, 128], strides = [1, 1]} : vector<8x512xf32> to vector<8x128xf32>
    %659 = arith.negf %658 : vector<8x128xf32>
    %660 = math.exp %659 : vector<8x128xf32>
    %cst_216 = arith.constant 1.000000e+00 : f32
    %661 = vector.broadcast %cst_216 : f32 to vector<8x128xf32>
    %662 = arith.addf %661, %660 : vector<8x128xf32>
    %663 = arith.divf %661, %662 : vector<8x128xf32>
    %664 = vector.extract_strided_slice %651 {offsets = [0, 256], sizes = [8, 128], strides = [1, 1]} : vector<8x512xf32> to vector<8x128xf32>
    %665 = vector.extract_strided_slice %651 {offsets = [0, 384], sizes = [8, 128], strides = [1, 1]} : vector<8x512xf32> to vector<8x128xf32>
    %666 = arith.mulf %657, %665 : vector<8x128xf32>
    %667 = arith.addf %664, %666 : vector<8x128xf32>
    %668 = math.tanh %667 : vector<8x128xf32>
    %cst_217 = arith.constant 1.000000e+00 : f32
    %669 = vector.broadcast %cst_217 : f32 to vector<8x128xf32>
    %670 = arith.subf %669, %663 : vector<8x128xf32>
    %671 = arith.mulf %670, %668 : vector<8x128xf32>
    %672 = arith.mulf %663, %645 : vector<8x128xf32>
    %673 = arith.addf %671, %672 : vector<8x128xf32>
    %674 = arith.truncf %673 : vector<8x128xf32> to vector<8x128xbf16>
    %c0_218 = arith.constant 0 : index
    %c0_219 = arith.constant 0 : index
    %675 = vector.load %arg13[%c0_218, %c0_219] : memref<128x128xbf16, #tpu.memory_space<vmem>>, vector<128x128xbf16>
    %cst_220 = arith.constant dense<0.000000e+00> : vector<8x128xf32>
    %676 = tpu.matmul %674, %675, %cst_220 {dimension_numbers = #tpu.dot_dimension_numbers<[1], [0], [0], [1], [0, 0, 1, 1], [], []>} : vector<8x128xbf16>, vector<128x128xbf16>, vector<8x128xf32> -> vector<8x128xf32>
    %c0_221 = arith.constant 0 : index
    %c0_222 = arith.constant 0 : index
    %677 = vector.load %arg14[%c0_221, %c0_222] : memref<1x128xf32, #tpu.memory_space<vmem>>, vector<1x128xf32>
    %678 = vector.broadcast %677 : vector<1x128xf32> to vector<8x128xf32>
    %679 = arith.addf %676, %678 : vector<8x128xf32>
    %cst_223 = arith.constant -1.000000e+01 : f32
    %cst_224 = arith.constant 1.000000e+01 : f32
    %680 = vector.broadcast %cst_223 : f32 to vector<8x128xf32>
    %681 = arith.maximumf %680, %679 : vector<8x128xf32>
    %682 = vector.broadcast %cst_224 : f32 to vector<8x128xf32>
    %683 = arith.minimumf %682, %681 : vector<8x128xf32>
    %c5 = arith.constant 5 : index
    %c0_225 = arith.constant 0 : index
    %c0_226 = arith.constant 0 : index
    %684 = vector.load %arg15[%c5, %c0_225, %c0_226] : memref<8x8x128xf32, #tpu.memory_space<vmem>>, vector<1x8x128xf32>
    %685 = vector.shape_cast %684 : vector<1x8x128xf32> to vector<8x128xf32>
    %686 = vector.shape_cast %683 : vector<8x128xf32> to vector<1x8x128xf32>
    tpu.vector_store %arg15[%c5, %c0_225, %c0_226], %686 {strides = array<i32>} : memref<8x8x128xf32, #tpu.memory_space<vmem>>, vector<1x8x128xf32>,
    %687 = tpu.bitcast %683 : vector<8x128xf32> -> vector<8x128xi32>
    %c0_i32_227 = arith.constant 0 : i32
    %688 = vector.broadcast %c0_i32_227 : i32 to vector<8x128xi32>
    %689 = arith.cmpi sge, %687, %688 : vector<8x128xi32>
    %c-2147483648_i32_228 = arith.constant -2147483648 : i32
    %690 = vector.broadcast %c-2147483648_i32_228 : i32 to vector<8x128xi32>
    %691 = arith.subi %690, %687 : vector<8x128xi32>
    %692 = arith.select %689, %687, %691 : vector<8x128xi1>, vector<8x128xi32>
    %c-16_i32_229 = arith.constant -16 : i32
    %693 = vector.broadcast %c-16_i32_229 : i32 to vector<8x128xi32>
    %694 = arith.andi %692, %693 : vector<8x128xi32>
    %c15_i32_230 = arith.constant 15 : i32
    %695 = vector.broadcast %c15_i32_230 : i32 to vector<8x128xi32>
    %696 = arith.subi %695, %290 : vector<8x128xi32>
    %697 = arith.ori %694, %696 : vector<8x128xi32>
    %c16_i32_231 = arith.constant 16 : i32
    %698 = vector.broadcast %c16_i32_231 : i32 to vector<8x128xi32>
    %699 = arith.cmpi slt, %290, %698 : vector<8x128xi32>
    %c-2147483648_i32_232 = arith.constant -2147483648 : i32
    %700 = vector.broadcast %c-2147483648_i32_232 : i32 to vector<8x128xi32>
    %701 = arith.select %699, %697, %700 : vector<8x128xi1>, vector<8x128xi32>
    %cst_233 = arith.constant dense<-2147483648> : vector<8xi32>
    %702 = vector.multi_reduction <maxsi>, %701, %cst_233 [1] : vector<8x128xi32> to vector<8xi32>
    %703 = vector.shape_cast %702 : vector<8xi32> to vector<8x1xi32>
    %c15_i32_234 = arith.constant 15 : i32
    %704 = vector.broadcast %c15_i32_234 : i32 to vector<8x1xi32>
    %705 = arith.andi %703, %704 : vector<8x1xi32>
    %c15_i32_235 = arith.constant 15 : i32
    %706 = vector.broadcast %c15_i32_235 : i32 to vector<8x1xi32>
    %707 = arith.subi %706, %705 : vector<8x1xi32>
    %c112_i32_236 = arith.constant 112 : i32
    %708 = vector.broadcast %c112_i32_236 : i32 to vector<8x128xi32>
    %709 = arith.cmpi sge, %289, %708 : vector<8x128xi32>
    %c112_i32_237 = arith.constant 112 : i32
    %710 = vector.broadcast %c112_i32_237 : i32 to vector<8x1xi32>
    %711 = arith.addi %707, %710 : vector<8x1xi32>
    %712 = vector.broadcast %711 : vector<8x1xi32> to vector<8x128xi32>
    %713 = arith.cmpi eq, %289, %712 : vector<8x128xi32>
    %714 = arith.extui %713 : vector<8x128xi1> to vector<8x128xi32>
    %715 = arith.sitofp %714 : vector<8x128xi32> to vector<8x128xf32>
    %716 = arith.select %709, %715, %673 : vector<8x128xi1>, vector<8x128xf32>
    %717 = arith.truncf %716 : vector<8x128xf32> to vector<8x128xbf16>
    %c0_238 = arith.constant 0 : index
    %c0_239 = arith.constant 0 : index
    %718 = vector.load %arg11[%c0_238, %c0_239] : memref<128x512xbf16, #tpu.memory_space<vmem>>, vector<128x512xbf16>
    %cst_240 = arith.constant dense<0.000000e+00> : vector<8x512xf32>
    %719 = tpu.matmul %717, %718, %cst_240 {dimension_numbers = #tpu.dot_dimension_numbers<[1], [0], [0], [1], [0, 0, 1, 1], [], []>} : vector<8x128xbf16>, vector<128x512xbf16>, vector<8x512xf32> -> vector<8x512xf32>
    %c0_241 = arith.constant 0 : index
    %c0_242 = arith.constant 0 : index
    %720 = vector.load %arg12[%c0_241, %c0_242] : memref<1x512xf32, #tpu.memory_space<vmem>>, vector<1x512xf32>
    %721 = vector.broadcast %720 : vector<1x512xf32> to vector<8x512xf32>
    %722 = arith.addf %719, %721 : vector<8x512xf32>
    %723 = vector.extract_strided_slice %722 {offsets = [0, 0], sizes = [8, 128], strides = [1, 1]} : vector<8x512xf32> to vector<8x128xf32>
    %724 = arith.negf %723 : vector<8x128xf32>
    %725 = math.exp %724 : vector<8x128xf32>
    %cst_243 = arith.constant 1.000000e+00 : f32
    %726 = vector.broadcast %cst_243 : f32 to vector<8x128xf32>
    %727 = arith.addf %726, %725 : vector<8x128xf32>
    %728 = arith.divf %726, %727 : vector<8x128xf32>
    %729 = vector.extract_strided_slice %722 {offsets = [0, 128], sizes = [8, 128], strides = [1, 1]} : vector<8x512xf32> to vector<8x128xf32>
    %730 = arith.negf %729 : vector<8x128xf32>
    %731 = math.exp %730 : vector<8x128xf32>
    %cst_244 = arith.constant 1.000000e+00 : f32
    %732 = vector.broadcast %cst_244 : f32 to vector<8x128xf32>
    %733 = arith.addf %732, %731 : vector<8x128xf32>
    %734 = arith.divf %732, %733 : vector<8x128xf32>
    %735 = vector.extract_strided_slice %722 {offsets = [0, 256], sizes = [8, 128], strides = [1, 1]} : vector<8x512xf32> to vector<8x128xf32>
    %736 = vector.extract_strided_slice %722 {offsets = [0, 384], sizes = [8, 128], strides = [1, 1]} : vector<8x512xf32> to vector<8x128xf32>
    %737 = arith.mulf %728, %736 : vector<8x128xf32>
    %738 = arith.addf %735, %737 : vector<8x128xf32>
    %739 = math.tanh %738 : vector<8x128xf32>
    %cst_245 = arith.constant 1.000000e+00 : f32
    %740 = vector.broadcast %cst_245 : f32 to vector<8x128xf32>
    %741 = arith.subf %740, %734 : vector<8x128xf32>
    %742 = arith.mulf %741, %739 : vector<8x128xf32>
    %743 = arith.mulf %734, %716 : vector<8x128xf32>
    %744 = arith.addf %742, %743 : vector<8x128xf32>
    %745 = arith.truncf %744 : vector<8x128xf32> to vector<8x128xbf16>
    %c0_246 = arith.constant 0 : index
    %c0_247 = arith.constant 0 : index
    %746 = vector.load %arg13[%c0_246, %c0_247] : memref<128x128xbf16, #tpu.memory_space<vmem>>, vector<128x128xbf16>
    %cst_248 = arith.constant dense<0.000000e+00> : vector<8x128xf32>
    %747 = tpu.matmul %745, %746, %cst_248 {dimension_numbers = #tpu.dot_dimension_numbers<[1], [0], [0], [1], [0, 0, 1, 1], [], []>} : vector<8x128xbf16>, vector<128x128xbf16>, vector<8x128xf32> -> vector<8x128xf32>
    %c0_249 = arith.constant 0 : index
    %c0_250 = arith.constant 0 : index
    %748 = vector.load %arg14[%c0_249, %c0_250] : memref<1x128xf32, #tpu.memory_space<vmem>>, vector<1x128xf32>
    %749 = vector.broadcast %748 : vector<1x128xf32> to vector<8x128xf32>
    %750 = arith.addf %747, %749 : vector<8x128xf32>
    %cst_251 = arith.constant -1.000000e+01 : f32
    %cst_252 = arith.constant 1.000000e+01 : f32
    %751 = vector.broadcast %cst_251 : f32 to vector<8x128xf32>
    %752 = arith.maximumf %751, %750 : vector<8x128xf32>
    %753 = vector.broadcast %cst_252 : f32 to vector<8x128xf32>
    %754 = arith.minimumf %753, %752 : vector<8x128xf32>
    %c6 = arith.constant 6 : index
    %c0_253 = arith.constant 0 : index
    %c0_254 = arith.constant 0 : index
    %755 = vector.load %arg15[%c6, %c0_253, %c0_254] : memref<8x8x128xf32, #tpu.memory_space<vmem>>, vector<1x8x128xf32>
    %756 = vector.shape_cast %755 : vector<1x8x128xf32> to vector<8x128xf32>
    %757 = vector.shape_cast %754 : vector<8x128xf32> to vector<1x8x128xf32>
    tpu.vector_store %arg15[%c6, %c0_253, %c0_254], %757 {strides = array<i32>} : memref<8x8x128xf32, #tpu.memory_space<vmem>>, vector<1x8x128xf32>,
    %758 = tpu.bitcast %754 : vector<8x128xf32> -> vector<8x128xi32>
    %c0_i32_255 = arith.constant 0 : i32
    %759 = vector.broadcast %c0_i32_255 : i32 to vector<8x128xi32>
    %760 = arith.cmpi sge, %758, %759 : vector<8x128xi32>
    %c-2147483648_i32_256 = arith.constant -2147483648 : i32
    %761 = vector.broadcast %c-2147483648_i32_256 : i32 to vector<8x128xi32>
    %762 = arith.subi %761, %758 : vector<8x128xi32>
    %763 = arith.select %760, %758, %762 : vector<8x128xi1>, vector<8x128xi32>
    %c-16_i32_257 = arith.constant -16 : i32
    %764 = vector.broadcast %c-16_i32_257 : i32 to vector<8x128xi32>
    %765 = arith.andi %763, %764 : vector<8x128xi32>
    %c15_i32_258 = arith.constant 15 : i32
    %766 = vector.broadcast %c15_i32_258 : i32 to vector<8x128xi32>
    %767 = arith.subi %766, %290 : vector<8x128xi32>
    %768 = arith.ori %765, %767 : vector<8x128xi32>
    %c16_i32_259 = arith.constant 16 : i32
    %769 = vector.broadcast %c16_i32_259 : i32 to vector<8x128xi32>
    %770 = arith.cmpi slt, %290, %769 : vector<8x128xi32>
    %c-2147483648_i32_260 = arith.constant -2147483648 : i32
    %771 = vector.broadcast %c-2147483648_i32_260 : i32 to vector<8x128xi32>
    %772 = arith.select %770, %768, %771 : vector<8x128xi1>, vector<8x128xi32>
    %cst_261 = arith.constant dense<-2147483648> : vector<8xi32>
    %773 = vector.multi_reduction <maxsi>, %772, %cst_261 [1] : vector<8x128xi32> to vector<8xi32>
    %774 = vector.shape_cast %773 : vector<8xi32> to vector<8x1xi32>
    %c15_i32_262 = arith.constant 15 : i32
    %775 = vector.broadcast %c15_i32_262 : i32 to vector<8x1xi32>
    %776 = arith.andi %774, %775 : vector<8x1xi32>
    %c15_i32_263 = arith.constant 15 : i32
    %777 = vector.broadcast %c15_i32_263 : i32 to vector<8x1xi32>
    %778 = arith.subi %777, %776 : vector<8x1xi32>
    %c112_i32_264 = arith.constant 112 : i32
    %779 = vector.broadcast %c112_i32_264 : i32 to vector<8x128xi32>
    %780 = arith.cmpi sge, %289, %779 : vector<8x128xi32>
    %c112_i32_265 = arith.constant 112 : i32
    %781 = vector.broadcast %c112_i32_265 : i32 to vector<8x1xi32>
    %782 = arith.addi %778, %781 : vector<8x1xi32>
    %783 = vector.broadcast %782 : vector<8x1xi32> to vector<8x128xi32>
    %784 = arith.cmpi eq, %289, %783 : vector<8x128xi32>
    %785 = arith.extui %784 : vector<8x128xi1> to vector<8x128xi32>
    %786 = arith.sitofp %785 : vector<8x128xi32> to vector<8x128xf32>
    %787 = arith.select %780, %786, %744 : vector<8x128xi1>, vector<8x128xf32>
    %788 = arith.truncf %787 : vector<8x128xf32> to vector<8x128xbf16>
    %c0_266 = arith.constant 0 : index
    %c0_267 = arith.constant 0 : index
    %789 = vector.load %arg11[%c0_266, %c0_267] : memref<128x512xbf16, #tpu.memory_space<vmem>>, vector<128x512xbf16>
    %cst_268 = arith.constant dense<0.000000e+00> : vector<8x512xf32>
    %790 = tpu.matmul %788, %789, %cst_268 {dimension_numbers = #tpu.dot_dimension_numbers<[1], [0], [0], [1], [0, 0, 1, 1], [], []>} : vector<8x128xbf16>, vector<128x512xbf16>, vector<8x512xf32> -> vector<8x512xf32>
    %c0_269 = arith.constant 0 : index
    %c0_270 = arith.constant 0 : index
    %791 = vector.load %arg12[%c0_269, %c0_270] : memref<1x512xf32, #tpu.memory_space<vmem>>, vector<1x512xf32>
    %792 = vector.broadcast %791 : vector<1x512xf32> to vector<8x512xf32>
    %793 = arith.addf %790, %792 : vector<8x512xf32>
    %794 = vector.extract_strided_slice %793 {offsets = [0, 0], sizes = [8, 128], strides = [1, 1]} : vector<8x512xf32> to vector<8x128xf32>
    %795 = arith.negf %794 : vector<8x128xf32>
    %796 = math.exp %795 : vector<8x128xf32>
    %cst_271 = arith.constant 1.000000e+00 : f32
    %797 = vector.broadcast %cst_271 : f32 to vector<8x128xf32>
    %798 = arith.addf %797, %796 : vector<8x128xf32>
    %799 = arith.divf %797, %798 : vector<8x128xf32>
    %800 = vector.extract_strided_slice %793 {offsets = [0, 128], sizes = [8, 128], strides = [1, 1]} : vector<8x512xf32> to vector<8x128xf32>
    %801 = arith.negf %800 : vector<8x128xf32>
    %802 = math.exp %801 : vector<8x128xf32>
    %cst_272 = arith.constant 1.000000e+00 : f32
    %803 = vector.broadcast %cst_272 : f32 to vector<8x128xf32>
    %804 = arith.addf %803, %802 : vector<8x128xf32>
    %805 = arith.divf %803, %804 : vector<8x128xf32>
    %806 = vector.extract_strided_slice %793 {offsets = [0, 256], sizes = [8, 128], strides = [1, 1]} : vector<8x512xf32> to vector<8x128xf32>
    %807 = vector.extract_strided_slice %793 {offsets = [0, 384], sizes = [8, 128], strides = [1, 1]} : vector<8x512xf32> to vector<8x128xf32>
    %808 = arith.mulf %799, %807 : vector<8x128xf32>
    %809 = arith.addf %806, %808 : vector<8x128xf32>
    %810 = math.tanh %809 : vector<8x128xf32>
    %cst_273 = arith.constant 1.000000e+00 : f32
    %811 = vector.broadcast %cst_273 : f32 to vector<8x128xf32>
    %812 = arith.subf %811, %805 : vector<8x128xf32>
    %813 = arith.mulf %812, %810 : vector<8x128xf32>
    %814 = arith.mulf %805, %787 : vector<8x128xf32>
    %815 = arith.addf %813, %814 : vector<8x128xf32>
    %816 = arith.truncf %815 : vector<8x128xf32> to vector<8x128xbf16>
    %c0_274 = arith.constant 0 : index
    %c0_275 = arith.constant 0 : index
    %817 = vector.load %arg13[%c0_274, %c0_275] : memref<128x128xbf16, #tpu.memory_space<vmem>>, vector<128x128xbf16>
    %cst_276 = arith.constant dense<0.000000e+00> : vector<8x128xf32>
    %818 = tpu.matmul %816, %817, %cst_276 {dimension_numbers = #tpu.dot_dimension_numbers<[1], [0], [0], [1], [0, 0, 1, 1], [], []>} : vector<8x128xbf16>, vector<128x128xbf16>, vector<8x128xf32> -> vector<8x128xf32>
    %c0_277 = arith.constant 0 : index
    %c0_278 = arith.constant 0 : index
    %819 = vector.load %arg14[%c0_277, %c0_278] : memref<1x128xf32, #tpu.memory_space<vmem>>, vector<1x128xf32>
    %820 = vector.broadcast %819 : vector<1x128xf32> to vector<8x128xf32>
    %821 = arith.addf %818, %820 : vector<8x128xf32>
    %cst_279 = arith.constant -1.000000e+01 : f32
    %cst_280 = arith.constant 1.000000e+01 : f32
    %822 = vector.broadcast %cst_279 : f32 to vector<8x128xf32>
    %823 = arith.maximumf %822, %821 : vector<8x128xf32>
    %824 = vector.broadcast %cst_280 : f32 to vector<8x128xf32>
    %825 = arith.minimumf %824, %823 : vector<8x128xf32>
    %c7 = arith.constant 7 : index
    %c0_281 = arith.constant 0 : index
    %c0_282 = arith.constant 0 : index
    %826 = vector.load %arg15[%c7, %c0_281, %c0_282] : memref<8x8x128xf32, #tpu.memory_space<vmem>>, vector<1x8x128xf32>
    %827 = vector.shape_cast %826 : vector<1x8x128xf32> to vector<8x128xf32>
    %828 = vector.shape_cast %825 : vector<8x128xf32> to vector<1x8x128xf32>
    tpu.vector_store %arg15[%c7, %c0_281, %c0_282], %828 {strides = array<i32>} : memref<8x8x128xf32, #tpu.memory_space<vmem>>, vector<1x8x128xf32>,
    return
  }
}

</mosaic_0001>

<bundles_post_ra>
// kernel: gvae_forward.1
= control target key start
LH: loop header
LB: loop body
LE: loop exit
PB: predicated region body
PF: predicated region fallthrough
CT: control target
= control target key end

     0   :  { %s8479_s0 = inlined_call_operand.vmem [shape: bf16[64,16], index: 0, kind: input, shape index: {}]   ;;  %s8480_s1 = inlined_call_operand.vmem [shape: f32[1,128], index: 1, kind: input, shape index: {}]   ;;  %s8481_s2 = inlined_call_operand.vmem [shape: f32[8,32], index: 2, kind: input, shape index: {}]   ;;  %s8482_s3 = inlined_call_operand.hbm [shape: bf16[16,384], index: 3, kind: input, shape index: {}]   ;;  %s8483_s4 = inlined_call_operand.vmem [shape: f32[1,384], index: 4, kind: input, shape index: {}]   ;;  %s8484_s5 = inlined_call_operand.vmem [shape: bf16[128,384], index: 5, kind: input, shape index: {}]   ;;  %s8485_s6 = inlined_call_operand.hbm [shape: f32[1,128], index: 6, kind: input, shape index: {}]   ;;  %s8486_s7 = inlined_call_operand.hbm [shape: bf16[128,256], index: 7, kind: input, shape index: {}]   ;;  %s8487_s8 = inlined_call_operand.vmem [shape: f32[1,256], index: 8, kind: input, shape index: {}]   ;;  %s8488_s9 = inlined_call_operand.hbm [shape: bf16[32,128], index: 9, kind: input, shape index: {}]   ;;  %s8489_s10 = inlined_call_operand.hbm [shape: f32[1,128], index: 10, kind: input, shape index: {}]   ;;  %s8490_s11 = inlined_call_operand.hbm [shape: bf16[128,512], index: 11, kind: input, shape index: {}]   ;;  %s8491_s12 = inlined_call_operand.vmem [shape: f32[1,512], index: 12, kind: input, shape index: {}]   ;;  %s8492_s13 = inlined_call_operand.hbm [shape: bf16[128,128], index: 13, kind: input, shape index: {}]   ;;  %s8493_s14 = inlined_call_operand.vmem [shape: f32[1,128], index: 14, kind: input, shape index: {}]   ;;  %s8494_s15 = inlined_call_operand.vmem [shape: f32[8,8,128], index: 15, kind: output, shape index: {0}]   ;;  %s8495_s16 = inlined_call_operand.vmem [shape: f32[8,32], index: 16, kind: output, shape index: {1}]   ;;  %s8496_s17 = inlined_call_operand.vmem [shape: f32[8,32], index: 17, kind: output, shape index: {2}]  }
   0x1   :  { %8510 = sst [smem:[#allocation24_spill]] %s8479_s0 }
   0x2   :  { %8511 = sst [smem:[#allocation25_spill]] %s8480_s1 }
   0x3   :  { %23 = vsyncpa [#allocation3], 0 }
   0x4   :  { %24 = vsyncpa [#allocation5], 0 }
   0x5   :  { %25 = vsyncpa [#allocation8], 0 }
   0x6   :  { %26 = vsyncpa [#allocation11], 0  ;;  %s6838_s24 = smov [#allocation4]   ;;  %s6839_s26 = smov [#allocation7]  }
   0x7   :  { %s55_s25 = sshll.u32 %s6838_s24, 4  ;;  %s78_s27 = sshll.u32 %s6839_s26, 4  ;;  %s56_s25 = int_to_ptr.vmem [resolvable:$true] %s55_s25  ;;  %s6946_s27 = int_to_ptr.vmem [resolvable:$true] %s78_s27 }
   0x8   :  { %s6676_s0 = scalar_lea.hbm %s8485_s6, 16 }
   0x9   :  { %p6677_p0 = scmp.ne.s32.totalorder %s8485_s6, %s6676_s0  ;;  %p6680_p1 = scmp.lt.u32.totalorder %s6676_s0, %s8485_s6 }
   0xb   :  { %p6682_p2 = pnand %p6680_p1, %p6677_p0 }
   0xd   :  { %6685 = shalt.err (!%p6682_p2)
}
   0xe   :  { %s6686_s20 = scalar_lea.vmem %s56_s25, 16  ;;  %s6690_s21 = scalar_lea.vmem %s56_s25, 32 }
   0xf   :  { %p6687_p3 = scmp.ne.s32.totalorder %s56_s25, %s6686_s20  ;;  %p6691_p4 = scmp.lt.s32.totalorder %s56_s25, %s56_s25 }
  0x10   :  { %p6692_p5 = scmp.lt.s32.totalorder %s6690_s21, %s6686_s20 }
  0x12   :  { %p6693_p6 = por %p6692_p5, %p6691_p4 }
  0x14   :  { %p6694_p7 = pnand %p6693_p6, %p6687_p3 }
  0x16   :  { %6697 = shalt.err (!%p6694_p7)
}
  0x17   :  { %58 = dma.hbm_to_vmem [thread:$0]  %s8485_s6, 16, %s56_s25, [#allocation5]  }
  0x18   :  { %s6698_s28 = scalar_lea.hbm %s8488_s9, 256 }
  0x19   :  { %p6699_p8 = scmp.ne.s32.totalorder %s8488_s9, %s6698_s28  ;;  %p6702_p9 = scmp.lt.u32.totalorder %s6698_s28, %s8488_s9 }
  0x1b   :  { %p6704_p10 = pnand %p6702_p9, %p6699_p8 }
  0x1d   :  { %6707 = shalt.err (!%p6704_p10)
}
  0x1e   :  { %s6708_s19 = scalar_lea.vmem %s6946_s27, 256  ;;  %p6713_p12 = scmp.lt.s32.totalorder %s6946_s27, %s6946_s27 }
  0x1f   :  { %p6709_p11 = scmp.ne.s32.totalorder %s6946_s27, %s6708_s19  ;;  %p6714_p13 = scmp.lt.s32.totalorder %s6708_s19, %s6708_s19 }
  0x21   :  { %p6715_p0 = por %p6714_p13, %p6713_p12 }
  0x23   :  { %p6716_p1 = pnand %p6715_p0, %p6709_p11 }
  0x25   :  { %6719 = shalt.err (!%p6716_p1)
}
  0x26   :  { %s6840_s6 = smov 64   ;;  %s6841_s25 = smov 4  }
  0x27   :  { %84 = dma.hbm_to_vmem [thread:$0]  %s8488_s9, 256, %s6946_s27, [#allocation8], %s6840_s6, %s6840_s6, %s6841_s25  }
  0x28   :  { %s6842_s21 = smov [#allocation10]   ;;  %s6720_s26 = scalar_lea.hbm %s8490_s11, 4096 }
  0x29   :  { %s100_s22 = sshll.u32 %s6842_s21, 4  ;;  %p6721_p2 = scmp.ne.s32.totalorder %s8490_s11, %s6720_s26  ;;  %s101_s22 = int_to_ptr.vmem [resolvable:$true] %s100_s22 }
  0x2a   :  { %p6724_p3 = scmp.lt.u32.totalorder %s6720_s26, %s8490_s11 }
  0x2c   :  { %p6726_p4 = pnand %p6724_p3, %p6721_p2 }
  0x2e   :  { %6729 = shalt.err (!%p6726_p4)
}
  0x2f   :  { %s6730_s18 = scalar_lea.vmem %s101_s22, 4096  ;;  %p6735_p6 = scmp.lt.s32.totalorder %s101_s22, %s101_s22 }
  0x30   :  { %p6731_p5 = scmp.ne.s32.totalorder %s101_s22, %s6730_s18  ;;  %p6736_p7 = scmp.lt.s32.totalorder %s6730_s18, %s6730_s18 }
  0x32   :  { %p6737_p8 = por %p6736_p7, %p6735_p6 }
  0x34   :  { %p6738_p9 = pnand %p6737_p8, %p6731_p5 }
  0x36   :  { %6741 = shalt.err (!%p6738_p9)
}
  0x37   :  { %s6843_s9 = smov 256   ;;  %s6844_s27 = smov 16  }
  0x38   :  { %106 = dma.hbm_to_vmem [thread:$0]  %s8490_s11, 4096, %s101_s22, [#allocation11], %s6843_s9, %s6843_s9, %s6844_s27  }
  0x39   :  { %s6845_s20 = smov [#allocation2]   ;;  %s6742_s26 = scalar_lea.hbm %s8482_s3, 384 }
  0x3a   :  { %s38_s21 = sshll.u32 %s6845_s20, 4  ;;  %p6743_p10 = scmp.ne.s32.totalorder %s8482_s3, %s6742_s26  ;;  %s39_s21 = int_to_ptr.vmem [resolvable:$true] %s38_s21 }
  0x3b   :  { %p6746_p11 = scmp.lt.u32.totalorder %s6742_s26, %s8482_s3 }
  0x3d   :  { %p6748_p12 = pnand %p6746_p11, %p6743_p10 }
  0x3f   :  { %6751 = shalt.err (!%p6748_p12)
}
  0x40   :  { %s6752_s18 = scalar_lea.vmem %s39_s21, 384  ;;  %p6757_p0 = scmp.lt.s32.totalorder %s39_s21, %s39_s21 }
  0x41   :  { %p6753_p13 = scmp.ne.s32.totalorder %s39_s21, %s6752_s18  ;;  %p6758_p1 = scmp.lt.s32.totalorder %s6752_s18, %s6752_s18 }
  0x43   :  { %p6759_p2 = por %p6758_p1, %p6757_p0 }
  0x45   :  { %p6760_p3 = pnand %p6759_p2, %p6753_p13 }
  0x47   :  { %6763 = shalt.err (!%p6760_p3)
}
  0x48   :  { %s6846_s11 = smov 192   ;;  %s6847_s22 = smov 12  }
  0x49   :  { %44 = dma.hbm_to_vmem [thread:$0]  %s8482_s3, 384, %s39_s21, [#allocation3], %s6846_s11, %s6846_s11, %s6847_s22  }
  0x4a   :  { %s6848_s19 = smov [#allocation6]   ;;  %s6764_s24 = scalar_lea.hbm %s8486_s7, 2048 }
  0x4b   :  { %s64_s1 = sshll.u32 %s6848_s19, 4  ;;  %p6765_p4 = scmp.ne.s32.totalorder %s8486_s7, %s6764_s24  ;;  %s65_s1 = int_to_ptr.vmem [resolvable:$true] %s64_s1 }
  0x4c   :  { %p6768_p5 = scmp.lt.u32.totalorder %s6764_s24, %s8486_s7 }
  0x4e   :  { %p6770_p6 = pnand %p6768_p5, %p6765_p4 }
  0x50   :  { %6773 = shalt.err (!%p6770_p6)
}
  0x51   :  { %s6774_s30 = scalar_lea.vmem %s65_s1, 2048  ;;  %p6779_p8 = scmp.lt.s32.totalorder %s65_s1, %s65_s1 }
  0x52   :  { %p6775_p7 = scmp.ne.s32.totalorder %s65_s1, %s6774_s30  ;;  %p6780_p9 = scmp.lt.s32.totalorder %s6774_s30, %s6774_s30 }
  0x54   :  { %p6781_p10 = por %p6780_p9, %p6779_p8 }
  0x56   :  { %p6782_p11 = pnand %p6781_p10, %p6775_p7 }
  0x58   :  { %6785 = shalt.err (!%p6782_p11)
}
  0x59   :  { %s6849_s3 = smov 128   ;;  %s6850_s21 = smov 8  }
  0x5a   :  { %70 = dma.hbm_to_vmem [thread:$0]  %s8486_s7, 2048, %s65_s1, [#allocation5], %s6849_s3, %s6849_s3, %s6850_s21  }
  0x5b   :  { %s6851_s22 = smov [#allocation9]   ;;  %s6852_s27 = smov [#allocation12]  }
  0x5c   :  { %s91_s9 = sshll.u32 %s6851_s22, 4  ;;  %s114_s19 = sshll.u32 %s6852_s27, 4  ;;  %s92_s9 = int_to_ptr.vmem [resolvable:$true] %s91_s9  ;;  %s115_s19 = int_to_ptr.vmem [resolvable:$true] %s114_s19 }
  0x5d   :  { %s6786_s24 = scalar_lea.hbm %s8489_s10, 16 }
  0x5e   :  { %p6787_p12 = scmp.ne.s32.totalorder %s8489_s10, %s6786_s24  ;;  %p6790_p13 = scmp.lt.u32.totalorder %s6786_s24, %s8489_s10 }
  0x60   :  { %p6792_p0 = pnand %p6790_p13, %p6787_p12 }
  0x62   :  { %6795 = shalt.err (!%p6792_p0)
}
  0x63   :  { %s6796_s7 = scalar_lea.vmem %s92_s9, 16  ;;  %s6800_s1 = scalar_lea.vmem %s92_s9, 32 }
  0x64   :  { %p6797_p1 = scmp.ne.s32.totalorder %s92_s9, %s6796_s7  ;;  %p6801_p2 = scmp.lt.s32.totalorder %s92_s9, %s92_s9 }
  0x65   :  { %p6802_p3 = scmp.lt.s32.totalorder %s6800_s1, %s6796_s7 }
  0x67   :  { %p6803_p4 = por %p6802_p3, %p6801_p2 }
  0x69   :  { %p6804_p5 = pnand %p6803_p4, %p6797_p1 }
  0x6b   :  { %6807 = shalt.err (!%p6804_p5)
}
  0x6c   :  { %94 = dma.hbm_to_vmem [thread:$0]  %s8489_s10, 16, %s92_s9, [#allocation8]  }
  0x6d   :  { %s6808_s11 = scalar_lea.hbm %s8492_s13, 1024 }
  0x6e   :  { %p6809_p6 = scmp.ne.s32.totalorder %s8492_s13, %s6808_s11  ;;  %p6812_p7 = scmp.lt.u32.totalorder %s6808_s11, %s8492_s13 }
  0x70   :  { %p6814_p8 = pnand %p6812_p7, %p6809_p6 }
  0x72   :  { %6817 = shalt.err (!%p6814_p8)
}
  0x73   :  { %s6818_s24 = scalar_lea.vmem %s115_s19, 1024  ;;  %p6823_p10 = scmp.lt.s32.totalorder %s115_s19, %s115_s19 }
  0x74   :  { %p6819_p9 = scmp.ne.s32.totalorder %s115_s19, %s6818_s24  ;;  %p6824_p11 = scmp.lt.s32.totalorder %s6818_s24, %s6818_s24 }
  0x76   :  { %p6825_p12 = por %p6824_p11, %p6823_p10 }
  0x78   :  { %p6826_p13 = pnand %p6825_p12, %p6819_p9 }
  0x7a   :  { %6829 = shalt.err (!%p6826_p13)
}
  0x7b   :  { %120 = dma.hbm_to_vmem [thread:$0]  %s8492_s13, 1024, %s115_s19, [#allocation11], %s6840_s6, %s6840_s6, %s6841_s25  }
  0x7c   :  { %6830 = dma.done.wait [#allocation3], 384  }
  0x7d   :  { %6831 = vsyncadd [#allocation3], 4294966912 }
  0x7e   :  { %6832 = dma.done.wait [#allocation5], 2064  }
  0x7f   :  { %6833 = vsyncadd [#allocation5], 4294965232 }
  0x80   :  { %6834 = dma.done.wait [#allocation8], 272  }
  0x81   :  { %6835 = vsyncadd [#allocation8], 4294967024 }
  0x82   :  { %6836 = dma.done.wait [#allocation11], 5120  }
  0x83   :  { %6837 = vsyncadd [#allocation11], 4294962176  ;;  %v8499_v0 = vmov 0   ;;  %v6216_v1 = vld [vmem:[#allocation2 + $0x4] ss:$12 sps:$4 sm:$0xff]   ;;  %s8512_s29 = sld [smem:[#allocation24_spill]]  ;;  %v8498_v33 = vlaneseq }
  0x84   :  { %255 = vmatprep.mubr.bf16.mxu0 %v8499_v0  ;;  %v6218_v2 = vld [vmem:[#allocation2] ss:$12 sps:$4 sm:$0xff]   ;;  %223 = vmatprep.subr.bf16.mxu0 %v6216_v1  ;;  %vm210_vm0 = vcmask 130048   ;;  %v7050_v4 = vld [vmem:[%s8484_s5 + $0x4] ss:$12 sps:$4 sm:$0xff]   ;;  %v8501_v16 = vmov 0.0  }
  0x85   :  { %224 = vmatpush1.bf16.msra.mxu0 %v6218_v2  ;;  %v7055_v5 = vld [vmem:[%s8484_s5] ss:$12 sps:$4 sm:$0xff]   ;;  %v7060_v6 = vld [vmem:[%s8484_s5 + $0x1c] ss:$12 sps:$4 sm:$0xff]   ;;  %v7069_v7 = vld [vmem:[%s8484_s5 + $0x18] ss:$12 sps:$4 sm:$0xff]  }
  0x86   :  { %522 = vmatprep.subr.bf16.mxu0 %v7050_v4  ;;  %v7076_v8 = vld [vmem:[%s8484_s5 + $0x34] ss:$12 sps:$4 sm:$0xff]   ;;  %v7084_v10 = vld [vmem:[%s8484_s5 + $0x30] ss:$12 sps:$4 sm:$0xff]   ;;  %v7091_v12 = vld [vmem:[%s8484_s5 + $0x4c] ss:$12 sps:$4 sm:$0xff]  }
  0x87   :  { %v6237_v11 = vld [vmem:[#allocation2 + $0x8] ss:$12 sps:$4 sm:$0xff]   ;;  %v7107_v15 = vld [vmem:[%s8484_s5 + $0x64] ss:$12 sps:$4 sm:$0xff]   ;;  %v7121_v18 = vld [vmem:[%s8484_s5 + $0x20] ss:$12 sps:$4 sm:$0xff]  }
  0x88   :  { %5860 = vmatprep.subr.bf16.mxu1 %v6237_v11  ;;  %v7097_v13 = vld [vmem:[%s8484_s5 + $0x48] ss:$12 sps:$4 sm:$0xff]   ;;  %v7128_v19 = vld [vmem:[%s8484_s5 + $0x60] ss:$12 sps:$4 sm:$0xff]   ;;  %v7140_v21 = vld [vmem:[%s8484_s5 + $0x78] ss:$12 sps:$4 sm:$0xff]  }
  0x89   :  { %v6219_v3 = vld [vmem:[%s8512_s29] sm:$0xff]   ;;  %v6226_v9 = vld [vmem:[%s8512_s29 + $0x8] sm:$0xff]   ;;  %5861 = vmatpush3.bf16.msra.mxu1 %v6237_v11  ;;  %v6233_v14 = vld [vmem:[%s8512_s29 + $0x10] sm:$0xff]   ;;  %vm6855_vm1 = vmmov 0   ;;  %v7262_v34 = vshrl.u32 %v8498_v33, 7  ;;  %vm1509_vm2 = vcmask 261120  }
  0x8a   :  { %5862 = vmatprep.mubr.msk.bf16.mxu1 %vm210_vm0, %v6219_v3  ;;  %5272 = vmatmul.mubr.msk.bf16.vlgmr.msra.gmra.mrb[0].mxu0 %vm210_vm0, %v6219_v3  ;;  %v7114_v17 = vld [vmem:[%s8484_s5 + $0x8] ss:$12 sps:$4 sm:$0xff]   ;;  %v7147_v22 = vld [vmem:[%s8484_s5 + $0x38] ss:$12 sps:$4 sm:$0xff]   ;;  %v7164_v25 = vld [vmem:[%s8484_s5 + $0x90] ss:$12 sps:$4 sm:$0xff]  }
  0x8b   :  { %523 = vmatpush1.bf16.msra.mxu0 %v7055_v5  ;;  %265 = vmatprep.mubr.bf16.mxu0 %v8499_v0  ;;  %v7135_v20 = vld [vmem:[%s8484_s5 + $0x7c] ss:$12 sps:$4 sm:$0xff]   ;;  %v7158_v24 = vld [vmem:[%s8484_s5 + $0x94] ss:$12 sps:$4 sm:$0xff]   ;;  %v7175_v27 = vld [vmem:[%s8484_s5 + $0xac] ss:$12 sps:$4 sm:$0xff]  }
  0x8c   :  { %524 = vmatprep.subr.bf16.mxu0 %v7060_v6  ;;  %5870 = vmatprep.subr.bf16.mxu1 %v8501_v16  ;;  %v6241_v23 = vld [vmem:[%s8512_s29 + $0x18] sm:$0xff]   ;;  %v7186_v28 = vld [vmem:[%s8484_s5 + $0x68] ss:$12 sps:$4 sm:$0xff]   ;;  %v7202_v30 = vld [vmem:[%s8484_s5 + $0x80] ss:$12 sps:$4 sm:$0xff]   ;;  %8513 = vst [vmem:[#allocation17_spill] sm:$0xff] %v7262_v34 }
  0x8d   :  { %5863 = vmatmul.mubr.msk.bf16.vlgmr.msra.gmra.mrb[0].mxu1 %vm210_vm0, %v6226_v9  ;;  %v7169_v26 = vld [vmem:[%s8484_s5 + $0x50] ss:$12 sps:$4 sm:$0xff]   ;;  %v7191_v29 = vld [vmem:[%s8484_s5 + $0xa8] ss:$12 sps:$4 sm:$0xff]   ;;  %v7210_v31 = vld [vmem:[%s8484_s5 + $0x98] ss:$12 sps:$4 sm:$0xff]  }
  0x8e   :  { %5871 = vmatpush3.bf16.msra.mxu1 %v7114_v17  ;;  %5866 = vmatprep.mubr.msk.bf16.mxu1 %vm210_vm0, %v6233_v14  ;;  %v7220_v32 = vld [vmem:[%s8484_s5 + $0xb0] ss:$12 sps:$4 sm:$0xff]   ;;  %v7265_v35 = vsub.s32 0, %v7262_v34  ;;  %v157_v36 = vld [vmem:[%s8483_s4] sm:$0x7]  ;;  %v7271_v37 = vsub.s32 1, %v7262_v34 }
  0x8f   :  { %525 = vmatpush1.bf16.msra.mxu0 %v7069_v7  ;;  %5872 = vmatprep.subr.bf16.mxu1 %v8501_v16  ;;  %v7280_v46 = vsub.s32 2, %v7262_v34 }
  0x90   :  { %526 = vmatprep.subr.bf16.mxu0 %v7076_v8  ;;  %8514 = vst [vmem:[#allocation18_spill] sm:$0xff] %v7265_v35  ;;  %8515 = vst [vmem:[#allocation19_spill] sm:$0xff] %v7271_v37  ;;  %v162_v39 = vrot.slane %v157_v36, %v7265_v35  ;;  %v166_v41 = vrot.slane %v157_v36, %v7271_v37 }
  0x91   :  { %8516 = vst [vmem:[#allocation20_spill] sm:$0xff] %v7280_v46  ;;  %v7283_v48 = vrot.slane %v157_v36, %v7280_v46 }
  0x92   :  { %5273 = vmatmul.mubr.msk.bf16.gmra.mrb[4].mxu0 %vm210_vm0, %v6226_v9  ;;  %5873 = vmatpush3.bf16.msra.mxu1 %v7121_v18 }
  0x93   :  { %527 = vmatpush1.bf16.msra.mxu0 %v7084_v10  ;;  %275 = vmatprep.mubr.bf16.mxu0 %v8499_v0 }
  0x94   :  { %528 = vmatprep.subr.bf16.mxu0 %v7091_v12  ;;  %5874 = vmatprep.subr.bf16.mxu1 %v8501_v16 }
  0x95   :  { %5867 = vmatmul.mubr.msk.bf16.gmra.mrb[4].mxu1 %vm210_vm0, %v6241_v23 }
  0x96   :  { %5875 = vmatpush3.bf16.msra.mxu1 %v7147_v22  ;;  %5886 = vmatprep.mubr.msk.bf16.mxu1 %vm6855_vm1, %v8501_v16 }
  0x97   :  { %529 = vmatpush1.bf16.msra.mxu0 %v7097_v13  ;;  %5876 = vmatprep.subr.bf16.mxu1 %v8501_v16 }
  0x98   :  { %530 = vmatprep.subr.bf16.mxu0 %v7107_v15 }
  0x9a   :  { %5274 = vmatmul.mubr.msk.bf16.gmra.mrb[8].mxu0 %vm210_vm0, %v6233_v14  ;;  %5877 = vmatpush3.bf16.msra.mxu1 %v7169_v26 }
  0x9b   :  { %531 = vmatpush1.bf16.msra.mxu0 %v7128_v19  ;;  %285 = vmatprep.mubr.bf16.mxu0 %v8499_v0 }
  0x9c   :  { %532 = vmatprep.subr.bf16.mxu0 %v7135_v20  ;;  %5878 = vmatprep.subr.bf16.mxu1 %v8501_v16 }
  0x9e   :  { %5879 = vmatpush3.bf16.msra.mxu1 %v7186_v28 }
  0x9f   :  { %533 = vmatpush1.bf16.msra.mxu0 %v7140_v21  ;;  %5880 = vmatprep.subr.bf16.mxu1 %v8501_v16 }
  0xa0   :  { %534 = vmatprep.subr.bf16.mxu0 %v7158_v24 }
  0xa2   :  { %5275 = vmatmul.mubr.msk.bf16.gmra.mrb[12].mxu0 %vm210_vm0, %v6241_v23  ;;  %5881 = vmatpush3.bf16.msra.mxu1 %v7202_v30 }
  0xa3   :  { %535 = vmatpush1.bf16.msra.mxu0 %v7164_v25  ;;  %554 = vmatprep.mubr.bf16.mxu0 %v8499_v0 }
  0xa4   :  { %536 = vmatprep.subr.bf16.mxu0 %v7175_v27  ;;  %5882 = vmatprep.subr.bf16.mxu1 %v8501_v16 }
  0xa6   :  { %5883 = vmatpush3.bf16.msra.mxu1 %v7210_v31 }
  0xa7   :  { %537 = vmatpush1.bf16.msra.mxu0 %v7191_v29  ;;  %5884 = vmatprep.subr.bf16.mxu1 %v8501_v16 }
  0xa8   :  { %632 = vmatprep.subr.bf16.mxu0 %v7050_v4 }
  0xaa   :  { %555 = vmatmul.mubr.bf16.vlgmr.msra.gmra.mrb[16].mxu0 %v8499_v0  ;;  %5885 = vmatpush3.bf16.msra.mxu1 %v7220_v32 }
  0xab   :  { %633 = vmatpush1.bf16.msra.mxu0 %v7055_v5  ;;  %664 = vmatprep.mubr.bf16.mxu0 %v8499_v0 }
  0xac   :  { %634 = vmatprep.subr.bf16.mxu0 %v7060_v6  ;;  %5890 = vmatprep.subr.bf16.mxu1 %v8501_v16 }
  0xad   :  { %5887 = vmatmul.mubr.bf16.vlgmr.msra.gmra.mrb[8].mxu1 %v8499_v0 }
  0xae   :  { %5891 = vmatpush3.bf16.msra.mxu1 %v7114_v17  ;;  %5906 = vmatprep.mubr.msk.bf16.mxu1 %vm6855_vm1, %v8501_v16 }
  0xaf   :  { %635 = vmatpush1.bf16.msra.mxu0 %v7069_v7  ;;  %5892 = vmatprep.subr.bf16.mxu1 %v8501_v16 }
  0xb0   :  { %636 = vmatprep.subr.bf16.mxu0 %v7076_v8 }
  0xb2   :  { %5893 = vmatpush3.bf16.msra.mxu1 %v7121_v18 }
  0xb3   :  { %637 = vmatpush1.bf16.msra.mxu0 %v7084_v10  ;;  %5894 = vmatprep.subr.bf16.mxu1 %v8501_v16 }
  0xb4   :  { %638 = vmatprep.subr.bf16.mxu0 %v7091_v12 }
  0xb6   :  { %5895 = vmatpush3.bf16.msra.mxu1 %v7147_v22 }
  0xb7   :  { %639 = vmatpush1.bf16.msra.mxu0 %v7097_v13  ;;  %5896 = vmatprep.subr.bf16.mxu1 %v8501_v16 }
  0xb8   :  { %640 = vmatprep.subr.bf16.mxu0 %v7107_v15 }
  0xba   :  { %5897 = vmatpush3.bf16.msra.mxu1 %v7169_v26 }
  0xbb   :  { %641 = vmatpush1.bf16.msra.mxu0 %v7128_v19  ;;  %5898 = vmatprep.subr.bf16.mxu1 %v8501_v16 }
  0xbc   :  { %642 = vmatprep.subr.bf16.mxu0 %v7135_v20 }
  0xbe   :  { %5899 = vmatpush3.bf16.msra.mxu1 %v7186_v28 }
  0xbf   :  { %643 = vmatpush1.bf16.msra.mxu0 %v7140_v21  ;;  %5900 = vmatprep.subr.bf16.mxu1 %v8501_v16 }
  0xc0   :  { %644 = vmatprep.subr.bf16.mxu0 %v7158_v24 }
  0xc2   :  { %5901 = vmatpush3.bf16.msra.mxu1 %v7202_v30 }
  0xc3   :  { %645 = vmatpush1.bf16.msra.mxu0 %v7164_v25  ;;  %5902 = vmatprep.subr.bf16.mxu1 %v8501_v16 }
  0xc4   :  { %646 = vmatprep.subr.bf16.mxu0 %v7175_v27 }
  0xc6   :  { %5903 = vmatpush3.bf16.msra.mxu1 %v7210_v31 }
  0xc7   :  { %647 = vmatpush1.bf16.msra.mxu0 %v7191_v29  ;;  %5904 = vmatprep.subr.bf16.mxu1 %v8501_v16 }
  0xc8   :  { %736 = vmatprep.subr.bf16.mxu0 %v7050_v4 }
  0xca   :  { %5905 = vmatpush3.bf16.msra.mxu1 %v7220_v32 }
  0xcb   :  { %5910 = vmatprep.subr.bf16.mxu1 %v8501_v16 }
 0x15d   :  { %v257_v38 = vpop.f32.mrb[0].mxu0 }
 0x15e   :  { %v259_v40 = vpop.f32.mrb[1].mxu0 }
 0x15f   :  { %v261_v42 = vpop.f32.mrb[2].mxu0  ;;  %v260_v33 = vadd.f32 %v259_v40, %v166_v41 }
 0x160   :  { %v7275_v43 = vadd.f32 %v261_v42, %v162_v39  ;;  %v263_v44 = vpop.f32.mrb[3].mxu0  ;;  %v5864_v55 = vpop.f32.mrb[0].mxu1 }
 0x161   :  { %v7277_v45 = vadd.f32 %v263_v44, %v166_v41  ;;  %v7294_v57 = vadd.f32 %v5864_v55, %v7283_v48  ;;  %v330_v58 = vpop.f32.mrb[1].mxu1 }
 0x162   :  { %v5865_v59 = vpop.f32.mrb[2].mxu1 }
 0x163   :  { %v7297_v60 = vadd.f32 %v5865_v59, %v7283_v48  ;;  %v333_v61 = vpop.f32.mrb[3].mxu1 }
 0x164   :  { %v7300_v62 = vadd.f32 %v333_v61, %v7283_v48 }
 0x165   :  { %v267_v47 = vpop.f32.mrb[4].mxu0 }
 0x166   :  { %v7285_v49 = vadd.f32 %v267_v47, %v162_v39  ;;  %v269_v50 = vpop.f32.mrb[5].mxu0 }
 0x167   :  { %v7287_v51 = vadd.f32 %v269_v50, %v166_v41  ;;  %v271_v52 = vpop.f32.mrb[6].mxu0 }
 0x168   :  { %v7289_v53 = vadd.f32 %v271_v52, %v162_v39  ;;  %v273_v54 = vpop.f32.mrb[7].mxu0  ;;  %v5868_v14 = vpop.f32.mrb[4].mxu1 }
 0x169   :  { %v7291_v56 = vadd.f32 %v273_v54, %v166_v41  ;;  %v7311_v36 = vadd.f32 %v5868_v14, %v7283_v48  ;;  %v346_v42 = vpop.f32.mrb[5].mxu1 }
 0x16a   :  { %v7314_v44 = vadd.f32 %v346_v42, %v7283_v48  ;;  %v5869_v47 = vpop.f32.mrb[6].mxu1  ;;  %v258_v42 = vadd.f32 %v257_v38, %v162_v39  ;;  %v7330_v38 = vld [vmem:[#allocation4] ss:$0 sm:$0xff] }
 0x16b   :  { %8517 = vst [vmem:[#allocation21_spill] sm:$0xff] %v7311_v36  ;;  %v7317_v50 = vadd.f32 %v5869_v47, %v7283_v48  ;;  %v349_v52 = vpop.f32.mrb[7].mxu1 }
 0x16c   :  { %v7320_v54 = vadd.f32 %v349_v52, %v7283_v48 }
 0x16d   :  { %v277_v63 = vpop.f32.mrb[8].mxu0  ;;  %8518 = vst [vmem:[#allocation22_spill] sm:$0xff] %v7317_v50 }
 0x16e   :  { %v7302_v1 = vadd.f32 %v277_v63, %v162_v39  ;;  %v279_v2 = vpop.f32.mrb[9].mxu0 }
 0x16f   :  { %v7304_v3 = vadd.f32 %v279_v2, %v166_v41  ;;  %v281_v4 = vpop.f32.mrb[10].mxu0 }
 0x170   :  { %v7306_v9 = vadd.f32 %v281_v4, %v162_v39  ;;  %v283_v11 = vpop.f32.mrb[11].mxu0 }
 0x171   :  { %v7308_v23 = vadd.f32 %v283_v11, %v166_v41 }
 0x175   :  { %v287_v55 = vpop.f32.mrb[12].mxu0 }
 0x176   :  { %v7322_v59 = vadd.f32 %v287_v55, %v162_v39  ;;  %v289_v61 = vpop.f32.mrb[13].mxu0 }
 0x177   :  { %v7324_v63 = vadd.f32 %v289_v61, %v166_v41  ;;  %v291_v2 = vpop.f32.mrb[14].mxu0 }
 0x178   :  { %v7326_v4 = vadd.f32 %v291_v2, %v162_v39  ;;  %v293_v11 = vpop.f32.mrb[15].mxu0 }
 0x179   :  { %v7328_v14 = vadd.f32 %v293_v11, %v166_v41 }
 0x17a   :  { %8519 = vst [vmem:[#allocation23_spill] sm:$0xff] %v7326_v4 }
 0x17d   :  { %v556_v47 = vpop.f32.mrb[16].mxu0 }
 0x17e   :  { %v603_v0 = vadd.f32 %v556_v47, %v258_v42  ;;  %v558_v16 = vpop.f32.mrb[17].mxu0 }
 0x17f   :  { %v610_v46 = vadd.f32 %v558_v16, %v260_v33  ;;  %v560_v52 = vpop.f32.mrb[18].mxu0 }
 0x180   :  { %v5304_v34 = vmul.f32 -1.442695, %v603_v0  ;;  %v561_v37 = vpop.f32.mrb[19].mxu0  ;;  %v597_v35 = vpop.f32.mrb[8].mxu1  ;;  %v331_v0 = vadd.f32 %v330_v58, %v7283_v48  ;;  %v8521_v48 = vmov 0  }
 0x181   :  { %v5305_v55 = vmul.f32 -1.442695, %v610_v46  ;;  %v5888_v61 = vpop.f32.mrb[9].mxu1  ;;  %v623_v40 = vadd.f32 %v7330_v38, %v597_v35  ;;  %v8520_v35 = vmov 0.0  }
 0x182   :  { %6490 = vpow2.f32 %v5304_v34  ;;  %v600_v50 = vpop.f32.mrb[10].mxu1 }
 0x183   :  { %6492 = vpow2.f32 %v5305_v55  ;;  %v5889_v2 = vpop.f32.mrb[11].mxu1 }
 0x18c   :  { %v6491_v4 = vpop.eup %6490 }
 0x18d   :  { %v607_v36 = vadd.f32 1.0, %v6491_v4  ;;  %v6493_v11 = vpop.eup %6492 }
 0x18e   :  { %v614_v39 = vadd.f32 1.0, %v6493_v11 }
 0x18f   :  { %6494 = vrcp.f32 %v607_v36 }
 0x190   :  { %6496 = vrcp.f32 %v614_v39 }
 0x199   :  { %v6495_v16 = vpop.eup %6494 }
 0x19a   :  { %v624_v33 = vmul.f32 %v6495_v16, %v623_v40  ;;  %v6497_v37 = vpop.eup %6496 }
 0x19b   :  { %v627_v41 = vsub.f32 1.0, %v6497_v37  ;;  %v629_v42 = vmul.f32 0.0, %v6497_v37 }
 0x19c   :  { %v625_v34 = vadd.f32 %v624_v33, %v331_v0 }
 0x19e   :  { %6498 = vtanh.f32 %v625_v34 }
 0x1a8   :  { %v6499_v46 = vpop.eup %6498 }
 0x1a9   :  { %v628_v50 = vmul.f32 %v6499_v46, %v627_v41 }
 0x1ab   :  { %v7334_v4 = vadd.f32 %v629_v42, %v628_v50  ;;  %v7390_v50 = vld [vmem:[%s8484_s5] ss:$12 sps:$4 sm:$0xff]   ;;  %v7407_v42 = vld [vmem:[%s8484_s5 + $0x18] ss:$12 sps:$4 sm:$0xff]  }
 0x1ad   :  { %v631_v36 = vpack.c.bf16 %v7334_v4, %v7334_v4 }
 0x1af   :  { %665 = vmatmul.mubr.bf16.vlgmr.msra.gmra.mrb[20].mxu0 %v631_v36  ;;  %5907 = vmatmul.mubr.bf16.vlgmr.msra.gmra.mrb[12].mxu1 %v631_v36  ;;  %v7435_v36 = vld [vmem:[%s8484_s5 + $0x48] ss:$12 sps:$4 sm:$0xff]  }
 0x1b0   :  { %737 = vmatpush1.bf16.msra.mxu0 %v7055_v5  ;;  %5911 = vmatpush3.bf16.msra.mxu1 %v7114_v17  ;;  %v7374_v5 = vld [vmem:[%s8484_s5 + $0x4] ss:$12 sps:$4 sm:$0xff]  }
 0x1b1   :  { %738 = vmatprep.subr.bf16.mxu0 %v7060_v6  ;;  %5912 = vmatprep.subr.bf16.mxu1 %v8520_v35 }
 0x1b2   :  { %768 = vmatprep.mubr.bf16.mxu0 %v8521_v48  ;;  %5926 = vmatprep.mubr.msk.bf16.mxu1 %vm6855_vm1, %v8520_v35 }
 0x1b4   :  { %739 = vmatpush1.bf16.msra.mxu0 %v7069_v7  ;;  %5913 = vmatpush3.bf16.msra.mxu1 %v7121_v18 }
 0x1b5   :  { %740 = vmatprep.subr.bf16.mxu0 %v7076_v8  ;;  %5914 = vmatprep.subr.bf16.mxu1 %v8520_v35 }
 0x1b8   :  { %741 = vmatpush1.bf16.msra.mxu0 %v7084_v10  ;;  %5915 = vmatpush3.bf16.msra.mxu1 %v7147_v22 }
 0x1b9   :  { %742 = vmatprep.subr.bf16.mxu0 %v7091_v12  ;;  %5916 = vmatprep.subr.bf16.mxu1 %v8520_v35 }
 0x1bc   :  { %743 = vmatpush1.bf16.msra.mxu0 %v7097_v13  ;;  %5917 = vmatpush3.bf16.msra.mxu1 %v7169_v26 }
 0x1bd   :  { %744 = vmatprep.subr.bf16.mxu0 %v7107_v15  ;;  %5918 = vmatprep.subr.bf16.mxu1 %v8520_v35 }
 0x1c0   :  { %745 = vmatpush1.bf16.msra.mxu0 %v7128_v19  ;;  %5919 = vmatpush3.bf16.msra.mxu1 %v7186_v28 }
 0x1c1   :  { %746 = vmatprep.subr.bf16.mxu0 %v7135_v20  ;;  %5920 = vmatprep.subr.bf16.mxu1 %v8520_v35 }
 0x1c4   :  { %747 = vmatpush1.bf16.msra.mxu0 %v7140_v21  ;;  %5921 = vmatpush3.bf16.msra.mxu1 %v7202_v30 }
 0x1c5   :  { %748 = vmatprep.subr.bf16.mxu0 %v7158_v24  ;;  %5922 = vmatprep.subr.bf16.mxu1 %v8520_v35 }
 0x1c8   :  { %749 = vmatpush1.bf16.msra.mxu0 %v7164_v25  ;;  %5923 = vmatpush3.bf16.msra.mxu1 %v7210_v31 }
 0x1c9   :  { %750 = vmatprep.subr.bf16.mxu0 %v7175_v27  ;;  %5924 = vmatprep.subr.bf16.mxu1 %v8520_v35 }
 0x1cc   :  { %751 = vmatpush1.bf16.msra.mxu0 %v7191_v29  ;;  %5925 = vmatpush3.bf16.msra.mxu1 %v7220_v32 }
 0x1cd   :  { %840 = vmatprep.subr.bf16.mxu0 %v7374_v5  ;;  %5930 = vmatprep.subr.bf16.mxu1 %v8520_v35 }
 0x282   :  { %v666_v6 = vpop.f32.mrb[20].mxu0  ;;  %v707_v7 = vpop.f32.mrb[12].mxu1 }
 0x283   :  { %v713_v8 = vadd.f32 %v666_v6, %v7275_v43  ;;  %v668_v10 = vpop.f32.mrb[21].mxu0  ;;  %v5908_v12 = vpop.f32.mrb[13].mxu1  ;;  %v727_v39 = vadd.f32 %v7330_v38, %v707_v7  ;;  %v7449_v6 = vld [vmem:[%s8484_s5 + $0x60] ss:$12 sps:$4 sm:$0xff]  }
 0x284   :  { %v720_v13 = vadd.f32 %v668_v10, %v7277_v45  ;;  %v670_v15 = vpop.f32.mrb[22].mxu0  ;;  %v710_v19 = vpop.f32.mrb[14].mxu1 }
 0x285   :  { %v5307_v20 = vmul.f32 -1.442695, %v713_v8  ;;  %v671_v58 = vpop.f32.mrb[23].mxu0  ;;  %v5909_v47 = vpop.f32.mrb[15].mxu1 }
 0x286   :  { %v5308_v52 = vmul.f32 -1.442695, %v720_v13 }
 0x287   :  { %6500 = vpow2.f32 %v5307_v20 }
 0x288   :  { %6502 = vpow2.f32 %v5308_v52 }
 0x291   :  { %v6501_v55 = vpop.eup %6500 }
 0x292   :  { %v717_v61 = vadd.f32 1.0, %v6501_v55  ;;  %v6503_v2 = vpop.eup %6502 }
 0x293   :  { %v724_v11 = vadd.f32 1.0, %v6503_v2 }
 0x294   :  { %6504 = vrcp.f32 %v717_v61 }
 0x295   :  { %6506 = vrcp.f32 %v724_v11 }
 0x29e   :  { %v6505_v43 = vpop.eup %6504 }
 0x29f   :  { %v728_v40 = vmul.f32 %v6505_v43, %v727_v39  ;;  %v6507_v16 = vpop.eup %6506 }
 0x2a0   :  { %v731_v0 = vsub.f32 1.0, %v6507_v16  ;;  %v733_v37 = vmul.f32 %v6507_v16, %v7334_v4  ;;  %v7421_v4 = vld [vmem:[%s8484_s5 + $0x30] ss:$12 sps:$4 sm:$0xff]  }
 0x2a1   :  { %v729_v45 = vadd.f32 %v728_v40, %v7300_v62  ;;  %v7397_v62 = vld [vmem:[%s8484_s5 + $0x1c] ss:$12 sps:$4 sm:$0xff]   ;;  %v7497_v40 = vld [vmem:[%s8484_s5 + $0x20] ss:$12 sps:$4 sm:$0xff]  }
 0x2a2   :  { %v7515_v16 = vld [vmem:[%s8484_s5 + $0x50] ss:$12 sps:$4 sm:$0xff]  }
 0x2a3   :  { %6508 = vtanh.f32 %v729_v45  ;;  %v7506_v45 = vld [vmem:[%s8484_s5 + $0x38] ss:$12 sps:$4 sm:$0xff]  }
 0x2ad   :  { %v6509_v33 = vpop.eup %6508 }
 0x2ae   :  { %v732_v34 = vmul.f32 %v6509_v33, %v731_v0  ;;  %v7524_v0 = vld [vmem:[%s8484_s5 + $0x68] ss:$12 sps:$4 sm:$0xff]   ;;  %v7532_v33 = vld [vmem:[%s8484_s5 + $0x78] ss:$12 sps:$4 sm:$0xff]  }
 0x2b0   :  { %v7383_v41 = vadd.f32 %v733_v37, %v732_v34  ;;  %v7538_v34 = vld [vmem:[%s8484_s5 + $0x80] ss:$12 sps:$4 sm:$0xff]  }
 0x2b1   :  { %v7544_v37 = vld [vmem:[%s8484_s5 + $0x94] ss:$12 sps:$4 sm:$0xff]  }
 0x2b2   :  { %v735_v46 = vpack.c.bf16 %v7383_v41, %v7383_v41 }
 0x2b4   :  { %769 = vmatmul.mubr.bf16.vlgmr.msra.gmra.mrb[24].mxu0 %v735_v46  ;;  %5927 = vmatmul.mubr.bf16.vlgmr.msra.gmra.mrb[16].mxu1 %v735_v46  ;;  %v7557_v46 = vld [vmem:[%s8484_s5 + $0x98] ss:$12 sps:$4 sm:$0xff]  }
 0x2b5   :  { %841 = vmatpush1.bf16.msra.mxu0 %v7390_v50  ;;  %5931 = vmatpush3.bf16.msra.mxu1 %v7114_v17  ;;  %v7414_v17 = vld [vmem:[%s8484_s5 + $0x34] ss:$12 sps:$4 sm:$0xff]  }
 0x2b6   :  { %842 = vmatprep.subr.bf16.mxu0 %v7397_v62  ;;  %5932 = vmatprep.subr.bf16.mxu1 %v8520_v35 }
 0x2b7   :  { %872 = vmatprep.mubr.bf16.mxu0 %v8521_v48  ;;  %5946 = vmatprep.mubr.msk.bf16.mxu1 %vm6855_vm1, %v8520_v35 }
 0x2b9   :  { %843 = vmatpush1.bf16.msra.mxu0 %v7407_v42  ;;  %5933 = vmatpush3.bf16.msra.mxu1 %v7121_v18  ;;  %v7428_v18 = vld [vmem:[%s8484_s5 + $0x4c] ss:$12 sps:$4 sm:$0xff]  }
 0x2ba   :  { %844 = vmatprep.subr.bf16.mxu0 %v7414_v17  ;;  %5934 = vmatprep.subr.bf16.mxu1 %v8520_v35 }
 0x2bd   :  { %845 = vmatpush1.bf16.msra.mxu0 %v7421_v4  ;;  %5935 = vmatpush3.bf16.msra.mxu1 %v7147_v22  ;;  %v7442_v22 = vld [vmem:[%s8484_s5 + $0x64] ss:$12 sps:$4 sm:$0xff]  }
 0x2be   :  { %846 = vmatprep.subr.bf16.mxu0 %v7428_v18  ;;  %5936 = vmatprep.subr.bf16.mxu1 %v8520_v35 }
 0x2c1   :  { %847 = vmatpush1.bf16.msra.mxu0 %v7435_v36  ;;  %5937 = vmatpush3.bf16.msra.mxu1 %v7169_v26  ;;  %v7456_v26 = vld [vmem:[%s8484_s5 + $0x7c] ss:$12 sps:$4 sm:$0xff]  }
 0x2c2   :  { %848 = vmatprep.subr.bf16.mxu0 %v7442_v22  ;;  %5938 = vmatprep.subr.bf16.mxu1 %v8520_v35 }
 0x2c5   :  { %849 = vmatpush1.bf16.msra.mxu0 %v7449_v6  ;;  %5939 = vmatpush3.bf16.msra.mxu1 %v7186_v28 }
 0x2c6   :  { %850 = vmatprep.subr.bf16.mxu0 %v7456_v26  ;;  %5940 = vmatprep.subr.bf16.mxu1 %v8520_v35 }
 0x2c9   :  { %851 = vmatpush1.bf16.msra.mxu0 %v7140_v21  ;;  %5941 = vmatpush3.bf16.msra.mxu1 %v7202_v30 }
 0x2ca   :  { %852 = vmatprep.subr.bf16.mxu0 %v7158_v24  ;;  %5942 = vmatprep.subr.bf16.mxu1 %v8520_v35 }
 0x2cd   :  { %853 = vmatpush1.bf16.msra.mxu0 %v7164_v25  ;;  %5943 = vmatpush3.bf16.msra.mxu1 %v7210_v31 }
 0x2ce   :  { %854 = vmatprep.subr.bf16.mxu0 %v7175_v27  ;;  %5944 = vmatprep.subr.bf16.mxu1 %v8520_v35 }
 0x2d1   :  { %855 = vmatpush1.bf16.msra.mxu0 %v7191_v29  ;;  %5945 = vmatpush3.bf16.msra.mxu1 %v7220_v32 }
 0x2d2   :  { %944 = vmatprep.subr.bf16.mxu0 %v7374_v5  ;;  %5950 = vmatprep.subr.bf16.mxu1 %v8520_v35 }
 0x387   :  { %v770_v21 = vpop.f32.mrb[24].mxu0  ;;  %v811_v24 = vpop.f32.mrb[16].mxu1 }
 0x388   :  { %v817_v28 = vadd.f32 %v770_v21, %v7285_v49  ;;  %v772_v30 = vpop.f32.mrb[25].mxu0  ;;  %v5928_v25 = vpop.f32.mrb[17].mxu1  ;;  %v831_v58 = vadd.f32 %v7330_v38, %v811_v24  ;;  %v7563_v21 = vld [vmem:[%s8484_s5 + $0xac] ss:$12 sps:$4 sm:$0xff]   ;;  %v7570_v24 = vld [vmem:[%s8484_s5 + $0xa8] ss:$12 sps:$4 sm:$0xff]  }
 0x389   :  { %v824_v31 = vadd.f32 %v772_v30, %v7287_v51  ;;  %v774_v7 = vpop.f32.mrb[26].mxu0  ;;  %v814_v27 = vpop.f32.mrb[18].mxu1 }
 0x38a   :  { %v5309_v8 = vmul.f32 -1.442695, %v817_v28  ;;  %v775_v10 = vpop.f32.mrb[27].mxu0  ;;  %v5929_v12 = vpop.f32.mrb[19].mxu1 }
 0x38b   :  { %v5310_v29 = vmul.f32 -1.442695, %v824_v31 }
 0x38c   :  { %6510 = vpow2.f32 %v5309_v8 }
 0x38d   :  { %6512 = vpow2.f32 %v5310_v29 }
 0x396   :  { %v6511_v13 = vpop.eup %6510 }
 0x397   :  { %v821_v15 = vadd.f32 1.0, %v6511_v13  ;;  %v6513_v19 = vpop.eup %6512 }
 0x398   :  { %v828_v20 = vadd.f32 1.0, %v6513_v19 }
 0x399   :  { %6514 = vrcp.f32 %v821_v15 }
 0x39a   :  { %6516 = vrcp.f32 %v828_v20 }
 0x3a3   :  { %v6515_v49 = vpop.eup %6514 }
 0x3a4   :  { %v832_v47 = vmul.f32 %v6515_v49, %v831_v58  ;;  %v6517_v52 = vpop.eup %6516 }
 0x3a5   :  { %v835_v55 = vsub.f32 1.0, %v6517_v52  ;;  %v837_v11 = vmul.f32 %v6517_v52, %v7383_v41  ;;  %v7551_v41 = vld [vmem:[%s8484_s5 + $0x90] ss:$12 sps:$4 sm:$0xff]  }
 0x3a6   :  { %v833_v51 = vadd.f32 %v832_v47, %v7294_v57  ;;  %v7485_v57 = vld [vmem:[%s8484_s5 + $0x8] ss:$12 sps:$4 sm:$0xff]  }
 0x3a8   :  { %6518 = vtanh.f32 %v833_v51 }
 0x3b2   :  { %v6519_v61 = vpop.eup %6518 }
 0x3b3   :  { %v836_v2 = vmul.f32 %v6519_v61, %v835_v55 }
 0x3b5   :  { %v7477_v39 = vadd.f32 %v837_v11, %v836_v2 }
 0x3b7   :  { %v839_v43 = vpack.c.bf16 %v7477_v39, %v7477_v39 }
 0x3b9   :  { %873 = vmatmul.mubr.bf16.vlgmr.msra.gmra.mrb[28].mxu0 %v839_v43  ;;  %5947 = vmatmul.mubr.bf16.vlgmr.msra.gmra.mrb[20].mxu1 %v839_v43 }
 0x3ba   :  { %945 = vmatpush1.bf16.msra.mxu0 %v7390_v50  ;;  %5951 = vmatpush3.bf16.msra.mxu1 %v7485_v57 }
 0x3bb   :  { %946 = vmatprep.subr.bf16.mxu0 %v7397_v62  ;;  %5952 = vmatprep.subr.bf16.mxu1 %v8520_v35 }
 0x3bc   :  { %976 = vmatprep.mubr.bf16.mxu0 %v8521_v48  ;;  %5966 = vmatprep.mubr.msk.bf16.mxu1 %vm6855_vm1, %v8520_v35 }
 0x3be   :  { %947 = vmatpush1.bf16.msra.mxu0 %v7407_v42  ;;  %5953 = vmatpush3.bf16.msra.mxu1 %v7497_v40 }
 0x3bf   :  { %948 = vmatprep.subr.bf16.mxu0 %v7414_v17  ;;  %5954 = vmatprep.subr.bf16.mxu1 %v8520_v35 }
 0x3c2   :  { %949 = vmatpush1.bf16.msra.mxu0 %v7421_v4  ;;  %5955 = vmatpush3.bf16.msra.mxu1 %v7506_v45 }
 0x3c3   :  { %950 = vmatprep.subr.bf16.mxu0 %v7428_v18  ;;  %5956 = vmatprep.subr.bf16.mxu1 %v8520_v35 }
 0x3c6   :  { %951 = vmatpush1.bf16.msra.mxu0 %v7435_v36  ;;  %5957 = vmatpush3.bf16.msra.mxu1 %v7515_v16 }
 0x3c7   :  { %952 = vmatprep.subr.bf16.mxu0 %v7442_v22  ;;  %5958 = vmatprep.subr.bf16.mxu1 %v8520_v35 }
 0x3ca   :  { %953 = vmatpush1.bf16.msra.mxu0 %v7449_v6  ;;  %5959 = vmatpush3.bf16.msra.mxu1 %v7524_v0 }
 0x3cb   :  { %954 = vmatprep.subr.bf16.mxu0 %v7456_v26  ;;  %5960 = vmatprep.subr.bf16.mxu1 %v8520_v35 }
 0x3ce   :  { %955 = vmatpush1.bf16.msra.mxu0 %v7532_v33  ;;  %5961 = vmatpush3.bf16.msra.mxu1 %v7538_v34 }
 0x3cf   :  { %956 = vmatprep.subr.bf16.mxu0 %v7544_v37  ;;  %5962 = vmatprep.subr.bf16.mxu1 %v8520_v35 }
 0x3d2   :  { %957 = vmatpush1.bf16.msra.mxu0 %v7551_v41  ;;  %5963 = vmatpush3.bf16.msra.mxu1 %v7557_v46 }
 0x3d3   :  { %958 = vmatprep.subr.bf16.mxu0 %v7563_v21  ;;  %5964 = vmatprep.subr.bf16.mxu1 %v8520_v35 }
 0x3d6   :  { %959 = vmatpush1.bf16.msra.mxu0 %v7570_v24  ;;  %5965 = vmatpush3.bf16.msra.mxu1 %v7220_v32 }
 0x3d7   :  { %1048 = vmatprep.subr.bf16.mxu0 %v7374_v5  ;;  %5970 = vmatprep.subr.bf16.mxu1 %v8520_v35 }
 0x48c   :  { %v874_v28 = vpop.f32.mrb[28].mxu0  ;;  %v915_v30 = vpop.f32.mrb[20].mxu1 }
 0x48d   :  { %v921_v25 = vadd.f32 %v874_v28, %v7289_v53  ;;  %v876_v31 = vpop.f32.mrb[29].mxu0  ;;  %v5948_v7 = vpop.f32.mrb[21].mxu1  ;;  %v935_v49 = vadd.f32 %v7330_v38, %v915_v30 }
 0x48e   :  { %v928_v27 = vadd.f32 %v876_v31, %v7291_v56  ;;  %v878_v8 = vpop.f32.mrb[30].mxu0  ;;  %v918_v10 = vpop.f32.mrb[22].mxu1 }
 0x48f   :  { %v5311_v12 = vmul.f32 -1.442695, %v921_v25  ;;  %v879_v29 = vpop.f32.mrb[31].mxu0  ;;  %v5949_v13 = vpop.f32.mrb[23].mxu1 }
 0x490   :  { %v5312_v15 = vmul.f32 -1.442695, %v928_v27 }
 0x491   :  { %6520 = vpow2.f32 %v5311_v12 }
 0x492   :  { %6522 = vpow2.f32 %v5312_v15 }
 0x49b   :  { %v6521_v32 = vpop.eup %6520 }
 0x49c   :  { %v925_v19 = vadd.f32 1.0, %v6521_v32  ;;  %v6523_v20 = vpop.eup %6522 }
 0x49d   :  { %v932_v58 = vadd.f32 1.0, %v6523_v20 }
 0x49e   :  { %6524 = vrcp.f32 %v925_v19 }
 0x49f   :  { %6526 = vrcp.f32 %v932_v58 }
 0x4a8   :  { %v6525_v53 = vpop.eup %6524 }
 0x4a9   :  { %v936_v47 = vmul.f32 %v6525_v53, %v935_v49  ;;  %v6527_v51 = vpop.eup %6526 }
 0x4aa   :  { %v939_v52 = vsub.f32 1.0, %v6527_v51  ;;  %v941_v2 = vmul.f32 %v6527_v51, %v7477_v39 }
 0x4ab   :  { %v937_v56 = vadd.f32 %v936_v47, %v7297_v60  ;;  %v7620_v60 = vld [vmem:[%s8484_s5 + $0xb0] ss:$12 sps:$4 sm:$0xff]  }
 0x4ad   :  { %6528 = vtanh.f32 %v937_v56 }
 0x4b7   :  { %v6529_v55 = vpop.eup %6528 }
 0x4b8   :  { %v940_v61 = vmul.f32 %v6529_v55, %v939_v52 }
 0x4ba   :  { %v7581_v11 = vadd.f32 %v941_v2, %v940_v61 }
 0x4bc   :  { %v943_v43 = vpack.c.bf16 %v7581_v11, %v7581_v11 }
 0x4be   :  { %977 = vmatmul.mubr.bf16.vlgmr.msra.gmra.mrb[32].mxu0 %v943_v43  ;;  %5967 = vmatmul.mubr.bf16.vlgmr.msra.gmra.mrb[24].mxu1 %v943_v43 }
 0x4bf   :  { %1049 = vmatpush1.bf16.msra.mxu0 %v7390_v50  ;;  %5971 = vmatpush3.bf16.msra.mxu1 %v7485_v57 }
 0x4c0   :  { %1050 = vmatprep.subr.bf16.mxu0 %v7397_v62  ;;  %5972 = vmatprep.subr.bf16.mxu1 %v8520_v35 }
 0x4c1   :  { %1080 = vmatprep.mubr.bf16.mxu0 %v8521_v48  ;;  %5986 = vmatprep.mubr.msk.bf16.mxu1 %vm6855_vm1, %v8520_v35 }
 0x4c3   :  { %1051 = vmatpush1.bf16.msra.mxu0 %v7407_v42  ;;  %5973 = vmatpush3.bf16.msra.mxu1 %v7497_v40 }
 0x4c4   :  { %1052 = vmatprep.subr.bf16.mxu0 %v7414_v17  ;;  %5974 = vmatprep.subr.bf16.mxu1 %v8520_v35 }
 0x4c7   :  { %1053 = vmatpush1.bf16.msra.mxu0 %v7421_v4  ;;  %5975 = vmatpush3.bf16.msra.mxu1 %v7506_v45 }
 0x4c8   :  { %1054 = vmatprep.subr.bf16.mxu0 %v7428_v18  ;;  %5976 = vmatprep.subr.bf16.mxu1 %v8520_v35 }
 0x4cb   :  { %1055 = vmatpush1.bf16.msra.mxu0 %v7435_v36  ;;  %5977 = vmatpush3.bf16.msra.mxu1 %v7515_v16 }
 0x4cc   :  { %1056 = vmatprep.subr.bf16.mxu0 %v7442_v22  ;;  %5978 = vmatprep.subr.bf16.mxu1 %v8520_v35 }
 0x4cf   :  { %1057 = vmatpush1.bf16.msra.mxu0 %v7449_v6  ;;  %5979 = vmatpush3.bf16.msra.mxu1 %v7524_v0 }
 0x4d0   :  { %1058 = vmatprep.subr.bf16.mxu0 %v7456_v26  ;;  %5980 = vmatprep.subr.bf16.mxu1 %v8520_v35 }
 0x4d3   :  { %1059 = vmatpush1.bf16.msra.mxu0 %v7532_v33  ;;  %5981 = vmatpush3.bf16.msra.mxu1 %v7538_v34 }
 0x4d4   :  { %1060 = vmatprep.subr.bf16.mxu0 %v7544_v37  ;;  %5982 = vmatprep.subr.bf16.mxu1 %v8520_v35 }
 0x4d7   :  { %1061 = vmatpush1.bf16.msra.mxu0 %v7551_v41  ;;  %5983 = vmatpush3.bf16.msra.mxu1 %v7557_v46 }
 0x4d8   :  { %1062 = vmatprep.subr.bf16.mxu0 %v7563_v21  ;;  %5984 = vmatprep.subr.bf16.mxu1 %v8520_v35 }
 0x4db   :  { %1063 = vmatpush1.bf16.msra.mxu0 %v7570_v24  ;;  %5985 = vmatpush3.bf16.msra.mxu1 %v7620_v60 }
 0x4dc   :  { %1152 = vmatprep.subr.bf16.mxu0 %v7374_v5  ;;  %5990 = vmatprep.subr.bf16.mxu1 %v8520_v35 }
 0x591   :  { %v978_v39 = vpop.f32.mrb[32].mxu0  ;;  %v1019_v28 = vpop.f32.mrb[24].mxu1 }
 0x592   :  { %v1025_v30 = vadd.f32 %v978_v39, %v7302_v1  ;;  %v980_v25 = vpop.f32.mrb[33].mxu0  ;;  %v5968_v31 = vpop.f32.mrb[25].mxu1  ;;  %v1039_v58 = vadd.f32 %v7330_v38, %v1019_v28 }
 0x593   :  { %v1032_v7 = vadd.f32 %v980_v25, %v7304_v3  ;;  %v982_v27 = vpop.f32.mrb[34].mxu0  ;;  %v1022_v8 = vpop.f32.mrb[26].mxu1 }
 0x594   :  { %v5313_v10 = vmul.f32 -1.442695, %v1025_v30  ;;  %v983_v12 = vpop.f32.mrb[35].mxu0  ;;  %v5969_v29 = vpop.f32.mrb[27].mxu1 }
 0x595   :  { %v5314_v13 = vmul.f32 -1.442695, %v1032_v7 }
 0x596   :  { %6530 = vpow2.f32 %v5313_v10 }
 0x597   :  { %6532 = vpow2.f32 %v5314_v13 }
 0x5a0   :  { %v6531_v15 = vpop.eup %6530 }
 0x5a1   :  { %v1029_v32 = vadd.f32 1.0, %v6531_v15  ;;  %v6533_v19 = vpop.eup %6532 }
 0x5a2   :  { %v1036_v20 = vadd.f32 1.0, %v6533_v19 }
 0x5a3   :  { %6534 = vrcp.f32 %v1029_v32 }
 0x5a4   :  { %6536 = vrcp.f32 %v1036_v20 }
 0x5ad   :  { %v6535_v1 = vpop.eup %6534 }
 0x5ae   :  { %v1040_v49 = vmul.f32 %v6535_v1, %v1039_v58  ;;  %v6537_v53 = vpop.eup %6536 }
 0x5af   :  { %v1043_v47 = vsub.f32 1.0, %v6537_v53  ;;  %v1045_v52 = vmul.f32 %v6537_v53, %v7581_v11 }
 0x5b0   :  { %v1041_v3 = vadd.f32 %v1040_v49, %v7314_v44 }
 0x5b2   :  { %6538 = vtanh.f32 %v1041_v3 }
 0x5bc   :  { %v6539_v56 = vpop.eup %6538 }
 0x5bd   :  { %v1044_v51 = vmul.f32 %v6539_v56, %v1043_v47  ;;  %v6258_v56 = vld [vmem:[#allocation6 + $0x4] ss:$8 sps:$4 sm:$0xff]  }
 0x5bf   :  { %v7630_v55 = vadd.f32 %v1045_v52, %v1044_v51  ;;  %v6256_v51 = vld [vmem:[#allocation6] ss:$8 sps:$4 sm:$0xff]   ;;  %v6261_v52 = vld [vmem:[#allocation6 + $0x14] ss:$8 sps:$4 sm:$0xff]  }
 0x5c1   :  { %v1047_v61 = vpack.c.bf16 %v7630_v55, %v7630_v55 }
 0x5c3   :  { %1081 = vmatmul.mubr.bf16.vlgmr.msra.gmra.mrb[36].mxu0 %v1047_v61  ;;  %5987 = vmatmul.mubr.bf16.vlgmr.msra.gmra.mrb[28].mxu1 %v1047_v61  ;;  %v6264_v61 = vld [vmem:[#allocation6 + $0x24] ss:$8 sps:$4 sm:$0xff]  }
 0x5c4   :  { %1153 = vmatpush1.bf16.msra.mxu0 %v7390_v50  ;;  %5991 = vmatpush3.bf16.msra.mxu1 %v7485_v57 }
 0x5c5   :  { %1154 = vmatprep.subr.bf16.mxu0 %v7397_v62  ;;  %5992 = vmatprep.subr.bf16.mxu1 %v8520_v35 }
 0x5c6   :  { %1184 = vmatprep.mubr.bf16.mxu0 %v8521_v48  ;;  %6006 = vmatprep.mubr.msk.bf16.mxu1 %vm6855_vm1, %v8520_v35 }
 0x5c8   :  { %1155 = vmatpush1.bf16.msra.mxu0 %v7407_v42  ;;  %5993 = vmatpush3.bf16.msra.mxu1 %v7497_v40 }
 0x5c9   :  { %1156 = vmatprep.subr.bf16.mxu0 %v7414_v17  ;;  %5994 = vmatprep.subr.bf16.mxu1 %v8520_v35 }
 0x5cc   :  { %1157 = vmatpush1.bf16.msra.mxu0 %v7421_v4  ;;  %5995 = vmatpush3.bf16.msra.mxu1 %v7506_v45 }
 0x5cd   :  { %1158 = vmatprep.subr.bf16.mxu0 %v7428_v18  ;;  %5996 = vmatprep.subr.bf16.mxu1 %v8520_v35 }
 0x5d0   :  { %1159 = vmatpush1.bf16.msra.mxu0 %v7435_v36  ;;  %5997 = vmatpush3.bf16.msra.mxu1 %v7515_v16 }
 0x5d1   :  { %1160 = vmatprep.subr.bf16.mxu0 %v7442_v22  ;;  %5998 = vmatprep.subr.bf16.mxu1 %v8520_v35 }
 0x5d4   :  { %1161 = vmatpush1.bf16.msra.mxu0 %v7449_v6  ;;  %5999 = vmatpush3.bf16.msra.mxu1 %v7524_v0 }
 0x5d5   :  { %1162 = vmatprep.subr.bf16.mxu0 %v7456_v26  ;;  %6000 = vmatprep.subr.bf16.mxu1 %v8520_v35 }
 0x5d8   :  { %1163 = vmatpush1.bf16.msra.mxu0 %v7532_v33  ;;  %6001 = vmatpush3.bf16.msra.mxu1 %v7538_v34 }
 0x5d9   :  { %1164 = vmatprep.subr.bf16.mxu0 %v7544_v37  ;;  %6002 = vmatprep.subr.bf16.mxu1 %v8520_v35 }
 0x5dc   :  { %1165 = vmatpush1.bf16.msra.mxu0 %v7551_v41  ;;  %6003 = vmatpush3.bf16.msra.mxu1 %v7557_v46 }
 0x5dd   :  { %1166 = vmatprep.subr.bf16.mxu0 %v7563_v21  ;;  %6004 = vmatprep.subr.bf16.mxu1 %v8520_v35 }
 0x5e0   :  { %1167 = vmatpush1.bf16.msra.mxu0 %v7570_v24  ;;  %6005 = vmatpush3.bf16.msra.mxu1 %v7620_v60 }
 0x5e1   :  { %1256 = vmatprep.subr.bf16.mxu0 %v7374_v5  ;;  %6010 = vmatprep.subr.bf16.mxu1 %v8520_v35 }
 0x696   :  { %v1082_v44 = vpop.f32.mrb[36].mxu0  ;;  %v1123_v2 = vpop.f32.mrb[28].mxu1 }
 0x697   :  { %v1129_v11 = vadd.f32 %v1082_v44, %v7306_v9  ;;  %v1084_v43 = vpop.f32.mrb[37].mxu0  ;;  %v5988_v39 = vpop.f32.mrb[29].mxu1  ;;  %v1143_v13 = vadd.f32 %v7330_v38, %v1123_v2  ;;  %v6262_v44 = vld [vmem:[#allocation6 + $0x20] ss:$8 sps:$4 sm:$0xff]   ;;  %v6267_v2 = vld [vmem:[#allocation6 + $0x34] ss:$8 sps:$4 sm:$0xff]  }
 0x698   :  { %v1136_v28 = vadd.f32 %v1084_v43, %v7308_v23  ;;  %v1086_v30 = vpop.f32.mrb[38].mxu0  ;;  %v1126_v25 = vpop.f32.mrb[30].mxu1  ;;  %v6270_v43 = vld [vmem:[#allocation6 + $0x44] ss:$8 sps:$4 sm:$0xff]   ;;  %v6268_v39 = vld [vmem:[#allocation6 + $0x40] ss:$8 sps:$4 sm:$0xff]  }
 0x699   :  { %v5315_v31 = vmul.f32 -1.442695, %v1129_v11  ;;  %v1087_v7 = vpop.f32.mrb[39].mxu0  ;;  %v5989_v27 = vpop.f32.mrb[31].mxu1  ;;  %v6265_v11 = vld [vmem:[#allocation6 + $0x30] ss:$8 sps:$4 sm:$0xff]  }
 0x69a   :  { %v5316_v8 = vmul.f32 -1.442695, %v1136_v28  ;;  %v6273_v28 = vld [vmem:[#allocation6 + $0x54] ss:$8 sps:$4 sm:$0xff]   ;;  %v6271_v30 = vld [vmem:[#allocation6 + $0x50] ss:$8 sps:$4 sm:$0xff]  }
 0x69b   :  { %6540 = vpow2.f32 %v5315_v31  ;;  %v6276_v25 = vld [vmem:[#allocation6 + $0x64] ss:$8 sps:$4 sm:$0xff]   ;;  %v6274_v31 = vld [vmem:[#allocation6 + $0x60] ss:$8 sps:$4 sm:$0xff]   ;;  %v6279_v7 = vld [vmem:[#allocation6 + $0x74] ss:$8 sps:$4 sm:$0xff]  }
 0x69c   :  { %6542 = vpow2.f32 %v5316_v8  ;;  %v6277_v27 = vld [vmem:[#allocation6 + $0x70] ss:$8 sps:$4 sm:$0xff]  }
 0x6a5   :  { %v6541_v10 = vpop.eup %6540 }
 0x6a6   :  { %v1133_v5 = vadd.f32 1.0, %v6541_v10  ;;  %v6543_v12 = vpop.eup %6542 }
 0x6a7   :  { %v1140_v29 = vadd.f32 1.0, %v6543_v12 }
 0x6a8   :  { %6544 = vrcp.f32 %v1133_v5  ;;  %v8523_v5 = vld [vmem:[#allocation23_spill] sm:$0xff] }
 0x6a9   :  { %6546 = vrcp.f32 %v1140_v29 }
 0x6b2   :  { %v6545_v9 = vpop.eup %6544 }
 0x6b3   :  { %v1144_v15 = vmul.f32 %v6545_v9, %v1143_v13  ;;  %v6547_v32 = vpop.eup %6546 }
 0x6b4   :  { %v1147_v19 = vsub.f32 1.0, %v6547_v32  ;;  %v1149_v1 = vmul.f32 %v6547_v32, %v7630_v55  ;;  %v6259_v55 = vld [vmem:[#allocation6 + $0x10] ss:$8 sps:$4 sm:$0xff]  }
 0x6b5   :  { %v1145_v23 = vadd.f32 %v1144_v15, %v7320_v54 }
 0x6b7   :  { %6548 = vtanh.f32 %v1145_v23 }
 0x6c1   :  { %v6549_v20 = vpop.eup %6548 }
 0x6c2   :  { %v1148_v58 = vmul.f32 %v6549_v20, %v1147_v19 }
 0x6c4   :  { %v7674_v49 = vadd.f32 %v1149_v1, %v1148_v58 }
 0x6c6   :  { %v1151_v3 = vpack.c.bf16 %v7674_v49, %v7674_v49 }
 0x6c8   :  { %1185 = vmatmul.mubr.bf16.vlgmr.msra.gmra.mrb[40].mxu0 %v1151_v3  ;;  %6007 = vmatmul.mubr.bf16.vlgmr.msra.gmra.mrb[32].mxu1 %v1151_v3 }
 0x6c9   :  { %1257 = vmatpush1.bf16.msra.mxu0 %v7390_v50  ;;  %6011 = vmatpush3.bf16.msra.mxu1 %v7485_v57 }
 0x6ca   :  { %1258 = vmatprep.subr.bf16.mxu0 %v7397_v62  ;;  %6012 = vmatprep.subr.bf16.mxu1 %v8520_v35 }
 0x6cb   :  { %1288 = vmatprep.mubr.bf16.mxu0 %v8521_v48  ;;  %6026 = vmatprep.mubr.msk.bf16.mxu1 %vm6855_vm1, %v8520_v35 }
 0x6cd   :  { %1259 = vmatpush1.bf16.msra.mxu0 %v7407_v42  ;;  %6013 = vmatpush3.bf16.msra.mxu1 %v7497_v40 }
 0x6ce   :  { %1260 = vmatprep.subr.bf16.mxu0 %v7414_v17  ;;  %6014 = vmatprep.subr.bf16.mxu1 %v8520_v35 }
 0x6d1   :  { %1261 = vmatpush1.bf16.msra.mxu0 %v7421_v4  ;;  %6015 = vmatpush3.bf16.msra.mxu1 %v7506_v45 }
 0x6d2   :  { %1262 = vmatprep.subr.bf16.mxu0 %v7428_v18  ;;  %6016 = vmatprep.subr.bf16.mxu1 %v8520_v35 }
 0x6d5   :  { %1263 = vmatpush1.bf16.msra.mxu0 %v7435_v36  ;;  %6017 = vmatpush3.bf16.msra.mxu1 %v7515_v16 }
 0x6d6   :  { %1264 = vmatprep.subr.bf16.mxu0 %v7442_v22  ;;  %6018 = vmatprep.subr.bf16.mxu1 %v8520_v35 }
 0x6d9   :  { %1265 = vmatpush1.bf16.msra.mxu0 %v7449_v6  ;;  %6019 = vmatpush3.bf16.msra.mxu1 %v7524_v0 }
 0x6da   :  { %1266 = vmatprep.subr.bf16.mxu0 %v7456_v26  ;;  %6020 = vmatprep.subr.bf16.mxu1 %v8520_v35 }
 0x6dd   :  { %1267 = vmatpush1.bf16.msra.mxu0 %v7532_v33  ;;  %6021 = vmatpush3.bf16.msra.mxu1 %v7538_v34 }
 0x6de   :  { %1268 = vmatprep.subr.bf16.mxu0 %v7544_v37  ;;  %6022 = vmatprep.subr.bf16.mxu1 %v8520_v35  ;;  %v8522_v37 = vld [vmem:[#allocation21_spill] sm:$0xff] }
 0x6e1   :  { %1269 = vmatpush1.bf16.msra.mxu0 %v7551_v41  ;;  %6023 = vmatpush3.bf16.msra.mxu1 %v7557_v46 }
 0x6e2   :  { %1270 = vmatprep.subr.bf16.mxu0 %v7563_v21  ;;  %6024 = vmatprep.subr.bf16.mxu1 %v8520_v35 }
 0x6e5   :  { %1271 = vmatpush1.bf16.msra.mxu0 %v7570_v24  ;;  %6025 = vmatpush3.bf16.msra.mxu1 %v7620_v60 }
 0x6e6   :  { %6030 = vmatprep.subr.bf16.mxu1 %v8520_v35  ;;  %1468 = vmatprep.subr.bf16.mxu0 %v6258_v56  ;;  %v1376_v56 = vld [vmem:[%s8487_s8] sm:$0x3] }
 0x79b   :  { %v1186_v54 = vpop.f32.mrb[40].mxu0  ;;  %v1227_v50 = vpop.f32.mrb[32].mxu1 }
 0x79c   :  { %v1233_v62 = vadd.f32 %v1186_v54, %v7322_v59  ;;  %v1188_v42 = vpop.f32.mrb[41].mxu0  ;;  %v6008_v17 = vpop.f32.mrb[33].mxu1  ;;  %v1247_v33 = vadd.f32 %v7330_v38, %v1227_v50 }
 0x79d   :  { %v1240_v4 = vadd.f32 %v1188_v42, %v7324_v63  ;;  %v1190_v18 = vpop.f32.mrb[42].mxu0  ;;  %v1230_v36 = vpop.f32.mrb[34].mxu1  ;;  %v8524_v17 = vld [vmem:[#allocation22_spill] sm:$0xff] }
 0x79e   :  { %v5317_v22 = vmul.f32 -1.442695, %v1233_v62  ;;  %v1191_v6 = vpop.f32.mrb[43].mxu0  ;;  %v6009_v26 = vpop.f32.mrb[35].mxu1 }
 0x79f   :  { %v5318_v57 = vmul.f32 -1.442695, %v1240_v4 }
 0x7a0   :  { %6550 = vpow2.f32 %v5317_v22 }
 0x7a1   :  { %6552 = vpow2.f32 %v5318_v57 }
 0x7aa   :  { %v6551_v40 = vpop.eup %6550 }
 0x7ab   :  { %v1237_v45 = vadd.f32 1.0, %v6551_v40  ;;  %v6553_v16 = vpop.eup %6552  ;;  %v6280_v40 = vld [vmem:[#allocation7] sm:$0xff]  }
 0x7ac   :  { %v1244_v0 = vadd.f32 1.0, %v6553_v16  ;;  %v7733_v16 = vld [vmem:[#allocation10 + $0x8] ss:$16 sps:$4 sm:$0xff]  }
 0x7ad   :  { %6554 = vrcp.f32 %v1237_v45  ;;  %v7731_v45 = vld [vmem:[#allocation10 + $0x4] ss:$16 sps:$4 sm:$0xff]  }
 0x7ae   :  { %6556 = vrcp.f32 %v1244_v0  ;;  %v7735_v0 = vld [vmem:[#allocation10 + $0xc] ss:$16 sps:$4 sm:$0xff]  }
 0x7b7   :  { %v6555_v59 = vpop.eup %6554 }
 0x7b8   :  { %v1248_v34 = vmul.f32 %v6555_v59, %v1247_v33  ;;  %v6557_v41 = vpop.eup %6556  ;;  %v7738_v33 = vld [vmem:[#allocation10 + $0x2c] ss:$16 sps:$4 sm:$0xff]   ;;  %v7742_v59 = vld [vmem:[#allocation10 + $0x28] ss:$16 sps:$4 sm:$0xff]  }
 0x7b9   :  { %v1251_v46 = vsub.f32 1.0, %v6557_v41  ;;  %v1253_v60 = vmul.f32 %v6557_v41, %v7674_v49  ;;  %v7754_v41 = vld [vmem:[#allocation10 + $0x68] ss:$16 sps:$4 sm:$0xff]  }
 0x7ba   :  { %v1249_v63 = vadd.f32 %v1248_v34, %v8522_v37  ;;  %v7745_v34 = vld [vmem:[#allocation10 + $0x4c] ss:$16 sps:$4 sm:$0xff]   ;;  %v7748_v37 = vld [vmem:[#allocation10 + $0x48] ss:$16 sps:$4 sm:$0xff]  }
 0x7bc   :  { %6558 = vtanh.f32 %v1249_v63  ;;  %v7751_v63 = vld [vmem:[#allocation10 + $0x6c] ss:$16 sps:$4 sm:$0xff]  }
 0x7c6   :  { %v6559_v21 = vpop.eup %6558 }
 0x7c7   :  { %v1252_v24 = vmul.f32 %v6559_v21, %v1251_v46  ;;  %v7757_v46 = vld [vmem:[#allocation10 + $0x8c] ss:$16 sps:$4 sm:$0xff]   ;;  %v7760_v21 = vld [vmem:[#allocation10 + $0x88] ss:$16 sps:$4 sm:$0xff]  }
 0x7c9   :  { %v7717_v53 = vadd.f32 %v1253_v60, %v1252_v24  ;;  %v7763_v24 = vld [vmem:[#allocation10 + $0xac] ss:$16 sps:$4 sm:$0xff]   ;;  %v7766_v60 = vld [vmem:[#allocation10 + $0xa8] ss:$16 sps:$4 sm:$0xff]  }
 0x7cb   :  { %v1255_v47 = vpack.c.bf16 %v7717_v53, %v7717_v53 }
 0x7cd   :  { %1289 = vmatmul.mubr.bf16.vlgmr.msra.gmra.mrb[44].mxu0 %v1255_v47  ;;  %6027 = vmatmul.mubr.bf16.vlgmr.msra.gmra.mrb[36].mxu1 %v1255_v47  ;;  %v7772_v47 = vld [vmem:[#allocation10 + $0xc8] ss:$16 sps:$4 sm:$0xff]  }
 0x7ce   :  { %1500 = vmatprep.mubr.bf16.mxu0 %v8521_v48  ;;  %6034 = vmatprep.mubr.msk.bf16.mxu1 %vm6855_vm1, %v8520_v35 }
 0x7cf   :  { %1469 = vmatpush1.bf16.msra.mxu0 %v6256_v51  ;;  %6031 = vmatpush3.bf16.msra.mxu1 %v6280_v40  ;;  %v8525_v51 = vld [vmem:[#allocation18_spill] sm:$0xff] }
 0x7d0   :  { %1470 = vmatprep.subr.bf16.mxu0 %v6261_v52  ;;  %6032 = vmatprep.subr.bf16.mxu1 %v8520_v35  ;;  %v1381_v52 = vrot.slane %v1376_v56, %v8525_v51  ;;  %v6331_v40 = vld [vmem:[#allocation12 + $0x8] sm:$0xff]  }
 0x7d3   :  { %1471 = vmatpush1.bf16.msra.mxu0 %v6259_v55  ;;  %v8526_v55 = vld [vmem:[#allocation19_spill] sm:$0xff] }
 0x7d4   :  { %1472 = vmatprep.subr.bf16.mxu0 %v6264_v61  ;;  %v1385_v61 = vrot.slane %v1376_v56, %v8526_v55  ;;  %v6333_v56 = vld [vmem:[#allocation12 + $0x18] sm:$0xff]  }
 0x7d7   :  { %1473 = vmatpush1.bf16.msra.mxu0 %v6262_v44 }
 0x7d8   :  { %1474 = vmatprep.subr.bf16.mxu0 %v6267_v2 }
 0x7db   :  { %1475 = vmatpush1.bf16.msra.mxu0 %v6265_v11 }
 0x7dc   :  { %1476 = vmatprep.subr.bf16.mxu0 %v6270_v43 }
 0x7df   :  { %1477 = vmatpush1.bf16.msra.mxu0 %v6268_v39 }
 0x7e0   :  { %1478 = vmatprep.subr.bf16.mxu0 %v6273_v28 }
 0x7e3   :  { %1479 = vmatpush1.bf16.msra.mxu0 %v6271_v30 }
 0x7e4   :  { %1480 = vmatprep.subr.bf16.mxu0 %v6276_v25 }
 0x7e7   :  { %1481 = vmatpush1.bf16.msra.mxu0 %v6274_v31  ;;  %v1512_v31 = vld [vmem:[%s8481_s2] sm:$0xff] }
 0x7e8   :  { %1482 = vmatprep.subr.bf16.mxu0 %v6279_v7 }
 0x7eb   :  { %1483 = vmatpush1.bf16.msra.mxu0 %v6277_v27 }
 0x7ec   :  { %1851 = vmatprep.subr.bf16.mxu0 %v7735_v0 }
 0x8a0   :  { %v1290_v8 = vpop.f32.mrb[44].mxu0  ;;  %v1331_v10 = vpop.f32.mrb[36].mxu1 }
 0x8a1   :  { %v1337_v12 = vadd.f32 %v1290_v8, %v8523_v5  ;;  %v1292_v29 = vpop.f32.mrb[45].mxu0  ;;  %v6028_v13 = vpop.f32.mrb[37].mxu1  ;;  %v1351_v50 = vadd.f32 %v7330_v38, %v1331_v10  ;;  %v6281_v38 = vld [vmem:[#allocation7 + $0x8] sm:$0xff]   ;;  %v7792_v10 = vld [vmem:[#allocation10] ss:$16 sps:$4 sm:$0xff]  }
 0x8a2   :  { %v1344_v9 = vadd.f32 %v1292_v29, %v7328_v14  ;;  %v1294_v15 = vpop.f32.mrb[46].mxu0  ;;  %v1334_v23 = vpop.f32.mrb[38].mxu1  ;;  %6033 = vmatpush3.bf16.msra.mxu1 %v6281_v38  ;;  %v7798_v29 = vld [vmem:[#allocation10 + $0x20] ss:$16 sps:$4 sm:$0xff]   ;;  %v7802_v13 = vld [vmem:[#allocation10 + $0x44] ss:$16 sps:$4 sm:$0xff]  }
 0x8a3   :  { %v5319_v32 = vmul.f32 -1.442695, %v1337_v12  ;;  %v1295_v19 = vpop.f32.mrb[47].mxu0  ;;  %v6029_v20 = vpop.f32.mrb[39].mxu1  ;;  %1810 = vmatprep.subr.bf16.mxu1 %v7731_v45  ;;  %v7794_v12 = vld [vmem:[#allocation10 + $0x24] ss:$16 sps:$4 sm:$0xff]  }
 0x8a4   :  { %v5320_v58 = vmul.f32 -1.442695, %v1344_v9  ;;  %v7805_v9 = vld [vmem:[#allocation10 + $0x40] ss:$16 sps:$4 sm:$0xff]   ;;  %v7808_v15 = vld [vmem:[#allocation10 + $0x64] ss:$16 sps:$4 sm:$0xff]  }
 0x8a5   :  { %6560 = vpow2.f32 %v5319_v32  ;;  %v7811_v23 = vld [vmem:[#allocation10 + $0x60] ss:$16 sps:$4 sm:$0xff]   ;;  %v7814_v32 = vld [vmem:[#allocation10 + $0x84] ss:$16 sps:$4 sm:$0xff]  }
 0x8a6   :  { %6562 = vpow2.f32 %v5320_v58  ;;  %v7817_v19 = vld [vmem:[#allocation10 + $0x80] ss:$16 sps:$4 sm:$0xff]   ;;  %v7820_v20 = vld [vmem:[#allocation10 + $0xa4] ss:$16 sps:$4 sm:$0xff]  }
 0x8a7   :  { %v7823_v58 = vld [vmem:[#allocation10 + $0xa0] ss:$16 sps:$4 sm:$0xff]  }
 0x8a8   :  { %v6332_v38 = vld [vmem:[#allocation12 + $0x10] sm:$0xff]  }
 0x8af   :  { %v6561_v1 = vpop.eup %6560 }
 0x8b0   :  { %v1341_v49 = vadd.f32 1.0, %v6561_v1  ;;  %v6563_v3 = vpop.eup %6562  ;;  %v7826_v1 = vld [vmem:[#allocation10 + $0xc4] ss:$16 sps:$4 sm:$0xff]  }
 0x8b1   :  { %v1348_v54 = vadd.f32 1.0, %v6563_v3  ;;  %v7833_v3 = vld [vmem:[#allocation10 + $0xe4] ss:$16 sps:$4 sm:$0xff]  }
 0x8b2   :  { %6564 = vrcp.f32 %v1341_v49  ;;  %v7829_v49 = vld [vmem:[#allocation10 + $0xc0] ss:$16 sps:$4 sm:$0xff]  }
 0x8b3   :  { %6566 = vrcp.f32 %v1348_v54  ;;  %v7835_v54 = vld [vmem:[#allocation10 + $0xec] ss:$16 sps:$4 sm:$0xff]  }
 0x8bc   :  { %v6565_v62 = vpop.eup %6564 }
 0x8bd   :  { %v1352_v42 = vmul.f32 %v6565_v62, %v1351_v50  ;;  %v6567_v4 = vpop.eup %6566  ;;  %v7837_v50 = vld [vmem:[#allocation10 + $0xe0] ss:$16 sps:$4 sm:$0xff]   ;;  %v7839_v62 = vld [vmem:[#allocation10 + $0xe8] ss:$16 sps:$4 sm:$0xff]  }
 0x8be   :  { %v1355_v18 = vsub.f32 1.0, %v6567_v4  ;;  %v1357_v6 = vmul.f32 %v6567_v4, %v7717_v53  ;;  %v7769_v53 = vld [vmem:[#allocation10 + $0xcc] ss:$16 sps:$4 sm:$0xff]  }
 0x8bf   :  { %v1353_v14 = vadd.f32 %v1352_v42, %v8524_v17  ;;  %v5337_v42 = vld [vmem:[#allocation9] ss:$0 sm:$0xff] }
 0x8c1   :  { %6568 = vtanh.f32 %v1353_v14 }
 0x8cb   :  { %v6569_v36 = vpop.eup %6568 }
 0x8cc   :  { %v1356_v22 = vmul.f32 %v6569_v36, %v1355_v18 }
 0x8ce   :  { %v1358_v26 = vadd.f32 %v1357_v6, %v1356_v22 }
 0x8d0   :  { %v1359_v57 = vpack.c.bf16 %v1358_v26, %v1358_v26 }
 0x8d2   :  { %1501 = vmatmul.mubr.bf16.vlgmr.msra.gmra.mrb[48].mxu0 %v1359_v57  ;;  %v6330_v57 = vld [vmem:[#allocation12] sm:$0xff]  }
 0x8d3   :  { %1883 = vmatprep.mubr.bf16.mxu0 %v8521_v48  ;;  %1852 = vmatpush1.bf16.msra.mxu0 %v7733_v16 }
 0x8d4   :  { %1853 = vmatprep.subr.bf16.mxu0 %v7738_v33 }
 0x8d7   :  { %1854 = vmatpush1.bf16.msra.mxu0 %v7742_v59 }
 0x8d8   :  { %1855 = vmatprep.subr.bf16.mxu0 %v7745_v34 }
 0x8db   :  { %1856 = vmatpush1.bf16.msra.mxu0 %v7748_v37 }
 0x8dc   :  { %1857 = vmatprep.subr.bf16.mxu0 %v7751_v63 }
 0x8df   :  { %1858 = vmatpush1.bf16.msra.mxu0 %v7754_v41 }
 0x8e0   :  { %1859 = vmatprep.subr.bf16.mxu0 %v7757_v46 }
 0x8e3   :  { %1860 = vmatpush1.bf16.msra.mxu0 %v7760_v21 }
 0x8e4   :  { %1861 = vmatprep.subr.bf16.mxu0 %v7763_v24 }
 0x8e7   :  { %1862 = vmatpush1.bf16.msra.mxu0 %v7766_v60 }
 0x8e8   :  { %1863 = vmatprep.subr.bf16.mxu0 %v7769_v53 }
 0x8eb   :  { %1864 = vmatpush1.bf16.msra.mxu0 %v7772_v47 }
 0x8ec   :  { %1865 = vmatprep.subr.bf16.mxu0 %v7835_v54 }
 0x8ef   :  { %1866 = vmatpush1.bf16.msra.mxu0 %v7839_v62 }
 0x8f0   :  { %2272 = vmatprep.subr.bf16.mxu0 %v7731_v45 }
 0x9a5   :  { %v1502_v44 = vpop.f32.mrb[48].mxu0 }
 0x9a6   :  { %v1503_v2 = vadd.f32 %v1502_v44, %v1381_v52  ;;  %v1504_v11 = vpop.f32.mrb[49].mxu0  ;;  %v6334_v52 = vld [vmem:[#allocation12 + $0x20] sm:$0xff]   ;;  %v6336_v44 = vld [vmem:[#allocation12 + $0x30] sm:$0xff]  }
 0x9a7   :  { %v1505_v43 = vadd.f32 %v1504_v11, %v1385_v61  ;;  %v1506_v39 = vpop.f32.mrb[50].mxu0  ;;  %v6335_v61 = vld [vmem:[#allocation12 + $0x28] sm:$0xff]   ;;  %v1628_v11 = vld [vmem:[%s8491_s12] sm:$0xf] }
 0x9a8   :  { %1510 = vst.msk [vmem:[%s8495_s16] sm:$0xff] %vm1509_vm2, %v1503_v2  ;;  %v1507_v28 = vpop.f32.mrb[51].mxu0 }
 0x9a9   :  { %1511 = vst.msk [vmem:[%s8496_s17] sm:$0xff] %vm1509_vm2, %v1505_v43  ;;  %v1513_v30 = vmul.f32 0.5, %v1505_v43  ;;  %s8527_s17 = sld [smem:[#allocation25_spill]]  ;;  %v1633_v43 = vrot.slane %v1628_v11, %v8525_v51 }
 0x9ab   :  { %v1514_v25 = vmul.f32 1.442695, %v1513_v30  ;;  %v1637_v30 = vrot.slane %v1628_v11, %v8526_v55 }
 0x9ad   :  { %6570 = vpow2.f32 %v1514_v25 }
 0x9af   :  { %v5341_v14 = vld [vmem:[%s8527_s17] ss:$0 sm:$0xff] }
 0x9b7   :  { %v6571_v7 = vpop.eup %6570 }
 0x9b8   :  { %v1516_v27 = vmul.f32 %v6571_v7, %v1512_v31 }
 0x9ba   :  { %v1517_v8 = vadd.f32 %v1516_v27, %v1503_v2  ;;  %v6337_v2 = vld [vmem:[#allocation12 + $0x38] sm:$0xff]  }
 0x9bc   :  { %v1518_v5 = vpack.c.bf16 %v1517_v8, %v1517_v8 }
 0x9be   :  { %6035 = vmatmul.mubr.msk.bf16.vlgmr.msra.gmra.mrb[40].mxu1 %vm1509_vm2, %v1518_v5 }
 0x9bf   :  { %1811 = vmatpush1.bf16.msra.mxu1 %v7792_v10  ;;  %1842 = vmatprep.mubr.bf16.mxu1 %v8521_v48 }
 0x9c0   :  { %1812 = vmatprep.subr.bf16.mxu1 %v7794_v12 }
 0x9c3   :  { %1813 = vmatpush1.bf16.msra.mxu1 %v7798_v29 }
 0x9c4   :  { %1814 = vmatprep.subr.bf16.mxu1 %v7802_v13 }
 0x9c7   :  { %1815 = vmatpush1.bf16.msra.mxu1 %v7805_v9 }
 0x9c8   :  { %1816 = vmatprep.subr.bf16.mxu1 %v7808_v15 }
 0x9cb   :  { %1817 = vmatpush1.bf16.msra.mxu1 %v7811_v23 }
 0x9cc   :  { %1818 = vmatprep.subr.bf16.mxu1 %v7814_v32 }
 0x9cf   :  { %1819 = vmatpush1.bf16.msra.mxu1 %v7817_v19 }
 0x9d0   :  { %1820 = vmatprep.subr.bf16.mxu1 %v7820_v20 }
 0x9d3   :  { %1821 = vmatpush1.bf16.msra.mxu1 %v7823_v58 }
 0x9d4   :  { %1822 = vmatprep.subr.bf16.mxu1 %v7826_v1 }
 0x9d7   :  { %1823 = vmatpush1.bf16.msra.mxu1 %v7829_v49 }
 0x9d8   :  { %1824 = vmatprep.subr.bf16.mxu1 %v7833_v3 }
 0x9db   :  { %1825 = vmatpush1.bf16.msra.mxu1 %v7837_v50 }
 0x9dc   :  { %6038 = vmatprep.subr.bf16.mxu1 %v8520_v35 }
 0xa91   :  { %v1579_v17 = vpop.f32.mrb[40].mxu1 }
 0xa92   :  { %v1580_v4 = vadd.f32 %v5337_v42, %v1579_v17  ;;  %v6036_v18 = vpop.f32.mrb[41].mxu1 }
 0xa93   :  { %v1582_v36 = vpop.f32.mrb[42].mxu1 }
 0xa94   :  { %v7850_v22 = vadd.f32 %v5341_v14, %v1580_v4  ;;  %v6037_v6 = vpop.f32.mrb[43].mxu1 }
 0xa95   :  { %v8528_v6 = vld [vmem:[#allocation17_spill] sm:$0xff] }
 0xa96   :  { %v1595_v26 = vpack.c.bf16 %v7850_v22, %v7850_v22 }
 0xa98   :  { %1843 = vmatmul.mubr.bf16.vlgmr.msra.gmra.mrb[44].mxu1 %v1595_v26  ;;  %1884 = vmatmul.mubr.bf16.vlgmr.msra.gmra.mrb[52].mxu0 %v1595_v26  ;;  %v7887_v26 = vsub.s32 3, %v8528_v6 }
 0xa99   :  { %6054 = vmatprep.mubr.msk.bf16.mxu1 %vm6855_vm1, %v8520_v35  ;;  %2273 = vmatpush1.bf16.msra.mxu0 %v7792_v10 }
 0xa9a   :  { %2274 = vmatprep.subr.bf16.mxu0 %v7794_v12  ;;  %2304 = vmatprep.mubr.bf16.mxu0 %v8521_v48 }
 0xa9b   :  { %6039 = vmatpush3.bf16.msra.mxu1 %v6330_v57 }
 0xa9c   :  { %6040 = vmatprep.subr.bf16.mxu1 %v8520_v35 }
 0xa9d   :  { %2275 = vmatpush1.bf16.msra.mxu0 %v7798_v29 }
 0xa9e   :  { %2276 = vmatprep.subr.bf16.mxu0 %v7802_v13 }
 0xa9f   :  { %6041 = vmatpush3.bf16.msra.mxu1 %v6331_v40  ;;  %v1645_v40 = vrot.slane %v1628_v11, %v7887_v26 }
 0xaa0   :  { %6042 = vmatprep.subr.bf16.mxu1 %v8520_v35 }
 0xaa1   :  { %2277 = vmatpush1.bf16.msra.mxu0 %v7805_v9 }
 0xaa2   :  { %2278 = vmatprep.subr.bf16.mxu0 %v7808_v15 }
 0xaa3   :  { %6043 = vmatpush3.bf16.msra.mxu1 %v6332_v38  ;;  %v8529_v38 = vld [vmem:[#allocation20_spill] sm:$0xff] }
 0xaa4   :  { %6044 = vmatprep.subr.bf16.mxu1 %v8520_v35 }
 0xaa5   :  { %2279 = vmatpush1.bf16.msra.mxu0 %v7811_v23 }
 0xaa6   :  { %2280 = vmatprep.subr.bf16.mxu0 %v7814_v32 }
 0xaa7   :  { %6045 = vmatpush3.bf16.msra.mxu1 %v6333_v56  ;;  %v1641_v56 = vrot.slane %v1628_v11, %v8529_v38 }
 0xaa8   :  { %6046 = vmatprep.subr.bf16.mxu1 %v8520_v35 }
 0xaa9   :  { %2281 = vmatpush1.bf16.msra.mxu0 %v7817_v19 }
 0xaaa   :  { %2282 = vmatprep.subr.bf16.mxu0 %v7820_v20 }
 0xaab   :  { %6047 = vmatpush3.bf16.msra.mxu1 %v6334_v52 }
 0xaac   :  { %6048 = vmatprep.subr.bf16.mxu1 %v8520_v35 }
 0xaad   :  { %2283 = vmatpush1.bf16.msra.mxu0 %v7823_v58 }
 0xaae   :  { %2284 = vmatprep.subr.bf16.mxu0 %v7826_v1 }
 0xaaf   :  { %6049 = vmatpush3.bf16.msra.mxu1 %v6335_v61 }
 0xab0   :  { %6050 = vmatprep.subr.bf16.mxu1 %v8520_v35 }
 0xab1   :  { %2285 = vmatpush1.bf16.msra.mxu0 %v7829_v49 }
 0xab2   :  { %2286 = vmatprep.subr.bf16.mxu0 %v7833_v3 }
 0xab3   :  { %6051 = vmatpush3.bf16.msra.mxu1 %v6336_v44 }
 0xab4   :  { %6052 = vmatprep.subr.bf16.mxu1 %v8520_v35 }
 0xab5   :  { %2287 = vmatpush1.bf16.msra.mxu0 %v7837_v50 }
 0xab6   :  { %6058 = vmatprep.subr.bf16.mxu0 %v8520_v35 }
 0xab7   :  { %6053 = vmatpush3.bf16.msra.mxu1 %v6337_v2 }
 0xab8   :  { %2313 = vmatprep.subr.bf16.mxu1 %v7735_v0 }
 0xb6b   :  { %v1844_v39 = vpop.f32.mrb[44].mxu1  ;;  %v1885_v28 = vpop.f32.mrb[52].mxu0 }
 0xb6c   :  { %v1845_v25 = vadd.f32 %v1844_v39, %v1633_v43  ;;  %v1846_v31 = vpop.f32.mrb[45].mxu1  ;;  %v1887_v7 = vpop.f32.mrb[53].mxu0  ;;  %v1886_v2 = vadd.f32 %v1885_v28, %v1641_v56 }
 0xb6d   :  { %v1848_v27 = vpop.f32.mrb[46].mxu1  ;;  %v1889_v8 = vpop.f32.mrb[54].mxu0  ;;  %v1847_v14 = vadd.f32 %v1846_v31, %v1637_v30  ;;  %v1888_v61 = vadd.f32 %v1887_v7, %v1645_v40 }
 0xb6e   :  { %v5374_v5 = vmul.f32 -1.442695, %v1845_v25  ;;  %v1849_v42 = vpop.f32.mrb[47].mxu1  ;;  %v1890_v17 = vpop.f32.mrb[55].mxu0 }
 0xb6f   :  { %v5375_v4 = vmul.f32 -1.442695, %v1847_v14  ;;  %v8530_v14 = vlaneseq }
 0xb70   :  { %6572 = vpow2.f32 %v5374_v5 }
 0xb71   :  { %6574 = vpow2.f32 %v5375_v4  ;;  %v7916_v4 = vand.u32 127, %v8530_v14 }
 0xb73   :  { %v7922_v6 = vsub.s32 15, %v7916_v4  ;;  %vm2033_vm4 = vcmp.lt.s32.totalorder %v7916_v4, 16  ;;  %vm2051_vm6 = vcmp.ge.s32.totalorder %v7916_v4, 112 }
 0xb7a   :  { %v6573_v18 = vpop.eup %6572 }
 0xb7b   :  { %v1895_v36 = vadd.f32 1.0, %v6573_v18  ;;  %v6575_v57 = vpop.eup %6574 }
 0xb7c   :  { %v1901_v52 = vadd.f32 1.0, %v6575_v57 }
 0xb7d   :  { %6576 = vrcp.f32 %v1895_v36 }
 0xb7e   :  { %6578 = vrcp.f32 %v1901_v52 }
 0xb87   :  { %v6577_v44 = vpop.eup %6576 }
 0xb88   :  { %v1904_v43 = vmul.f32 %v6577_v44, %v1888_v61  ;;  %v6579_v30 = vpop.eup %6578 }
 0xb89   :  { %v1907_v25 = vsub.f32 1.0, %v6579_v30  ;;  %v1909_v8 = vmul.f32 %v6579_v30, %v7850_v22  ;;  %v7912_v22 = vld [vmem:[%s8493_s14] ss:$0 sm:$0xff] }
 0xb8a   :  { %v1905_v39 = vadd.f32 %v1904_v43, %v1886_v2 }
 0xb8c   :  { %6580 = vtanh.f32 %v1905_v39 }
 0xb96   :  { %v6581_v31 = vpop.eup %6580 }
 0xb97   :  { %v1908_v27 = vmul.f32 %v6581_v31, %v1907_v25 }
 0xb99   :  { %v1910_v5 = vadd.f32 %v1909_v8, %v1908_v27 }
 0xb9b   :  { %v1911_v42 = vpack.c.bf16 %v1910_v5, %v1910_v5 }
 0xb9d   :  { %6055 = vmatmul.mubr.bf16.vlgmr.msra.gmra.mrb[48].mxu1 %v1911_v42 }
 0xb9e   :  { %2314 = vmatpush1.bf16.msra.mxu1 %v7733_v16  ;;  %2345 = vmatprep.mubr.bf16.mxu1 %v8521_v48 }
 0xb9f   :  { %2315 = vmatprep.subr.bf16.mxu1 %v7738_v33 }
 0xba2   :  { %2316 = vmatpush1.bf16.msra.mxu1 %v7742_v59 }
 0xba3   :  { %2317 = vmatprep.subr.bf16.mxu1 %v7745_v34 }
 0xba6   :  { %2318 = vmatpush1.bf16.msra.mxu1 %v7748_v37 }
 0xba7   :  { %2319 = vmatprep.subr.bf16.mxu1 %v7751_v63 }
 0xbaa   :  { %2320 = vmatpush1.bf16.msra.mxu1 %v7754_v41 }
 0xbab   :  { %2321 = vmatprep.subr.bf16.mxu1 %v7757_v46 }
 0xbae   :  { %2322 = vmatpush1.bf16.msra.mxu1 %v7760_v21 }
 0xbaf   :  { %2323 = vmatprep.subr.bf16.mxu1 %v7763_v24 }
 0xbb2   :  { %2324 = vmatpush1.bf16.msra.mxu1 %v7766_v60 }
 0xbb3   :  { %2325 = vmatprep.subr.bf16.mxu1 %v7769_v53 }
 0xbb6   :  { %2326 = vmatpush1.bf16.msra.mxu1 %v7772_v47 }
 0xbb7   :  { %2327 = vmatprep.subr.bf16.mxu1 %v7835_v54 }
 0xbba   :  { %2328 = vmatpush1.bf16.msra.mxu1 %v7839_v62 }
 0xbbb   :  { %2732 = vmatprep.subr.bf16.mxu1 %v7731_v45 }
 0xc70   :  { %v2017_v11 = vpop.f32.mrb[48].mxu1 }
 0xc71   :  { %v2018_v28 = vadd.f32 %v7912_v22, %v2017_v11  ;;  %v6056_v7 = vpop.f32.mrb[49].mxu1 }
 0xc72   :  { %v2020_v17 = vpop.f32.mrb[50].mxu1 }
 0xc73   :  { %v5385_v18 = vclamps-f32 %v2018_v28, 10.0  ;;  %v6057_v36 = vpop.f32.mrb[51].mxu1 }
 0xc75   :  { %2025 = vst [vmem:[%s8494_s15] sm:$0xff] %v5385_v18  ;;  %vm2027_vm3 = vcmp.ge.s32.totalorder %v5385_v18, 0  ;;  %v2028_v45 = vsub.s32 2147483648, %v5385_v18 }
 0xc77   :  { %v2029_v57 = vsel %vm2027_vm3, %v5385_v18, %v2028_v45 }
 0xc78   :  { %v2030_v40 = vand.u32 4294967280, %v2029_v57 }
 0xc7a   :  { %v2032_v56 = vor.u32 %v7922_v6, %v2030_v40 }
 0xc7c   :  { %v2034_v52 = vsel %vm2033_vm4, %v2032_v56, 2147483648 }
 0xc7d   :  { %v2036_v61 = vshra.s32 %v2034_v52, 16  ;;  %v2035_v2 = vand.u32 65535, %v2034_v52 }
 0xc7f   :  { %v2038_v44 = vcvt.s32.f32 %v2036_v61  ;;  %v2037_v39 = vcvt.s32.f32 %v2035_v2 }
 0xc81   :  { %2039 = vmax.xlane.f32.xlu0 %v2038_v44 }
 0xd0e   :  { %v2040_v43 = vpop.xlane.xlu0 %2039 }
 0xd0f   :  { %vm2041_vm5 = vcmp.eq.f32.partialorder %v2038_v44, %v2040_v43  ;;  %v2046_v25 = vcvt.f32.s32 %v2040_v43 }
 0xd10   :  { %v2042_v30 = vsel %vm2041_vm5, %v2037_v39, -inf }
 0xd11   :  { %2043 = vmax.xlane.f32.xlu0 %v2042_v30  ;;  %v2047_v27 = vshll.u32 %v2046_v25, 16 }
 0xd9e   :  { %v2044_v31 = vpop.xlane.xlu0 %2043 }
 0xd9f   :  { %v2045_v8 = vcvt.f32.s32 %v2044_v31 }
 0xda1   :  { %v2048_v42 = vadd.s32 %v2047_v27, %v2045_v8 }
 0xda3   :  { %v2049_v11 = vand.u32 15, %v2048_v42 }
 0xda5   :  { %v2050_v28 = vsub.s32 15, %v2049_v11 }
 0xda7   :  { %v2052_v7 = vadd.s32 112, %v2050_v28 }
 0xda9   :  { %vm2053_vm7 = vcmp.eq.s32.totalorder %v7916_v4, %v2052_v7 }
 0xdaa   :  { %v5386_v17 = vsel %vm2053_vm7, 1.0, %v8520_v35 }
 0xdab   :  { %v7933_v14 = vsel %vm2051_vm6, %v5386_v17, %v1910_v5 }
 0xdac   :  { %v2057_v18 = vpack.c.bf16 %v7933_v14, %v7933_v14 }
 0xdae   :  { %2305 = vmatmul.mubr.bf16.vlgmr.msra.gmra.mrb[56].mxu0 %v2057_v18  ;;  %2346 = vmatmul.mubr.bf16.vlgmr.msra.gmra.mrb[52].mxu1 %v2057_v18 }
 0xdaf   :  { %6074 = vmatprep.mubr.msk.bf16.mxu0 %vm6855_vm1, %v8520_v35  ;;  %2733 = vmatpush1.bf16.msra.mxu1 %v7792_v10  ;;  %v6338_v10 = vld [vmem:[#allocation12] sm:$0xff]  }
 0xdb0   :  { %2734 = vmatprep.subr.bf16.mxu1 %v7794_v12  ;;  %2764 = vmatprep.mubr.bf16.mxu1 %v8521_v48  ;;  %v6339_v12 = vld [vmem:[#allocation12 + $0x8] sm:$0xff]  }
 0xdb1   :  { %6059 = vmatpush3.bf16.msra.mxu0 %v6338_v10 }
 0xdb2   :  { %6060 = vmatprep.subr.bf16.mxu0 %v8520_v35 }
 0xdb3   :  { %2735 = vmatpush1.bf16.msra.mxu1 %v7798_v29  ;;  %v6340_v29 = vld [vmem:[#allocation12 + $0x10] sm:$0xff]  }
 0xdb4   :  { %2736 = vmatprep.subr.bf16.mxu1 %v7802_v13  ;;  %v6341_v13 = vld [vmem:[#allocation12 + $0x18] sm:$0xff]  }
 0xdb5   :  { %6061 = vmatpush3.bf16.msra.mxu0 %v6339_v12 }
 0xdb6   :  { %6062 = vmatprep.subr.bf16.mxu0 %v8520_v35 }
 0xdb7   :  { %2737 = vmatpush1.bf16.msra.mxu1 %v7805_v9  ;;  %v6342_v9 = vld [vmem:[#allocation12 + $0x20] sm:$0xff]  }
 0xdb8   :  { %2738 = vmatprep.subr.bf16.mxu1 %v7808_v15  ;;  %v6343_v15 = vld [vmem:[#allocation12 + $0x28] sm:$0xff]  }
 0xdb9   :  { %6063 = vmatpush3.bf16.msra.mxu0 %v6340_v29 }
 0xdba   :  { %6064 = vmatprep.subr.bf16.mxu0 %v8520_v35 }
 0xdbb   :  { %2739 = vmatpush1.bf16.msra.mxu1 %v7811_v23  ;;  %v6344_v23 = vld [vmem:[#allocation12 + $0x30] sm:$0xff]  }
 0xdbc   :  { %2740 = vmatprep.subr.bf16.mxu1 %v7814_v32  ;;  %v6345_v32 = vld [vmem:[#allocation12 + $0x38] sm:$0xff]  }
 0xdbd   :  { %6065 = vmatpush3.bf16.msra.mxu0 %v6341_v13 }
 0xdbe   :  { %6066 = vmatprep.subr.bf16.mxu0 %v8520_v35 }
 0xdbf   :  { %2741 = vmatpush1.bf16.msra.mxu1 %v7817_v19  ;;  %v2090_v19 = vld [vmem:[%s8491_s12] sm:$0xf] }
 0xdc0   :  { %2742 = vmatprep.subr.bf16.mxu1 %v7820_v20  ;;  %v2095_v20 = vrot.slane %v2090_v19, %v8525_v51  ;;  %v2107_v43 = vrot.slane %v2090_v19, %v7887_v26  ;;  %v2103_v39 = vrot.slane %v2090_v19, %v8529_v38 }
 0xdc1   :  { %6067 = vmatpush3.bf16.msra.mxu0 %v6342_v9 }
 0xdc2   :  { %6068 = vmatprep.subr.bf16.mxu0 %v8520_v35 }
 0xdc3   :  { %2743 = vmatpush1.bf16.msra.mxu1 %v7823_v58 }
 0xdc4   :  { %2744 = vmatprep.subr.bf16.mxu1 %v7826_v1 }
 0xdc5   :  { %6069 = vmatpush3.bf16.msra.mxu0 %v6343_v15 }
 0xdc6   :  { %6070 = vmatprep.subr.bf16.mxu0 %v8520_v35 }
 0xdc7   :  { %2745 = vmatpush1.bf16.msra.mxu1 %v7829_v49  ;;  %v2099_v49 = vrot.slane %v2090_v19, %v8526_v55 }
 0xdc8   :  { %2746 = vmatprep.subr.bf16.mxu1 %v7833_v3 }
 0xdc9   :  { %6071 = vmatpush3.bf16.msra.mxu0 %v6344_v23 }
 0xdca   :  { %6072 = vmatprep.subr.bf16.mxu0 %v8520_v35 }
 0xdcb   :  { %2747 = vmatpush1.bf16.msra.mxu1 %v7837_v50 }
 0xdcc   :  { %6078 = vmatprep.subr.bf16.mxu1 %v8520_v35 }
 0xdcd   :  { %6073 = vmatpush3.bf16.msra.mxu0 %v6345_v32 }
 0xdce   :  { %2773 = vmatprep.subr.bf16.mxu0 %v7735_v0 }
 0xe81   :  { %v2306_v58 = vpop.f32.mrb[56].mxu0  ;;  %v2347_v1 = vpop.f32.mrb[52].mxu1 }
 0xe82   :  { %v2307_v3 = vadd.f32 %v2306_v58, %v2095_v20  ;;  %v2308_v50 = vpop.f32.mrb[57].mxu0  ;;  %v2349_v5 = vpop.f32.mrb[53].mxu1  ;;  %v2348_v27 = vadd.f32 %v2347_v1, %v2103_v39 }
 0xe83   :  { %v2310_v36 = vpop.f32.mrb[58].mxu0  ;;  %v2351_v45 = vpop.f32.mrb[54].mxu1  ;;  %v2309_v52 = vadd.f32 %v2308_v50, %v2099_v49  ;;  %v2350_v25 = vadd.f32 %v2349_v5, %v2107_v43  ;;  %v6346_v50 = vld [vmem:[#allocation12] sm:$0xff]   ;;  %v6347_v5 = vld [vmem:[#allocation12 + $0x8] sm:$0xff]  }
 0xe84   :  { %v5419_v57 = vmul.f32 -1.442695, %v2307_v3  ;;  %v2311_v40 = vpop.f32.mrb[59].mxu0  ;;  %v2352_v56 = vpop.f32.mrb[55].mxu1  ;;  %v6348_v36 = vld [vmem:[#allocation12 + $0x10] sm:$0xff]   ;;  %v6349_v45 = vld [vmem:[#allocation12 + $0x18] sm:$0xff]  }
 0xe85   :  { %v5420_v0 = vmul.f32 -1.442695, %v2309_v52  ;;  %v6351_v40 = vld [vmem:[#allocation12 + $0x28] sm:$0xff]   ;;  %v6352_v56 = vld [vmem:[#allocation12 + $0x30] sm:$0xff]   ;;  %v6353_v52 = vld [vmem:[#allocation12 + $0x38] sm:$0xff]  }
 0xe86   :  { %6582 = vpow2.f32 %v5419_v57  ;;  %v6350_v57 = vld [vmem:[#allocation12 + $0x20] sm:$0xff]  }
 0xe87   :  { %6584 = vpow2.f32 %v5420_v0  ;;  %v2550_v0 = vld [vmem:[%s8491_s12] sm:$0xf] }
 0xe88   :  { %v2559_v43 = vrot.slane %v2550_v0, %v8526_v55 }
 0xe90   :  { %v6583_v61 = vpop.eup %6582 }
 0xe91   :  { %v2357_v44 = vadd.f32 1.0, %v6583_v61  ;;  %v6585_v2 = vpop.eup %6584  ;;  %v2555_v61 = vrot.slane %v2550_v0, %v8525_v51 }
 0xe92   :  { %v2363_v30 = vadd.f32 1.0, %v6585_v2 }
 0xe93   :  { %6586 = vrcp.f32 %v2357_v44 }
 0xe94   :  { %6588 = vrcp.f32 %v2363_v30 }
 0xe9d   :  { %v6587_v31 = vpop.eup %6586 }
 0xe9e   :  { %v2366_v8 = vmul.f32 %v6587_v31, %v2350_v25  ;;  %v6589_v11 = vpop.eup %6588 }
 0xe9f   :  { %v2369_v28 = vsub.f32 1.0, %v6589_v11  ;;  %v2371_v18 = vmul.f32 %v6589_v11, %v7933_v14 }
 0xea0   :  { %v2367_v42 = vadd.f32 %v2366_v8, %v2348_v27 }
 0xea2   :  { %6590 = vtanh.f32 %v2367_v42 }
 0xeac   :  { %v6591_v7 = vpop.eup %6590 }
 0xead   :  { %v2370_v17 = vmul.f32 %v6591_v7, %v2369_v28 }
 0xeaf   :  { %v2372_v10 = vadd.f32 %v2371_v18, %v2370_v17 }
 0xeb1   :  { %v2373_v12 = vpack.c.bf16 %v2372_v10, %v2372_v10 }
 0xeb3   :  { %6075 = vmatmul.mubr.bf16.vlgmr.msra.gmra.mrb[60].mxu0 %v2373_v12  ;;  %v2567_v12 = vrot.slane %v2550_v0, %v7887_v26 }
 0xeb4   :  { %2774 = vmatpush1.bf16.msra.mxu0 %v7733_v16  ;;  %2805 = vmatprep.mubr.bf16.mxu0 %v8521_v48 }
 0xeb5   :  { %2775 = vmatprep.subr.bf16.mxu0 %v7738_v33 }
 0xeb8   :  { %2776 = vmatpush1.bf16.msra.mxu0 %v7742_v59 }
 0xeb9   :  { %2777 = vmatprep.subr.bf16.mxu0 %v7745_v34 }
 0xebc   :  { %2778 = vmatpush1.bf16.msra.mxu0 %v7748_v37 }
 0xebd   :  { %2779 = vmatprep.subr.bf16.mxu0 %v7751_v63 }
 0xec0   :  { %2780 = vmatpush1.bf16.msra.mxu0 %v7754_v41 }
 0xec1   :  { %2781 = vmatprep.subr.bf16.mxu0 %v7757_v46 }
 0xec4   :  { %2782 = vmatpush1.bf16.msra.mxu0 %v7760_v21 }
 0xec5   :  { %2783 = vmatprep.subr.bf16.mxu0 %v7763_v24 }
 0xec8   :  { %2784 = vmatpush1.bf16.msra.mxu0 %v7766_v60 }
 0xec9   :  { %2785 = vmatprep.subr.bf16.mxu0 %v7769_v53 }
 0xecc   :  { %2786 = vmatpush1.bf16.msra.mxu0 %v7772_v47 }
 0xecd   :  { %2787 = vmatprep.subr.bf16.mxu0 %v7835_v54 }
 0xed0   :  { %2788 = vmatpush1.bf16.msra.mxu0 %v7839_v62 }
 0xf86   :  { %v2479_v16 = vpop.f32.mrb[60].mxu0 }
 0xf87   :  { %v2480_v33 = vadd.f32 %v7912_v22, %v2479_v16  ;;  %v6076_v59 = vpop.f32.mrb[61].mxu0  ;;  %v2563_v16 = vrot.slane %v2550_v0, %v8529_v38  ;;  %v8060_v0 = vld [vmem:[#allocation10 + $0x40] ss:$16 sps:$4 sm:$0xff]  }
 0xf88   :  { %v2482_v34 = vpop.f32.mrb[62].mxu0 }
 0xf89   :  { %v5430_v37 = vclamps-f32 %v2480_v33, 10.0  ;;  %v6077_v63 = vpop.f32.mrb[63].mxu0 }
 0xf8b   :  { %5431 = vst [vmem:[%s8494_s15 + $0x8] sm:$0xff] %v5430_v37  ;;  %vm2490_vm8 = vcmp.ge.s32.totalorder %v5430_v37, 0  ;;  %v2491_v41 = vsub.s32 2147483648, %v5430_v37 }
 0xf8d   :  { %v2492_v46 = vsel %vm2490_vm8, %v5430_v37, %v2491_v41 }
 0xf8e   :  { %v2493_v21 = vand.u32 4294967280, %v2492_v46 }
 0xf90   :  { %v2494_v24 = vor.u32 %v2493_v21, %v7922_v6 }
 0xf92   :  { %v2495_v60 = vsel %vm2033_vm4, %v2494_v24, 2147483648 }
 0xf93   :  { %v2497_v53 = vshra.s32 %v2495_v60, 16  ;;  %v2496_v54 = vand.u32 65535, %v2495_v60 }
 0xf95   :  { %v2499_v47 = vcvt.s32.f32 %v2497_v53  ;;  %v2498_v14 = vcvt.s32.f32 %v2496_v54 }
 0xf97   :  { %2500 = vmax.xlane.f32.xlu1 %v2499_v47 }
0x1024   :  { %v2501_v62 = vpop.xlane.xlu1 %2500 }
0x1025   :  { %vm2502_vm9 = vcmp.eq.f32.partialorder %v2499_v47, %v2501_v62  ;;  %v2507_v13 = vcvt.f32.s32 %v2501_v62 }
0x1026   :  { %v2503_v29 = vsel %vm2502_vm9, %v2498_v14, -inf }
0x1027   :  { %2504 = vmax.xlane.f32.xlu1 %v2503_v29  ;;  %v2508_v15 = vshll.u32 %v2507_v13, 16 }
0x10b4   :  { %v2505_v9 = vpop.xlane.xlu1 %2504 }
0x10b5   :  { %v2506_v23 = vcvt.f32.s32 %v2505_v9 }
0x10b7   :  { %v2509_v32 = vadd.s32 %v2508_v15, %v2506_v23 }
0x10b9   :  { %v2510_v19 = vand.u32 15, %v2509_v32 }
0x10bb   :  { %v2511_v20 = vsub.s32 15, %v2510_v19 }
0x10bd   :  { %v2512_v58 = vadd.s32 112, %v2511_v20 }
0x10bf   :  { %vm2513_vm10 = vcmp.eq.s32.totalorder %v7916_v4, %v2512_v58 }
0x10c0   :  { %v5432_v1 = vsel %vm2513_vm10, 1.0, %v8520_v35 }
0x10c1   :  { %v7999_v49 = vsel %vm2051_vm6, %v5432_v1, %v2372_v10 }
0x10c2   :  { %v2517_v3 = vpack.c.bf16 %v7999_v49, %v7999_v49 }
0x10c4   :  { %2765 = vmatmul.mubr.bf16.vlgmr.msra.gmra.mrb[56].mxu1 %v2517_v3  ;;  %2806 = vmatmul.mubr.bf16.vlgmr.msra.gmra.mrb[64].mxu0 %v2517_v3  ;;  %v8035_v3 = vld [vmem:[#allocation10 + $0x4] ss:$16 sps:$4 sm:$0xff]  }
0x10c5   :  { %6094 = vmatprep.mubr.msk.bf16.mxu1 %vm6855_vm1, %v8520_v35  ;;  %3224 = vmatprep.mubr.bf16.mxu0 %v8521_v48 }
0x10c6   :  { %6079 = vmatpush3.bf16.msra.mxu1 %v6346_v50  ;;  %v8037_v50 = vld [vmem:[#allocation10 + $0x8] ss:$16 sps:$4 sm:$0xff]   ;;  %3192 = vmatprep.subr.bf16.mxu0 %v8035_v3 }
0x10c7   :  { %6080 = vmatprep.subr.bf16.mxu1 %v8520_v35 }
0x10ca   :  { %6081 = vmatpush3.bf16.msra.mxu1 %v6347_v5  ;;  %v8039_v5 = vld [vmem:[#allocation10 + $0xc] ss:$16 sps:$4 sm:$0xff]  }
0x10cb   :  { %6082 = vmatprep.subr.bf16.mxu1 %v8520_v35 }
0x10ce   :  { %6083 = vmatpush3.bf16.msra.mxu1 %v6348_v36  ;;  %v8041_v36 = vld [vmem:[#allocation10 + $0x24] ss:$16 sps:$4 sm:$0xff]  }
0x10cf   :  { %6084 = vmatprep.subr.bf16.mxu1 %v8520_v35 }
0x10d2   :  { %6085 = vmatpush3.bf16.msra.mxu1 %v6349_v45  ;;  %v8044_v45 = vld [vmem:[#allocation10 + $0x2c] ss:$16 sps:$4 sm:$0xff]  }
0x10d3   :  { %6086 = vmatprep.subr.bf16.mxu1 %v8520_v35 }
0x10d6   :  { %6087 = vmatpush3.bf16.msra.mxu1 %v6350_v57  ;;  %v8048_v57 = vld [vmem:[#allocation10 + $0x20] ss:$16 sps:$4 sm:$0xff]  }
0x10d7   :  { %6088 = vmatprep.subr.bf16.mxu1 %v8520_v35 }
0x10da   :  { %6089 = vmatpush3.bf16.msra.mxu1 %v6351_v40  ;;  %v8052_v40 = vld [vmem:[#allocation10 + $0x28] ss:$16 sps:$4 sm:$0xff]  }
0x10db   :  { %6090 = vmatprep.subr.bf16.mxu1 %v8520_v35 }
0x10de   :  { %6091 = vmatpush3.bf16.msra.mxu1 %v6352_v56  ;;  %v8054_v56 = vld [vmem:[#allocation10 + $0x44] ss:$16 sps:$4 sm:$0xff]  }
0x10df   :  { %6092 = vmatprep.subr.bf16.mxu1 %v8520_v35 }
0x10e2   :  { %6093 = vmatpush3.bf16.msra.mxu1 %v6353_v52  ;;  %v8057_v52 = vld [vmem:[#allocation10 + $0x4c] ss:$16 sps:$4 sm:$0xff]  }
0x10e3   :  { %3233 = vmatprep.subr.bf16.mxu1 %v8039_v5 }
0x1197   :  { %v2766_v44 = vpop.f32.mrb[56].mxu1  ;;  %v2807_v2 = vpop.f32.mrb[64].mxu0 }
0x1198   :  { %v2767_v39 = vadd.f32 %v2766_v44, %v2555_v61  ;;  %v2768_v30 = vpop.f32.mrb[57].mxu1  ;;  %v2809_v25 = vpop.f32.mrb[65].mxu0  ;;  %v2808_v37 = vadd.f32 %v2807_v2, %v2563_v16  ;;  %v8064_v61 = vld [vmem:[#allocation10 + $0x48] ss:$16 sps:$4 sm:$0xff]   ;;  %v8066_v44 = vld [vmem:[#allocation10 + $0x64] ss:$16 sps:$4 sm:$0xff]  }
0x1199   :  { %v2770_v31 = vpop.f32.mrb[58].mxu1  ;;  %v2811_v27 = vpop.f32.mrb[66].mxu0  ;;  %v2769_v28 = vadd.f32 %v2768_v30, %v2559_v43  ;;  %v2810_v59 = vadd.f32 %v2809_v25, %v2567_v12  ;;  %v8069_v2 = vld [vmem:[#allocation10 + $0x6c] ss:$16 sps:$4 sm:$0xff]   ;;  %v8072_v43 = vld [vmem:[#allocation10 + $0x60] ss:$16 sps:$4 sm:$0xff]  }
0x119a   :  { %v5465_v8 = vmul.f32 -1.442695, %v2767_v39  ;;  %v2771_v42 = vpop.f32.mrb[59].mxu1  ;;  %v2812_v11 = vpop.f32.mrb[67].mxu0  ;;  %v8076_v39 = vld [vmem:[#allocation10 + $0x68] ss:$16 sps:$4 sm:$0xff]  }
0x119b   :  { %v5466_v7 = vmul.f32 -1.442695, %v2769_v28  ;;  %v8078_v30 = vld [vmem:[#allocation10 + $0x84] ss:$16 sps:$4 sm:$0xff]   ;;  %v8081_v25 = vld [vmem:[#allocation10 + $0x8c] ss:$16 sps:$4 sm:$0xff]  }
0x119c   :  { %6592 = vpow2.f32 %v5465_v8  ;;  %v8084_v31 = vld [vmem:[#allocation10 + $0x80] ss:$16 sps:$4 sm:$0xff]   ;;  %v8088_v27 = vld [vmem:[#allocation10 + $0x88] ss:$16 sps:$4 sm:$0xff]   ;;  %v8105_v12 = vld [vmem:[#allocation10 + $0xc4] ss:$16 sps:$4 sm:$0xff]  }
0x119d   :  { %6594 = vpow2.f32 %v5466_v7  ;;  %v8093_v7 = vld [vmem:[#allocation10 + $0xa4] ss:$16 sps:$4 sm:$0xff]   ;;  %v8107_v16 = vld [vmem:[#allocation10 + $0xcc] ss:$16 sps:$4 sm:$0xff]  }
0x11a6   :  { %v6593_v17 = vpop.eup %6592 }
0x11a7   :  { %v2817_v18 = vadd.f32 1.0, %v6593_v17  ;;  %v6595_v10 = vpop.eup %6594  ;;  %v8095_v17 = vld [vmem:[#allocation10 + $0xac] ss:$16 sps:$4 sm:$0xff]  }
0x11a8   :  { %v2823_v33 = vadd.f32 1.0, %v6595_v10  ;;  %v8099_v10 = vld [vmem:[#allocation10 + $0xa8] ss:$16 sps:$4 sm:$0xff]  }
0x11a9   :  { %6596 = vrcp.f32 %v2817_v18  ;;  %v8097_v18 = vld [vmem:[#allocation10 + $0xa0] ss:$16 sps:$4 sm:$0xff]  }
0x11aa   :  { %6598 = vrcp.f32 %v2823_v33  ;;  %v8109_v33 = vld [vmem:[#allocation10 + $0xc0] ss:$16 sps:$4 sm:$0xff]  }
0x11b3   :  { %v6597_v34 = vpop.eup %6596 }
0x11b4   :  { %v2826_v63 = vmul.f32 %v6597_v34, %v2810_v59  ;;  %v6599_v46 = vpop.eup %6598  ;;  %v8111_v59 = vld [vmem:[#allocation10 + $0xc8] ss:$16 sps:$4 sm:$0xff]   ;;  %v8117_v34 = vld [vmem:[#allocation10 + $0xe4] ss:$16 sps:$4 sm:$0xff]  }
0x11b5   :  { %v2829_v21 = vsub.f32 1.0, %v6599_v46  ;;  %v2831_v53 = vmul.f32 %v6599_v46, %v7999_v49 }
0x11b6   :  { %v2827_v41 = vadd.f32 %v2826_v63, %v2808_v37  ;;  %v8119_v37 = vld [vmem:[#allocation10 + $0xec] ss:$16 sps:$4 sm:$0xff]   ;;  %v8121_v63 = vld [vmem:[#allocation10 + $0xe0] ss:$16 sps:$4 sm:$0xff]  }
0x11b8   :  { %6600 = vtanh.f32 %v2827_v41  ;;  %v8123_v41 = vld [vmem:[#allocation10 + $0xe8] ss:$16 sps:$4 sm:$0xff]  }
0x11c2   :  { %v6601_v24 = vpop.eup %6600 }
0x11c3   :  { %v2830_v60 = vmul.f32 %v6601_v24, %v2829_v21 }
0x11c5   :  { %v8021_v47 = vadd.f32 %v2831_v53, %v2830_v60 }
0x11c7   :  { %v2833_v54 = vpack.c.bf16 %v8021_v47, %v8021_v47 }
0x11c9   :  { %6095 = vmatmul.mubr.bf16.vlgmr.msra.gmra.mrb[60].mxu1 %v2833_v54 }
0x11ca   :  { %3265 = vmatprep.mubr.bf16.mxu1 %v8521_v48  ;;  %3234 = vmatpush1.bf16.msra.mxu1 %v8037_v50 }
0x11cb   :  { %3235 = vmatprep.subr.bf16.mxu1 %v8044_v45 }
0x11ce   :  { %3236 = vmatpush1.bf16.msra.mxu1 %v8052_v40 }
0x11cf   :  { %3237 = vmatprep.subr.bf16.mxu1 %v8057_v52 }
0x11d2   :  { %3238 = vmatpush1.bf16.msra.mxu1 %v8064_v61 }
0x11d3   :  { %3239 = vmatprep.subr.bf16.mxu1 %v8069_v2 }
0x11d6   :  { %3240 = vmatpush1.bf16.msra.mxu1 %v8076_v39 }
0x11d7   :  { %3241 = vmatprep.subr.bf16.mxu1 %v8081_v25 }
0x11da   :  { %3242 = vmatpush1.bf16.msra.mxu1 %v8088_v27 }
0x11db   :  { %3243 = vmatprep.subr.bf16.mxu1 %v8095_v17 }
0x11de   :  { %3244 = vmatpush1.bf16.msra.mxu1 %v8099_v10 }
0x11df   :  { %3245 = vmatprep.subr.bf16.mxu1 %v8107_v16 }
0x11e2   :  { %3246 = vmatpush1.bf16.msra.mxu1 %v8111_v59 }
0x11e3   :  { %3247 = vmatprep.subr.bf16.mxu1 %v8119_v37 }
0x11e6   :  { %3248 = vmatpush1.bf16.msra.mxu1 %v8123_v41 }
0x11e7   :  { %3652 = vmatprep.subr.bf16.mxu1 %v8035_v3 }
0x129c   :  { %v2939_v62 = vpop.f32.mrb[60].mxu1 }
0x129d   :  { %v2940_v14 = vadd.f32 %v7912_v22, %v2939_v62  ;;  %v6096_v29 = vpop.f32.mrb[61].mxu1  ;;  %v8033_v22 = vld [vmem:[#allocation10] ss:$16 sps:$4 sm:$0xff]  }
0x129e   :  { %v2942_v13 = vpop.f32.mrb[62].mxu1  ;;  %3193 = vmatpush1.bf16.msra.mxu0 %v8033_v22 }
0x129f   :  { %v5476_v9 = vclamps-f32 %v2940_v14, 10.0  ;;  %v6097_v15 = vpop.f32.mrb[63].mxu1  ;;  %3194 = vmatprep.subr.bf16.mxu0 %v8041_v36 }
0x12a0   :  { %v6403_v15 = vld [vmem:[#allocation12 + $0x8] sm:$0xff]  }
0x12a1   :  { %5477 = vst [vmem:[%s8494_s15 + $0x10] sm:$0xff] %v5476_v9  ;;  %vm2950_vm11 = vcmp.ge.s32.totalorder %v5476_v9, 0  ;;  %v2951_v23 = vsub.s32 2147483648, %v5476_v9 }
0x12a2   :  { %3195 = vmatpush1.bf16.msra.mxu0 %v8048_v57 }
0x12a3   :  { %v2952_v32 = vsel %vm2950_vm11, %v5476_v9, %v2951_v23  ;;  %3196 = vmatprep.subr.bf16.mxu0 %v8054_v56  ;;  %v6404_v23 = vld [vmem:[#allocation12 + $0x10] sm:$0xff]  }
0x12a4   :  { %v2953_v19 = vand.u32 4294967280, %v2952_v32  ;;  %v6405_v32 = vld [vmem:[#allocation12 + $0x18] sm:$0xff]  }
0x12a6   :  { %v2954_v20 = vor.u32 %v2953_v19, %v7922_v6  ;;  %3197 = vmatpush1.bf16.msra.mxu0 %v8060_v0  ;;  %v6406_v19 = vld [vmem:[#allocation12 + $0x20] sm:$0xff]  }
0x12a7   :  { %3198 = vmatprep.subr.bf16.mxu0 %v8066_v44 }
0x12a8   :  { %v2955_v58 = vsel %vm2033_vm4, %v2954_v20, 2147483648  ;;  %v6407_v20 = vld [vmem:[#allocation12 + $0x28] sm:$0xff]  }
0x12a9   :  { %v2957_v1 = vshra.s32 %v2955_v58, 16  ;;  %v2956_v8 = vand.u32 65535, %v2955_v58  ;;  %v6408_v58 = vld [vmem:[#allocation12 + $0x30] sm:$0xff]  }
0x12aa   :  { %3199 = vmatpush1.bf16.msra.mxu0 %v8072_v43 }
0x12ab   :  { %v2959_v49 = vcvt.s32.f32 %v2957_v1  ;;  %3200 = vmatprep.subr.bf16.mxu0 %v8078_v30  ;;  %v2958_v11 = vcvt.s32.f32 %v2956_v8  ;;  %v6409_v1 = vld [vmem:[#allocation12 + $0x38] sm:$0xff]  }
0x12ad   :  { %2960 = vmax.xlane.f32.xlu0 %v2959_v49 }
0x12ae   :  { %3201 = vmatpush1.bf16.msra.mxu0 %v8084_v31 }
0x12af   :  { %3202 = vmatprep.subr.bf16.mxu0 %v8093_v7 }
0x12b2   :  { %3203 = vmatpush1.bf16.msra.mxu0 %v8097_v18 }
0x12b3   :  { %3204 = vmatprep.subr.bf16.mxu0 %v8105_v12 }
0x12b6   :  { %3205 = vmatpush1.bf16.msra.mxu0 %v8109_v33 }
0x12b7   :  { %3206 = vmatprep.subr.bf16.mxu0 %v8117_v34 }
0x12ba   :  { %3207 = vmatpush1.bf16.msra.mxu0 %v8121_v63 }
0x12bb   :  { %6098 = vmatprep.subr.bf16.mxu0 %v8520_v35 }
0x133a   :  { %v2961_v42 = vpop.xlane.xlu0 %2960 }
0x133b   :  { %vm2962_vm12 = vcmp.eq.f32.partialorder %v2959_v49, %v2961_v42  ;;  %v2967_v46 = vcvt.f32.s32 %v2961_v42  ;;  %v3010_v49 = vld [vmem:[%s8491_s12] sm:$0xf] }
0x133c   :  { %v2963_v28 = vsel %vm2962_vm12, %v2958_v11, -inf  ;;  %v3015_v8 = vrot.slane %v3010_v49, %v8525_v51 }
0x133d   :  { %2964 = vmax.xlane.f32.xlu1 %v2963_v28  ;;  %v2968_v24 = vshll.u32 %v2967_v46, 16  ;;  %v3019_v28 = vrot.slane %v3010_v49, %v8526_v55 }
0x13ca   :  { %v2965_v21 = vpop.xlane.xlu1 %2964 }
0x13cb   :  { %v2966_v60 = vcvt.f32.s32 %v2965_v21 }
0x13cd   :  { %v2969_v53 = vadd.s32 %v2968_v24, %v2966_v60 }
0x13cf   :  { %v2970_v54 = vand.u32 15, %v2969_v53 }
0x13d1   :  { %v2971_v62 = vsub.s32 15, %v2970_v54 }
0x13d3   :  { %v2972_v14 = vadd.s32 112, %v2971_v62 }
0x13d5   :  { %vm2973_vm13 = vcmp.eq.s32.totalorder %v7916_v4, %v2972_v14 }
0x13d6   :  { %v5478_v29 = vsel %vm2973_vm13, 1.0, %v8520_v35 }
0x13d7   :  { %v8136_v13 = vsel %vm2051_vm6, %v5478_v29, %v8021_v47  ;;  %v6402_v47 = vld [vmem:[#allocation12] sm:$0xff]  }
0x13d8   :  { %v2977_v9 = vpack.c.bf16 %v8136_v13, %v8136_v13 }
0x13da   :  { %3225 = vmatmul.mubr.bf16.vlgmr.msra.gmra.mrb[68].mxu0 %v2977_v9  ;;  %3266 = vmatmul.mubr.bf16.vlgmr.msra.gmra.mrb[64].mxu1 %v2977_v9 }
0x13db   :  { %6114 = vmatprep.mubr.msk.bf16.mxu0 %vm6855_vm1, %v8520_v35  ;;  %3653 = vmatpush1.bf16.msra.mxu1 %v8033_v22 }
0x13dc   :  { %3654 = vmatprep.subr.bf16.mxu1 %v8041_v36  ;;  %3684 = vmatprep.mubr.bf16.mxu1 %v8521_v48 }
0x13dd   :  { %6099 = vmatpush3.bf16.msra.mxu0 %v6402_v47 }
0x13de   :  { %6100 = vmatprep.subr.bf16.mxu0 %v8520_v35 }
0x13df   :  { %3655 = vmatpush1.bf16.msra.mxu1 %v8048_v57 }
0x13e0   :  { %3656 = vmatprep.subr.bf16.mxu1 %v8054_v56 }
0x13e1   :  { %6101 = vmatpush3.bf16.msra.mxu0 %v6403_v15 }
0x13e2   :  { %6102 = vmatprep.subr.bf16.mxu0 %v8520_v35 }
0x13e3   :  { %3657 = vmatpush1.bf16.msra.mxu1 %v8060_v0 }
0x13e4   :  { %3658 = vmatprep.subr.bf16.mxu1 %v8066_v44 }
0x13e5   :  { %6103 = vmatpush3.bf16.msra.mxu0 %v6404_v23 }
0x13e6   :  { %6104 = vmatprep.subr.bf16.mxu0 %v8520_v35 }
0x13e7   :  { %3659 = vmatpush1.bf16.msra.mxu1 %v8072_v43 }
0x13e8   :  { %3660 = vmatprep.subr.bf16.mxu1 %v8078_v30 }
0x13e9   :  { %6105 = vmatpush3.bf16.msra.mxu0 %v6405_v32  ;;  %v3027_v32 = vrot.slane %v3010_v49, %v7887_v26 }
0x13ea   :  { %6106 = vmatprep.subr.bf16.mxu0 %v8520_v35 }
0x13eb   :  { %3661 = vmatpush1.bf16.msra.mxu1 %v8084_v31 }
0x13ec   :  { %3662 = vmatprep.subr.bf16.mxu1 %v8093_v7 }
0x13ed   :  { %6107 = vmatpush3.bf16.msra.mxu0 %v6406_v19  ;;  %v3023_v19 = vrot.slane %v3010_v49, %v8529_v38 }
0x13ee   :  { %6108 = vmatprep.subr.bf16.mxu0 %v8520_v35 }
0x13ef   :  { %3663 = vmatpush1.bf16.msra.mxu1 %v8097_v18 }
0x13f0   :  { %3664 = vmatprep.subr.bf16.mxu1 %v8105_v12 }
0x13f1   :  { %6109 = vmatpush3.bf16.msra.mxu0 %v6407_v20 }
0x13f2   :  { %6110 = vmatprep.subr.bf16.mxu0 %v8520_v35 }
0x13f3   :  { %3665 = vmatpush1.bf16.msra.mxu1 %v8109_v33 }
0x13f4   :  { %3666 = vmatprep.subr.bf16.mxu1 %v8117_v34 }
0x13f5   :  { %6111 = vmatpush3.bf16.msra.mxu0 %v6408_v58 }
0x13f6   :  { %6112 = vmatprep.subr.bf16.mxu0 %v8520_v35 }
0x13f7   :  { %3667 = vmatpush1.bf16.msra.mxu1 %v8121_v63 }
0x13f8   :  { %6118 = vmatprep.subr.bf16.mxu1 %v8520_v35 }
0x13f9   :  { %6113 = vmatpush3.bf16.msra.mxu0 %v6409_v1 }
0x13fa   :  { %3693 = vmatprep.subr.bf16.mxu0 %v8039_v5 }
0x14ad   :  { %v3226_v42 = vpop.f32.mrb[68].mxu0  ;;  %v3267_v11 = vpop.f32.mrb[64].mxu1 }
0x14ae   :  { %v3227_v46 = vadd.f32 %v3226_v42, %v3015_v8  ;;  %v3228_v21 = vpop.f32.mrb[69].mxu0  ;;  %v3269_v24 = vpop.f32.mrb[65].mxu1  ;;  %v3268_v8 = vadd.f32 %v3267_v11, %v3023_v19 }
0x14af   :  { %v3230_v60 = vpop.f32.mrb[70].mxu0  ;;  %v3271_v53 = vpop.f32.mrb[66].mxu1  ;;  %v3229_v29 = vadd.f32 %v3228_v21, %v3019_v28  ;;  %v3270_v58 = vadd.f32 %v3269_v24, %v3027_v32 }
0x14b0   :  { %v5511_v54 = vmul.f32 -1.442695, %v3227_v46  ;;  %v3231_v62 = vpop.f32.mrb[71].mxu0  ;;  %v3272_v14 = vpop.f32.mrb[67].mxu1 }
0x14b1   :  { %v5512_v9 = vmul.f32 -1.442695, %v3229_v29 }
0x14b2   :  { %6602 = vpow2.f32 %v5511_v54 }
0x14b3   :  { %6604 = vpow2.f32 %v5512_v9 }
0x14bc   :  { %v6603_v47 = vpop.eup %6602 }
0x14bd   :  { %v3277_v15 = vadd.f32 1.0, %v6603_v47  ;;  %v6605_v23 = vpop.eup %6604 }
0x14be   :  { %v3283_v20 = vadd.f32 1.0, %v6605_v23 }
0x14bf   :  { %6606 = vrcp.f32 %v3277_v15 }
0x14c0   :  { %6608 = vrcp.f32 %v3283_v20 }
0x14c9   :  { %v6607_v1 = vpop.eup %6606 }
0x14ca   :  { %v3286_v42 = vmul.f32 %v6607_v1, %v3270_v58  ;;  %v6609_v28 = vpop.eup %6608 }
0x14cb   :  { %v3289_v21 = vsub.f32 1.0, %v6609_v28  ;;  %v3291_v54 = vmul.f32 %v6609_v28, %v8136_v13  ;;  %v8195_v13 = vld [vmem:[%s8493_s14] ss:$0 sm:$0xff] }
0x14cc   :  { %v3287_v46 = vadd.f32 %v3286_v42, %v3268_v8 }
0x14ce   :  { %6610 = vtanh.f32 %v3287_v46 }
0x14d8   :  { %v6611_v60 = vpop.eup %6610 }
0x14d9   :  { %v3290_v53 = vmul.f32 %v6611_v60, %v3289_v21 }
0x14db   :  { %v3292_v62 = vadd.f32 %v3291_v54, %v3290_v53 }
0x14dd   :  { %v3293_v14 = vpack.c.bf16 %v3292_v62, %v3292_v62 }
0x14df   :  { %6115 = vmatmul.mubr.bf16.vlgmr.msra.gmra.mrb[72].mxu0 %v3293_v14 }
0x14e0   :  { %3694 = vmatpush1.bf16.msra.mxu0 %v8037_v50  ;;  %3725 = vmatprep.mubr.bf16.mxu0 %v8521_v48 }
0x14e1   :  { %3695 = vmatprep.subr.bf16.mxu0 %v8044_v45 }
0x14e4   :  { %3696 = vmatpush1.bf16.msra.mxu0 %v8052_v40 }
0x14e5   :  { %3697 = vmatprep.subr.bf16.mxu0 %v8057_v52 }
0x14e8   :  { %3698 = vmatpush1.bf16.msra.mxu0 %v8064_v61 }
0x14e9   :  { %3699 = vmatprep.subr.bf16.mxu0 %v8069_v2 }
0x14ec   :  { %3700 = vmatpush1.bf16.msra.mxu0 %v8076_v39 }
0x14ed   :  { %3701 = vmatprep.subr.bf16.mxu0 %v8081_v25 }
0x14f0   :  { %3702 = vmatpush1.bf16.msra.mxu0 %v8088_v27 }
0x14f1   :  { %3703 = vmatprep.subr.bf16.mxu0 %v8095_v17 }
0x14f4   :  { %3704 = vmatpush1.bf16.msra.mxu0 %v8099_v10 }
0x14f5   :  { %3705 = vmatprep.subr.bf16.mxu0 %v8107_v16 }
0x14f8   :  { %3706 = vmatpush1.bf16.msra.mxu0 %v8111_v59 }
0x14f9   :  { %3707 = vmatprep.subr.bf16.mxu0 %v8119_v37 }
0x14fc   :  { %3708 = vmatpush1.bf16.msra.mxu0 %v8123_v41 }
0x14fd   :  { %4112 = vmatprep.subr.bf16.mxu0 %v8035_v3 }
0x15b2   :  { %v3399_v49 = vpop.f32.mrb[72].mxu0 }
0x15b3   :  { %v3400_v11 = vadd.f32 %v8195_v13, %v3399_v49  ;;  %v6116_v24 = vpop.f32.mrb[73].mxu0 }
0x15b4   :  { %v3402_v29 = vpop.f32.mrb[74].mxu0 }
0x15b5   :  { %v5522_v9 = vclamps-f32 %v3400_v11, 10.0  ;;  %v6117_v47 = vpop.f32.mrb[75].mxu0 }
0x15b7   :  { %5523 = vst [vmem:[%s8494_s15 + $0x18] sm:$0xff] %v5522_v9  ;;  %vm3410_vm14 = vcmp.ge.s32.totalorder %v5522_v9, 0  ;;  %v3411_v15 = vsub.s32 2147483648, %v5522_v9 }
0x15b9   :  { %v3412_v23 = vsel %vm3410_vm14, %v5522_v9, %v3411_v15 }
0x15ba   :  { %v3413_v3 = vand.u32 4294967280, %v3412_v23 }
0x15bc   :  { %v3414_v32 = vor.u32 %v3413_v3, %v7922_v6 }
0x15be   :  { %v3415_v19 = vsel %vm2033_vm4, %v3414_v32, 2147483648 }
0x15bf   :  { %v3417_v20 = vshra.s32 %v3415_v19, 16  ;;  %v3416_v1 = vand.u32 65535, %v3415_v19 }
0x15c1   :  { %v3419_v58 = vcvt.s32.f32 %v3417_v20  ;;  %v3418_v42 = vcvt.s32.f32 %v3416_v1 }
0x15c3   :  { %3420 = vmax.xlane.f32.xlu0 %v3419_v58 }
0x1650   :  { %v3421_v8 = vpop.xlane.xlu0 %3420 }
0x1651   :  { %vm3422_vm15 = vcmp.eq.f32.partialorder %v3419_v58, %v3421_v8  ;;  %v3427_v28 = vcvt.f32.s32 %v3421_v8 }
0x1652   :  { %v3423_v46 = vsel %vm3422_vm15, %v3418_v42, -inf }
0x1653   :  { %3424 = vmax.xlane.f32.xlu1 %v3423_v46  ;;  %v3428_v60 = vshll.u32 %v3427_v28, 16 }
0x16e0   :  { %v3425_v21 = vpop.xlane.xlu1 %3424 }
0x16e1   :  { %v3426_v53 = vcvt.f32.s32 %v3425_v21 }
0x16e3   :  { %v3429_v54 = vadd.s32 %v3428_v60, %v3426_v53 }
0x16e5   :  { %v3430_v14 = vand.u32 15, %v3429_v54 }
0x16e7   :  { %v3431_v49 = vsub.s32 15, %v3430_v14 }
0x16e9   :  { %v3432_v11 = vadd.s32 112, %v3431_v49 }
0x16eb   :  { %vm3433_vm0 = vcmp.eq.s32.totalorder %v7916_v4, %v3432_v11 }
0x16ec   :  { %v5524_v24 = vsel %vm3433_vm0, 1.0, %v8520_v35 }
0x16ed   :  { %v8208_v29 = vsel %vm2051_vm6, %v5524_v24, %v3292_v62 }
0x16ee   :  { %v3437_v9 = vpack.c.bf16 %v8208_v29, %v8208_v29 }
0x16f0   :  { %3685 = vmatmul.mubr.bf16.vlgmr.msra.gmra.mrb[68].mxu1 %v3437_v9  ;;  %3726 = vmatmul.mubr.bf16.vlgmr.msra.gmra.mrb[76].mxu0 %v3437_v9 }
0x16f1   :  { %6134 = vmatprep.mubr.msk.bf16.mxu1 %vm6855_vm1, %v8520_v35  ;;  %4113 = vmatpush1.bf16.msra.mxu0 %v8033_v22  ;;  %v6410_v22 = vld [vmem:[#allocation12] sm:$0xff]  }
0x16f2   :  { %4114 = vmatprep.subr.bf16.mxu0 %v8041_v36  ;;  %4144 = vmatprep.mubr.bf16.mxu0 %v8521_v48  ;;  %v6411_v36 = vld [vmem:[#allocation12 + $0x8] sm:$0xff]  }
0x16f3   :  { %6119 = vmatpush3.bf16.msra.mxu1 %v6410_v22 }
0x16f4   :  { %6120 = vmatprep.subr.bf16.mxu1 %v8520_v35 }
0x16f5   :  { %4115 = vmatpush1.bf16.msra.mxu0 %v8048_v57  ;;  %v6412_v57 = vld [vmem:[#allocation12 + $0x10] sm:$0xff]  }
0x16f6   :  { %4116 = vmatprep.subr.bf16.mxu0 %v8054_v56  ;;  %v6413_v56 = vld [vmem:[#allocation12 + $0x18] sm:$0xff]  }
0x16f7   :  { %6121 = vmatpush3.bf16.msra.mxu1 %v6411_v36 }
0x16f8   :  { %6122 = vmatprep.subr.bf16.mxu1 %v8520_v35 }
0x16f9   :  { %4117 = vmatpush1.bf16.msra.mxu0 %v8060_v0  ;;  %v6414_v0 = vld [vmem:[#allocation12 + $0x20] sm:$0xff]  }
0x16fa   :  { %4118 = vmatprep.subr.bf16.mxu0 %v8066_v44  ;;  %v6415_v44 = vld [vmem:[#allocation12 + $0x28] sm:$0xff]  }
0x16fb   :  { %6123 = vmatpush3.bf16.msra.mxu1 %v6412_v57 }
0x16fc   :  { %6124 = vmatprep.subr.bf16.mxu1 %v8520_v35 }
0x16fd   :  { %4119 = vmatpush1.bf16.msra.mxu0 %v8072_v43  ;;  %v6416_v43 = vld [vmem:[#allocation12 + $0x30] sm:$0xff]  }
0x16fe   :  { %4120 = vmatprep.subr.bf16.mxu0 %v8078_v30  ;;  %v6417_v30 = vld [vmem:[#allocation12 + $0x38] sm:$0xff]  }
0x16ff   :  { %6125 = vmatpush3.bf16.msra.mxu1 %v6413_v56 }
0x1700   :  { %6126 = vmatprep.subr.bf16.mxu1 %v8520_v35 }
0x1701   :  { %4121 = vmatpush1.bf16.msra.mxu0 %v8084_v31  ;;  %v3470_v31 = vld [vmem:[%s8491_s12] sm:$0xf] }
0x1702   :  { %4122 = vmatprep.subr.bf16.mxu0 %v8093_v7  ;;  %v3475_v7 = vrot.slane %v3470_v31, %v8525_v51  ;;  %v3487_v8 = vrot.slane %v3470_v31, %v7887_v26  ;;  %v3483_v42 = vrot.slane %v3470_v31, %v8529_v38 }
0x1703   :  { %6127 = vmatpush3.bf16.msra.mxu1 %v6414_v0 }
0x1704   :  { %6128 = vmatprep.subr.bf16.mxu1 %v8520_v35 }
0x1705   :  { %4123 = vmatpush1.bf16.msra.mxu0 %v8097_v18 }
0x1706   :  { %4124 = vmatprep.subr.bf16.mxu0 %v8105_v12 }
0x1707   :  { %6129 = vmatpush3.bf16.msra.mxu1 %v6415_v44 }
0x1708   :  { %6130 = vmatprep.subr.bf16.mxu1 %v8520_v35 }
0x1709   :  { %4125 = vmatpush1.bf16.msra.mxu0 %v8109_v33  ;;  %v3479_v33 = vrot.slane %v3470_v31, %v8526_v55 }
0x170a   :  { %4126 = vmatprep.subr.bf16.mxu0 %v8117_v34 }
0x170b   :  { %6131 = vmatpush3.bf16.msra.mxu1 %v6416_v43 }
0x170c   :  { %6132 = vmatprep.subr.bf16.mxu1 %v8520_v35 }
0x170d   :  { %4127 = vmatpush1.bf16.msra.mxu0 %v8121_v63 }
0x170e   :  { %6138 = vmatprep.subr.bf16.mxu0 %v8520_v35 }
0x170f   :  { %6133 = vmatpush3.bf16.msra.mxu1 %v6417_v30 }
0x1710   :  { %4153 = vmatprep.subr.bf16.mxu1 %v8039_v5 }
0x17c3   :  { %v3686_v18 = vpop.f32.mrb[68].mxu1  ;;  %v3727_v12 = vpop.f32.mrb[76].mxu0 }
0x17c4   :  { %v3687_v34 = vadd.f32 %v3686_v18, %v3475_v7  ;;  %v3688_v63 = vpop.f32.mrb[69].mxu1  ;;  %v3729_v62 = vpop.f32.mrb[77].mxu0  ;;  %v3728_v60 = vadd.f32 %v3727_v12, %v3483_v42 }
0x17c5   :  { %v3690_v47 = vpop.f32.mrb[70].mxu1  ;;  %v3731_v15 = vpop.f32.mrb[78].mxu0  ;;  %v3689_v19 = vadd.f32 %v3688_v63, %v3479_v33  ;;  %v3730_v28 = vadd.f32 %v3729_v62, %v3487_v8  ;;  %v6418_v63 = vld [vmem:[#allocation12] sm:$0xff]   ;;  %v6419_v62 = vld [vmem:[#allocation12 + $0x8] sm:$0xff]  }
0x17c6   :  { %v5557_v23 = vmul.f32 -1.442695, %v3687_v34  ;;  %v3691_v3 = vpop.f32.mrb[71].mxu1  ;;  %v3732_v32 = vpop.f32.mrb[79].mxu0  ;;  %v6420_v47 = vld [vmem:[#allocation12 + $0x10] sm:$0xff]   ;;  %v6421_v15 = vld [vmem:[#allocation12 + $0x18] sm:$0xff]  }
0x17c7   :  { %v5558_v5 = vmul.f32 -1.442695, %v3689_v19  ;;  %v6423_v3 = vld [vmem:[#allocation12 + $0x28] sm:$0xff]   ;;  %v6424_v32 = vld [vmem:[#allocation12 + $0x30] sm:$0xff]   ;;  %v6425_v19 = vld [vmem:[#allocation12 + $0x38] sm:$0xff]  }
0x17c8   :  { %6612 = vpow2.f32 %v5557_v23  ;;  %v6422_v23 = vld [vmem:[#allocation12 + $0x20] sm:$0xff]  }
0x17c9   :  { %6614 = vpow2.f32 %v5558_v5  ;;  %v3930_v5 = vld [vmem:[%s8491_s12] sm:$0xf] }
0x17ca   :  { %v3939_v8 = vrot.slane %v3930_v5, %v8526_v55 }
0x17d2   :  { %v6613_v20 = vpop.eup %6612 }
0x17d3   :  { %v3737_v58 = vadd.f32 1.0, %v6613_v20  ;;  %v6615_v1 = vpop.eup %6614  ;;  %v3935_v20 = vrot.slane %v3930_v5, %v8525_v51 }
0x17d4   :  { %v3743_v46 = vadd.f32 1.0, %v6615_v1 }
0x17d5   :  { %6616 = vrcp.f32 %v3737_v58 }
0x17d6   :  { %6618 = vrcp.f32 %v3743_v46 }
0x17df   :  { %v6617_v21 = vpop.eup %6616 }
0x17e0   :  { %v3746_v53 = vmul.f32 %v6617_v21, %v3730_v28  ;;  %v6619_v14 = vpop.eup %6618 }
0x17e1   :  { %v3749_v49 = vsub.f32 1.0, %v6619_v14  ;;  %v3751_v9 = vmul.f32 %v6619_v14, %v8208_v29 }
0x17e2   :  { %v3747_v54 = vadd.f32 %v3746_v53, %v3728_v60 }
0x17e4   :  { %6620 = vtanh.f32 %v3747_v54 }
0x17ee   :  { %v6621_v11 = vpop.eup %6620 }
0x17ef   :  { %v3750_v24 = vmul.f32 %v6621_v11, %v3749_v49 }
0x17f1   :  { %v3752_v22 = vadd.f32 %v3751_v9, %v3750_v24 }
0x17f3   :  { %v3753_v36 = vpack.c.bf16 %v3752_v22, %v3752_v22 }
0x17f5   :  { %6135 = vmatmul.mubr.bf16.vlgmr.msra.gmra.mrb[72].mxu1 %v3753_v36  ;;  %v3947_v36 = vrot.slane %v3930_v5, %v7887_v26 }
0x17f6   :  { %4154 = vmatpush1.bf16.msra.mxu1 %v8037_v50  ;;  %4185 = vmatprep.mubr.bf16.mxu1 %v8521_v48 }
0x17f7   :  { %4155 = vmatprep.subr.bf16.mxu1 %v8044_v45 }
0x17fa   :  { %4156 = vmatpush1.bf16.msra.mxu1 %v8052_v40 }
0x17fb   :  { %4157 = vmatprep.subr.bf16.mxu1 %v8057_v52 }
0x17fe   :  { %4158 = vmatpush1.bf16.msra.mxu1 %v8064_v61 }
0x17ff   :  { %4159 = vmatprep.subr.bf16.mxu1 %v8069_v2 }
0x1802   :  { %4160 = vmatpush1.bf16.msra.mxu1 %v8076_v39 }
0x1803   :  { %4161 = vmatprep.subr.bf16.mxu1 %v8081_v25 }
0x1806   :  { %4162 = vmatpush1.bf16.msra.mxu1 %v8088_v27 }
0x1807   :  { %4163 = vmatprep.subr.bf16.mxu1 %v8095_v17 }
0x180a   :  { %4164 = vmatpush1.bf16.msra.mxu1 %v8099_v10 }
0x180b   :  { %4165 = vmatprep.subr.bf16.mxu1 %v8107_v16 }
0x180e   :  { %4166 = vmatpush1.bf16.msra.mxu1 %v8111_v59 }
0x180f   :  { %4167 = vmatprep.subr.bf16.mxu1 %v8119_v37 }
0x1812   :  { %4168 = vmatpush1.bf16.msra.mxu1 %v8123_v41 }
0x18c8   :  { %v3859_v50 = vpop.f32.mrb[72].mxu1 }
0x18c9   :  { %v3860_v45 = vadd.f32 %v8195_v13, %v3859_v50  ;;  %v6136_v40 = vpop.f32.mrb[73].mxu1  ;;  %v3943_v50 = vrot.slane %v3930_v5, %v8529_v38  ;;  %v8335_v5 = vld [vmem:[#allocation10 + $0x40] ss:$16 sps:$4 sm:$0xff]  }
0x18ca   :  { %v3862_v52 = vpop.f32.mrb[74].mxu1 }
0x18cb   :  { %v5568_v61 = vclamps-f32 %v3860_v45, 10.0  ;;  %v6137_v2 = vpop.f32.mrb[75].mxu1 }
0x18cd   :  { %5569 = vst [vmem:[%s8494_s15 + $0x20] sm:$0xff] %v5568_v61  ;;  %vm3870_vm2 = vcmp.ge.s32.totalorder %v5568_v61, 0  ;;  %v3871_v39 = vsub.s32 2147483648, %v5568_v61 }
0x18cf   :  { %v3872_v25 = vsel %vm3870_vm2, %v5568_v61, %v3871_v39 }
0x18d0   :  { %v3873_v27 = vand.u32 4294967280, %v3872_v25 }
0x18d2   :  { %v3874_v17 = vor.u32 %v3873_v27, %v7922_v6 }
0x18d4   :  { %v3875_v10 = vsel %vm2033_vm4, %v3874_v17, 2147483648 }
0x18d5   :  { %v3877_v16 = vshra.s32 %v3875_v10, 16  ;;  %v3876_v37 = vand.u32 65535, %v3875_v10 }
0x18d7   :  { %v3879_v59 = vcvt.s32.f32 %v3877_v16  ;;  %v3878_v29 = vcvt.s32.f32 %v3876_v37 }
0x18d9   :  { %3880 = vmax.xlane.f32.xlu0 %v3879_v59 }
0x1966   :  { %v3881_v41 = vpop.xlane.xlu0 %3880 }
0x1967   :  { %vm3882_vm3 = vcmp.eq.f32.partialorder %v3879_v59, %v3881_v41  ;;  %v3887_v56 = vcvt.f32.s32 %v3881_v41 }
0x1968   :  { %v3883_v57 = vsel %vm3882_vm3, %v3878_v29, -inf }
0x1969   :  { %3884 = vmax.xlane.f32.xlu1 %v3883_v57  ;;  %v3888_v44 = vshll.u32 %v3887_v56, 16 }
0x19f6   :  { %v3885_v0 = vpop.xlane.xlu1 %3884 }
0x19f7   :  { %v3886_v43 = vcvt.f32.s32 %v3885_v0 }
0x19f9   :  { %v3889_v30 = vadd.s32 %v3888_v44, %v3886_v43 }
0x19fb   :  { %v3890_v31 = vand.u32 15, %v3889_v30 }
0x19fd   :  { %v3891_v7 = vsub.s32 15, %v3890_v31 }
0x19ff   :  { %v3892_v18 = vadd.s32 112, %v3891_v7 }
0x1a01   :  { %vm3893_vm5 = vcmp.eq.s32.totalorder %v7916_v4, %v3892_v18 }
0x1a02   :  { %v5570_v12 = vsel %vm3893_vm5, 1.0, %v8520_v35 }
0x1a03   :  { %v8274_v33 = vsel %vm2051_vm6, %v5570_v12, %v3752_v22 }
0x1a04   :  { %v3897_v34 = vpack.c.bf16 %v8274_v33, %v8274_v33 }
0x1a06   :  { %4145 = vmatmul.mubr.bf16.vlgmr.msra.gmra.mrb[80].mxu0 %v3897_v34  ;;  %4186 = vmatmul.mubr.bf16.vlgmr.msra.gmra.mrb[76].mxu1 %v3897_v34  ;;  %v8310_v34 = vld [vmem:[#allocation10 + $0x4] ss:$16 sps:$4 sm:$0xff]  }
0x1a07   :  { %6154 = vmatprep.mubr.msk.bf16.mxu0 %vm6855_vm1, %v8520_v35  ;;  %4604 = vmatprep.mubr.bf16.mxu1 %v8521_v48 }
0x1a08   :  { %6139 = vmatpush3.bf16.msra.mxu0 %v6418_v63  ;;  %v8312_v63 = vld [vmem:[#allocation10 + $0x8] ss:$16 sps:$4 sm:$0xff]   ;;  %4572 = vmatprep.subr.bf16.mxu1 %v8310_v34 }
0x1a09   :  { %6140 = vmatprep.subr.bf16.mxu0 %v8520_v35 }
0x1a0c   :  { %6141 = vmatpush3.bf16.msra.mxu0 %v6419_v62  ;;  %v8314_v62 = vld [vmem:[#allocation10 + $0xc] ss:$16 sps:$4 sm:$0xff]  }
0x1a0d   :  { %6142 = vmatprep.subr.bf16.mxu0 %v8520_v35 }
0x1a10   :  { %6143 = vmatpush3.bf16.msra.mxu0 %v6420_v47  ;;  %v8316_v47 = vld [vmem:[#allocation10 + $0x24] ss:$16 sps:$4 sm:$0xff]  }
0x1a11   :  { %6144 = vmatprep.subr.bf16.mxu0 %v8520_v35 }
0x1a14   :  { %6145 = vmatpush3.bf16.msra.mxu0 %v6421_v15  ;;  %v8319_v15 = vld [vmem:[#allocation10 + $0x2c] ss:$16 sps:$4 sm:$0xff]  }
0x1a15   :  { %6146 = vmatprep.subr.bf16.mxu0 %v8520_v35 }
0x1a18   :  { %6147 = vmatpush3.bf16.msra.mxu0 %v6422_v23  ;;  %v8323_v23 = vld [vmem:[#allocation10 + $0x20] ss:$16 sps:$4 sm:$0xff]  }
0x1a19   :  { %6148 = vmatprep.subr.bf16.mxu0 %v8520_v35 }
0x1a1c   :  { %6149 = vmatpush3.bf16.msra.mxu0 %v6423_v3  ;;  %v8327_v3 = vld [vmem:[#allocation10 + $0x28] ss:$16 sps:$4 sm:$0xff]  }
0x1a1d   :  { %6150 = vmatprep.subr.bf16.mxu0 %v8520_v35 }
0x1a20   :  { %6151 = vmatpush3.bf16.msra.mxu0 %v6424_v32  ;;  %v8329_v32 = vld [vmem:[#allocation10 + $0x44] ss:$16 sps:$4 sm:$0xff]  }
0x1a21   :  { %6152 = vmatprep.subr.bf16.mxu0 %v8520_v35 }
0x1a24   :  { %6153 = vmatpush3.bf16.msra.mxu0 %v6425_v19  ;;  %v8332_v19 = vld [vmem:[#allocation10 + $0x4c] ss:$16 sps:$4 sm:$0xff]  }
0x1a25   :  { %4613 = vmatprep.subr.bf16.mxu0 %v8314_v62 }
0x1ad9   :  { %v4146_v58 = vpop.f32.mrb[80].mxu0  ;;  %v4187_v1 = vpop.f32.mrb[76].mxu1 }
0x1ada   :  { %v4147_v42 = vadd.f32 %v4146_v58, %v3935_v20  ;;  %v4148_v46 = vpop.f32.mrb[81].mxu0  ;;  %v4189_v28 = vpop.f32.mrb[77].mxu1  ;;  %v4188_v61 = vadd.f32 %v4187_v1, %v3943_v50  ;;  %v8339_v20 = vld [vmem:[#allocation10 + $0x48] ss:$16 sps:$4 sm:$0xff]   ;;  %v8341_v58 = vld [vmem:[#allocation10 + $0x64] ss:$16 sps:$4 sm:$0xff]  }
0x1adb   :  { %v4150_v21 = vpop.f32.mrb[82].mxu0  ;;  %v4191_v60 = vpop.f32.mrb[78].mxu1  ;;  %v4149_v49 = vadd.f32 %v4148_v46, %v3939_v8  ;;  %v4190_v40 = vadd.f32 %v4189_v28, %v3947_v36  ;;  %v8344_v1 = vld [vmem:[#allocation10 + $0x6c] ss:$16 sps:$4 sm:$0xff]   ;;  %v8347_v8 = vld [vmem:[#allocation10 + $0x60] ss:$16 sps:$4 sm:$0xff]  }
0x1adc   :  { %v5603_v53 = vmul.f32 -1.442695, %v4147_v42  ;;  %v4151_v54 = vpop.f32.mrb[83].mxu0  ;;  %v4192_v14 = vpop.f32.mrb[79].mxu1  ;;  %v8351_v42 = vld [vmem:[#allocation10 + $0x68] ss:$16 sps:$4 sm:$0xff]  }
0x1add   :  { %v5604_v11 = vmul.f32 -1.442695, %v4149_v49  ;;  %v8353_v46 = vld [vmem:[#allocation10 + $0x84] ss:$16 sps:$4 sm:$0xff]   ;;  %v8356_v28 = vld [vmem:[#allocation10 + $0x8c] ss:$16 sps:$4 sm:$0xff]  }
0x1ade   :  { %6622 = vpow2.f32 %v5603_v53  ;;  %v6450_v21 = vld [vmem:[#allocation10 + $0x80] ss:$16 sps:$4 sm:$0xff]   ;;  %v8361_v60 = vld [vmem:[#allocation10 + $0x88] ss:$16 sps:$4 sm:$0xff]   ;;  %v6464_v36 = vld [vmem:[#allocation10 + $0xc4] ss:$16 sps:$4 sm:$0xff]  }
0x1adf   :  { %6624 = vpow2.f32 %v5604_v11  ;;  %v6458_v11 = vld [vmem:[#allocation10 + $0xa4] ss:$16 sps:$4 sm:$0xff]   ;;  %v8371_v50 = vld [vmem:[#allocation10 + $0xcc] ss:$16 sps:$4 sm:$0xff]  }
0x1ae8   :  { %v6623_v24 = vpop.eup %6622 }
0x1ae9   :  { %v4197_v9 = vadd.f32 1.0, %v6623_v24  ;;  %v6625_v22 = vpop.eup %6624  ;;  %v8365_v24 = vld [vmem:[#allocation10 + $0xac] ss:$16 sps:$4 sm:$0xff]  }
0x1aea   :  { %v4203_v45 = vadd.f32 1.0, %v6625_v22  ;;  %v8367_v22 = vld [vmem:[#allocation10 + $0xa8] ss:$16 sps:$4 sm:$0xff]  }
0x1aeb   :  { %6626 = vrcp.f32 %v4197_v9  ;;  %v6456_v9 = vld [vmem:[#allocation10 + $0xa0] ss:$16 sps:$4 sm:$0xff]  }
0x1aec   :  { %6628 = vrcp.f32 %v4203_v45  ;;  %v6462_v45 = vld [vmem:[#allocation10 + $0xc0] ss:$16 sps:$4 sm:$0xff]  }
0x1af5   :  { %v6627_v52 = vpop.eup %6626 }
0x1af6   :  { %v4206_v2 = vmul.f32 %v6627_v52, %v4190_v40  ;;  %v6629_v25 = vpop.eup %6628  ;;  %v8373_v40 = vld [vmem:[#allocation10 + $0xc8] ss:$16 sps:$4 sm:$0xff]   ;;  %v6470_v52 = vld [vmem:[#allocation10 + $0xe4] ss:$16 sps:$4 sm:$0xff]  }
0x1af7   :  { %v4209_v27 = vsub.f32 1.0, %v6629_v25  ;;  %v4211_v16 = vmul.f32 %v6629_v25, %v8274_v33 }
0x1af8   :  { %v4207_v39 = vadd.f32 %v4206_v2, %v4188_v61  ;;  %v8377_v61 = vld [vmem:[#allocation10 + $0xec] ss:$16 sps:$4 sm:$0xff]   ;;  %v6468_v2 = vld [vmem:[#allocation10 + $0xe0] ss:$16 sps:$4 sm:$0xff]  }
0x1afa   :  { %6630 = vtanh.f32 %v4207_v39  ;;  %v8379_v39 = vld [vmem:[#allocation10 + $0xe8] ss:$16 sps:$4 sm:$0xff]  }
0x1b04   :  { %v6631_v17 = vpop.eup %6630 }
0x1b05   :  { %v4210_v10 = vmul.f32 %v6631_v17, %v4209_v27 }
0x1b07   :  { %v8296_v59 = vadd.f32 %v4211_v16, %v4210_v10 }
0x1b09   :  { %v4213_v37 = vpack.c.bf16 %v8296_v59, %v8296_v59 }
0x1b0b   :  { %6155 = vmatmul.mubr.bf16.vlgmr.msra.gmra.mrb[84].mxu0 %v4213_v37 }
0x1b0c   :  { %4645 = vmatprep.mubr.bf16.mxu0 %v8521_v48  ;;  %4614 = vmatpush1.bf16.msra.mxu0 %v8312_v63 }
0x1b0d   :  { %4615 = vmatprep.subr.bf16.mxu0 %v8319_v15 }
0x1b10   :  { %4616 = vmatpush1.bf16.msra.mxu0 %v8327_v3 }
0x1b11   :  { %4617 = vmatprep.subr.bf16.mxu0 %v8332_v19 }
0x1b14   :  { %4618 = vmatpush1.bf16.msra.mxu0 %v8339_v20 }
0x1b15   :  { %4619 = vmatprep.subr.bf16.mxu0 %v8344_v1 }
0x1b18   :  { %4620 = vmatpush1.bf16.msra.mxu0 %v8351_v42 }
0x1b19   :  { %4621 = vmatprep.subr.bf16.mxu0 %v8356_v28 }
0x1b1c   :  { %4622 = vmatpush1.bf16.msra.mxu0 %v8361_v60 }
0x1b1d   :  { %4623 = vmatprep.subr.bf16.mxu0 %v8365_v24 }
0x1b20   :  { %4624 = vmatpush1.bf16.msra.mxu0 %v8367_v22 }
0x1b21   :  { %4625 = vmatprep.subr.bf16.mxu0 %v8371_v50 }
0x1b24   :  { %4626 = vmatpush1.bf16.msra.mxu0 %v8373_v40 }
0x1b25   :  { %4627 = vmatprep.subr.bf16.mxu0 %v8377_v61 }
0x1b28   :  { %4628 = vmatpush1.bf16.msra.mxu0 %v8379_v39 }
0x1b29   :  { %5032 = vmatprep.subr.bf16.mxu0 %v8310_v34 }
0x1bde   :  { %v4319_v41 = vpop.f32.mrb[84].mxu0 }
0x1bdf   :  { %v4320_v29 = vadd.f32 %v8195_v13, %v4319_v41  ;;  %v6156_v57 = vpop.f32.mrb[85].mxu0  ;;  %v8308_v13 = vld [vmem:[#allocation10] ss:$16 sps:$4 sm:$0xff]  }
0x1be0   :  { %v4322_v56 = vpop.f32.mrb[86].mxu0  ;;  %4573 = vmatpush1.bf16.msra.mxu1 %v8308_v13 }
0x1be1   :  { %v5614_v0 = vclamps-f32 %v4320_v29, 10.0  ;;  %v6157_v44 = vpop.f32.mrb[87].mxu0  ;;  %4574 = vmatprep.subr.bf16.mxu1 %v8316_v47 }
0x1be2   :  { %v6475_v44 = vld [vmem:[#allocation12 + $0x8] sm:$0xff]  }
0x1be3   :  { %5615 = vst [vmem:[%s8494_s15 + $0x28] sm:$0xff] %v5614_v0  ;;  %vm4330_vm7 = vcmp.ge.s32.totalorder %v5614_v0, 0  ;;  %v4331_v43 = vsub.s32 2147483648, %v5614_v0 }
0x1be4   :  { %4575 = vmatpush1.bf16.msra.mxu1 %v8323_v23 }
0x1be5   :  { %v4332_v30 = vsel %vm4330_vm7, %v5614_v0, %v4331_v43  ;;  %4576 = vmatprep.subr.bf16.mxu1 %v8329_v32  ;;  %v6476_v43 = vld [vmem:[#allocation12 + $0x10] sm:$0xff]  }
0x1be6   :  { %v4333_v31 = vand.u32 4294967280, %v4332_v30  ;;  %v6477_v30 = vld [vmem:[#allocation12 + $0x18] sm:$0xff]  }
0x1be8   :  { %v4334_v7 = vor.u32 %v4333_v31, %v7922_v6  ;;  %4577 = vmatpush1.bf16.msra.mxu1 %v8335_v5  ;;  %v6478_v31 = vld [vmem:[#allocation12 + $0x20] sm:$0xff]  }
0x1be9   :  { %4578 = vmatprep.subr.bf16.mxu1 %v8341_v58 }
0x1bea   :  { %v4335_v18 = vsel %vm2033_vm4, %v4334_v7, 2147483648  ;;  %v6479_v7 = vld [vmem:[#allocation12 + $0x28] sm:$0xff]  }
0x1beb   :  { %v4337_v12 = vshra.s32 %v4335_v18, 16  ;;  %v4336_v53 = vand.u32 65535, %v4335_v18  ;;  %v6480_v18 = vld [vmem:[#allocation12 + $0x30] sm:$0xff]  }
0x1bec   :  { %4579 = vmatpush1.bf16.msra.mxu1 %v8347_v8 }
0x1bed   :  { %v4339_v33 = vcvt.s32.f32 %v4337_v12  ;;  %4580 = vmatprep.subr.bf16.mxu1 %v8353_v46  ;;  %v4338_v14 = vcvt.s32.f32 %v4336_v53  ;;  %v6481_v12 = vld [vmem:[#allocation12 + $0x38] sm:$0xff]  }
0x1bef   :  { %4340 = vmax.xlane.f32.xlu0 %v4339_v33 }
0x1bf0   :  { %4581 = vmatpush1.bf16.msra.mxu1 %v6450_v21 }
0x1bf1   :  { %4582 = vmatprep.subr.bf16.mxu1 %v6458_v11 }
0x1bf4   :  { %4583 = vmatpush1.bf16.msra.mxu1 %v6456_v9 }
0x1bf5   :  { %4584 = vmatprep.subr.bf16.mxu1 %v6464_v36 }
0x1bf8   :  { %4585 = vmatpush1.bf16.msra.mxu1 %v6462_v45 }
0x1bf9   :  { %4586 = vmatprep.subr.bf16.mxu1 %v6470_v52 }
0x1bfc   :  { %4587 = vmatpush1.bf16.msra.mxu1 %v6468_v2 }
0x1bfd   :  { %6158 = vmatprep.subr.bf16.mxu1 %v8520_v35 }
0x1c7c   :  { %v4341_v54 = vpop.xlane.xlu0 %4340 }
0x1c7d   :  { %vm4342_vm8 = vcmp.eq.f32.partialorder %v4339_v33, %v4341_v54  ;;  %v4347_v25 = vcvt.f32.s32 %v4341_v54  ;;  %v4390_v33 = vld [vmem:[%s8491_s12] sm:$0xf] }
0x1c7e   :  { %v4343_v49 = vsel %vm4342_vm8, %v4338_v14, -inf }
0x1c7f   :  { %4344 = vmax.xlane.f32.xlu1 %v4343_v49  ;;  %v4348_v17 = vshll.u32 %v4347_v25, 16 }
0x1d0c   :  { %v4345_v27 = vpop.xlane.xlu1 %4344 }
0x1d0d   :  { %v4346_v10 = vcvt.f32.s32 %v4345_v27 }
0x1d0f   :  { %v4349_v16 = vadd.s32 %v4348_v17, %v4346_v10 }
0x1d11   :  { %v4350_v37 = vand.u32 15, %v4349_v16 }
0x1d13   :  { %v4351_v41 = vsub.s32 15, %v4350_v37 }
0x1d15   :  { %v4352_v29 = vadd.s32 112, %v4351_v41 }
0x1d17   :  { %vm4353_vm9 = vcmp.eq.s32.totalorder %v7916_v4, %v4352_v29 }
0x1d18   :  { %v5616_v57 = vsel %vm4353_vm9, 1.0, %v8520_v35 }
0x1d19   :  { %v8390_v56 = vsel %vm2051_vm6, %v5616_v57, %v8296_v59  ;;  %v6474_v59 = vld [vmem:[#allocation12] sm:$0xff]  }
0x1d1a   :  { %v4357_v0 = vpack.c.bf16 %v8390_v56, %v8390_v56 }
0x1d1c   :  { %4605 = vmatmul.mubr.bf16.vlgmr.msra.gmra.mrb[80].mxu1 %v4357_v0  ;;  %4646 = vmatmul.mubr.bf16.vlgmr.msra.gmra.mrb[88].mxu0 %v4357_v0 }
0x1d1d   :  { %6174 = vmatprep.mubr.msk.bf16.mxu1 %vm6855_vm1, %v8520_v35  ;;  %5033 = vmatpush1.bf16.msra.mxu0 %v8308_v13  ;;  %v4395_v13 = vrot.slane %v4390_v33, %v8525_v51 }
0x1d1e   :  { %5034 = vmatprep.subr.bf16.mxu0 %v8316_v47  ;;  %5064 = vmatprep.mubr.bf16.mxu0 %v8521_v48 }
0x1d1f   :  { %6159 = vmatpush3.bf16.msra.mxu1 %v6474_v59 }
0x1d20   :  { %6160 = vmatprep.subr.bf16.mxu1 %v8520_v35 }
0x1d21   :  { %5035 = vmatpush1.bf16.msra.mxu0 %v8323_v23  ;;  %v4399_v23 = vrot.slane %v4390_v33, %v8526_v55 }
0x1d22   :  { %5036 = vmatprep.subr.bf16.mxu0 %v8329_v32 }
0x1d23   :  { %6161 = vmatpush3.bf16.msra.mxu1 %v6475_v44 }
0x1d24   :  { %6162 = vmatprep.subr.bf16.mxu1 %v8520_v35 }
0x1d25   :  { %5037 = vmatpush1.bf16.msra.mxu0 %v8335_v5 }
0x1d26   :  { %5038 = vmatprep.subr.bf16.mxu0 %v8341_v58 }
0x1d27   :  { %6163 = vmatpush3.bf16.msra.mxu1 %v6476_v43 }
0x1d28   :  { %6164 = vmatprep.subr.bf16.mxu1 %v8520_v35 }
0x1d29   :  { %5039 = vmatpush1.bf16.msra.mxu0 %v8347_v8 }
0x1d2a   :  { %5040 = vmatprep.subr.bf16.mxu0 %v8353_v46 }
0x1d2b   :  { %6165 = vmatpush3.bf16.msra.mxu1 %v6477_v30 }
0x1d2c   :  { %6166 = vmatprep.subr.bf16.mxu1 %v8520_v35 }
0x1d2d   :  { %5041 = vmatpush1.bf16.msra.mxu0 %v6450_v21 }
0x1d2e   :  { %5042 = vmatprep.subr.bf16.mxu0 %v6458_v11 }
0x1d2f   :  { %6167 = vmatpush3.bf16.msra.mxu1 %v6478_v31 }
0x1d30   :  { %6168 = vmatprep.subr.bf16.mxu1 %v8520_v35 }
0x1d31   :  { %5043 = vmatpush1.bf16.msra.mxu0 %v6456_v9 }
0x1d32   :  { %5044 = vmatprep.subr.bf16.mxu0 %v6464_v36  ;;  %v4407_v36 = vrot.slane %v4390_v33, %v7887_v26 }
0x1d33   :  { %6169 = vmatpush3.bf16.msra.mxu1 %v6479_v7 }
0x1d34   :  { %6170 = vmatprep.subr.bf16.mxu1 %v8520_v35 }
0x1d35   :  { %5045 = vmatpush1.bf16.msra.mxu0 %v6462_v45  ;;  %v4403_v45 = vrot.slane %v4390_v33, %v8529_v38 }
0x1d36   :  { %5046 = vmatprep.subr.bf16.mxu0 %v6470_v52 }
0x1d37   :  { %6171 = vmatpush3.bf16.msra.mxu1 %v6480_v18 }
0x1d38   :  { %6172 = vmatprep.subr.bf16.mxu1 %v8520_v35 }
0x1d39   :  { %5047 = vmatpush1.bf16.msra.mxu0 %v6468_v2 }
0x1d3a   :  { %6178 = vmatprep.subr.bf16.mxu0 %v8520_v35 }
0x1d3b   :  { %6173 = vmatpush3.bf16.msra.mxu1 %v6481_v12 }
0x1d3c   :  { %5073 = vmatprep.subr.bf16.mxu1 %v8314_v62 }
0x1def   :  { %v4606_v34 = vpop.f32.mrb[80].mxu1  ;;  %v4647_v47 = vpop.f32.mrb[88].mxu0 }
0x1df0   :  { %v4607_v32 = vadd.f32 %v4606_v34, %v4395_v13  ;;  %v4608_v5 = vpop.f32.mrb[81].mxu1  ;;  %v4649_v58 = vpop.f32.mrb[89].mxu0  ;;  %v4648_v27 = vadd.f32 %v4647_v47, %v4403_v45 }
0x1df1   :  { %v4610_v8 = vpop.f32.mrb[82].mxu1  ;;  %v4651_v46 = vpop.f32.mrb[90].mxu0  ;;  %v4609_v14 = vadd.f32 %v4608_v5, %v4399_v23  ;;  %v4650_v2 = vadd.f32 %v4649_v58, %v4407_v36  ;;  %v6482_v23 = vld [vmem:[#allocation12] sm:$0xff]   ;;  %v6484_v5 = vld [vmem:[#allocation12 + $0x10] sm:$0xff]  }
0x1df2   :  { %v5649_v21 = vmul.f32 -1.442695, %v4607_v32  ;;  %v4611_v53 = vpop.f32.mrb[83].mxu1  ;;  %v4652_v54 = vpop.f32.mrb[91].mxu0  ;;  %v6483_v32 = vld [vmem:[#allocation12 + $0x8] sm:$0xff]   ;;  %v6486_v58 = vld [vmem:[#allocation12 + $0x20] sm:$0xff]  }
0x1df3   :  { %v5650_v62 = vmul.f32 -1.442695, %v4609_v14  ;;  %v6487_v8 = vld [vmem:[#allocation12 + $0x28] sm:$0xff]   ;;  %v6488_v46 = vld [vmem:[#allocation12 + $0x30] sm:$0xff]  }
0x1df4   :  { %6632 = vpow2.f32 %v5649_v21  ;;  %v6489_v21 = vld [vmem:[#allocation12 + $0x38] sm:$0xff]   ;;  %v4850_v53 = vld [vmem:[%s8491_s12] sm:$0xf] }
0x1df5   :  { %6634 = vpow2.f32 %v5650_v62  ;;  %v4855_v54 = vrot.slane %v4850_v53, %v8525_v51 }
0x1dfe   :  { %v6633_v49 = vpop.eup %6632 }
0x1dff   :  { %v4657_v11 = vadd.f32 1.0, %v6633_v49  ;;  %v6635_v9 = vpop.eup %6634  ;;  %v4859_v49 = vrot.slane %v4850_v53, %v8526_v55  ;;  %v4863_v55 = vrot.slane %v4850_v53, %v8529_v38 }
0x1e00   :  { %v4663_v52 = vadd.f32 1.0, %v6635_v9 }
0x1e01   :  { %6636 = vrcp.f32 %v4657_v11 }
0x1e02   :  { %6638 = vrcp.f32 %v4663_v52 }
0x1e0b   :  { %v6637_v25 = vpop.eup %6636 }
0x1e0c   :  { %v4666_v17 = vmul.f32 %v6637_v25, %v4650_v2  ;;  %v6639_v16 = vpop.eup %6638 }
0x1e0d   :  { %v4669_v37 = vsub.f32 1.0, %v6639_v16  ;;  %v4671_v57 = vmul.f32 %v6639_v16, %v8390_v56 }
0x1e0e   :  { %v4667_v10 = vadd.f32 %v4666_v17, %v4648_v27 }
0x1e10   :  { %6640 = vtanh.f32 %v4667_v10 }
0x1e1a   :  { %v6641_v41 = vpop.eup %6640 }
0x1e1b   :  { %v4670_v29 = vmul.f32 %v6641_v41, %v4669_v37  ;;  %v4867_v37 = vrot.slane %v4850_v53, %v7887_v26 }
0x1e1d   :  { %v4672_v0 = vadd.f32 %v4671_v57, %v4670_v29 }
0x1e1f   :  { %v4673_v59 = vpack.c.bf16 %v4672_v0, %v4672_v0 }
0x1e21   :  { %6175 = vmatmul.mubr.bf16.vlgmr.msra.gmra.mrb[84].mxu1 %v4673_v59 }
0x1e22   :  { %5074 = vmatpush1.bf16.msra.mxu1 %v8312_v63  ;;  %5105 = vmatprep.mubr.bf16.mxu1 %v8521_v48  ;;  %v8441_v48 = vld [vmem:[%s8493_s14] ss:$0 sm:$0xff] }
0x1e23   :  { %5075 = vmatprep.subr.bf16.mxu1 %v8319_v15 }
0x1e26   :  { %5076 = vmatpush1.bf16.msra.mxu1 %v8327_v3 }
0x1e27   :  { %5077 = vmatprep.subr.bf16.mxu1 %v8332_v19 }
0x1e2a   :  { %5078 = vmatpush1.bf16.msra.mxu1 %v8339_v20 }
0x1e2b   :  { %5079 = vmatprep.subr.bf16.mxu1 %v8344_v1 }
0x1e2e   :  { %5080 = vmatpush1.bf16.msra.mxu1 %v8351_v42 }
0x1e2f   :  { %5081 = vmatprep.subr.bf16.mxu1 %v8356_v28 }
0x1e32   :  { %5082 = vmatpush1.bf16.msra.mxu1 %v8361_v60 }
0x1e33   :  { %5083 = vmatprep.subr.bf16.mxu1 %v8365_v24 }
0x1e36   :  { %5084 = vmatpush1.bf16.msra.mxu1 %v8367_v22 }
0x1e37   :  { %5085 = vmatprep.subr.bf16.mxu1 %v8371_v50 }
0x1e3a   :  { %5086 = vmatpush1.bf16.msra.mxu1 %v8373_v40 }
0x1e3b   :  { %5087 = vmatprep.subr.bf16.mxu1 %v8377_v61 }
0x1e3e   :  { %5088 = vmatpush1.bf16.msra.mxu1 %v8379_v39 }
0x1ef4   :  { %v4779_v63 = vpop.f32.mrb[84].mxu1 }
0x1ef5   :  { %v4780_v15 = vadd.f32 %v8441_v48, %v4779_v63  ;;  %v6176_v3 = vpop.f32.mrb[85].mxu1 }
0x1ef6   :  { %v4782_v19 = vpop.f32.mrb[86].mxu1 }
0x1ef7   :  { %v5660_v20 = vclamps-f32 %v4780_v15, 10.0  ;;  %v6177_v1 = vpop.f32.mrb[87].mxu1 }
0x1ef9   :  { %5661 = vst [vmem:[%s8494_s15 + $0x30] sm:$0xff] %v5660_v20  ;;  %vm4790_vm10 = vcmp.ge.s32.totalorder %v5660_v20, 0  ;;  %v4791_v42 = vsub.s32 2147483648, %v5660_v20 }
0x1efb   :  { %v4792_v28 = vsel %vm4790_vm10, %v5660_v20, %v4791_v42 }
0x1efc   :  { %v4793_v60 = vand.u32 4294967280, %v4792_v28 }
0x1efe   :  { %v4794_v24 = vor.u32 %v4793_v60, %v7922_v6 }
0x1f00   :  { %v4795_v22 = vsel %vm2033_vm4, %v4794_v24, 2147483648 }
0x1f01   :  { %v4797_v50 = vshra.s32 %v4795_v22, 16  ;;  %v4796_v61 = vand.u32 65535, %v4795_v22 }
0x1f03   :  { %v4799_v40 = vcvt.s32.f32 %v4797_v50  ;;  %v4798_v56 = vcvt.s32.f32 %v4796_v61 }
0x1f05   :  { %4800 = vmax.xlane.f32.xlu0 %v4799_v40 }
0x1f92   :  { %v4801_v39 = vpop.xlane.xlu0 %4800 }
0x1f93   :  { %vm4802_vm11 = vcmp.eq.f32.partialorder %v4799_v40, %v4801_v39  ;;  %v4807_v43 = vcvt.f32.s32 %v4801_v39 }
0x1f94   :  { %v4803_v44 = vsel %vm4802_vm11, %v4798_v56, -inf }
0x1f95   :  { %4804 = vmax.xlane.f32.xlu1 %v4803_v44  ;;  %v4808_v31 = vshll.u32 %v4807_v43, 16 }
0x2022   :  { %v4805_v30 = vpop.xlane.xlu1 %4804 }
0x2023   :  { %v4806_v7 = vcvt.f32.s32 %v4805_v30 }
0x2025   :  { %v4809_v18 = vadd.s32 %v4808_v31, %v4806_v7 }
0x2027   :  { %v4810_v12 = vand.u32 15, %v4809_v18 }
0x2029   :  { %v4811_v33 = vsub.s32 15, %v4810_v12 }
0x202b   :  { %v4812_v6 = vadd.s32 112, %v4811_v33 }
0x202d   :  { %vm4813_vm12 = vcmp.eq.s32.totalorder %v7916_v4, %v4812_v6  ;;  %v6485_v4 = vld [vmem:[#allocation12 + $0x18] sm:$0xff]  }
0x202e   :  { %v5662_v13 = vsel %vm4813_vm12, 1.0, %v8520_v35 }
0x202f   :  { %v8454_v34 = vsel %vm2051_vm6, %v5662_v13, %v4672_v0 }
0x2030   :  { %v4817_v47 = vpack.c.bf16 %v8454_v34, %v8454_v34 }
0x2032   :  { %5065 = vmatmul.mubr.bf16.vlgmr.msra.gmra.mrb[92].mxu0 %v4817_v47  ;;  %5106 = vmatmul.mubr.bf16.vlgmr.msra.gmra.mrb[88].mxu1 %v4817_v47 }
0x2033   :  { %6194 = vmatprep.mubr.msk.bf16.mxu0 %vm6855_vm1, %v8520_v35  ;;  %6179 = vmatpush3.bf16.msra.mxu0 %v6482_v23 }
0x2034   :  { %6180 = vmatprep.subr.bf16.mxu0 %v8520_v35 }
0x2037   :  { %6181 = vmatpush3.bf16.msra.mxu0 %v6483_v32 }
0x2038   :  { %6182 = vmatprep.subr.bf16.mxu0 %v8520_v35 }
0x203b   :  { %6183 = vmatpush3.bf16.msra.mxu0 %v6484_v5 }
0x203c   :  { %6184 = vmatprep.subr.bf16.mxu0 %v8520_v35 }
0x203f   :  { %6185 = vmatpush3.bf16.msra.mxu0 %v6485_v4 }
0x2040   :  { %6186 = vmatprep.subr.bf16.mxu0 %v8520_v35 }
0x2043   :  { %6187 = vmatpush3.bf16.msra.mxu0 %v6486_v58 }
0x2044   :  { %6188 = vmatprep.subr.bf16.mxu0 %v8520_v35 }
0x2047   :  { %6189 = vmatpush3.bf16.msra.mxu0 %v6487_v8 }
0x2048   :  { %6190 = vmatprep.subr.bf16.mxu0 %v8520_v35 }
0x204b   :  { %6191 = vmatpush3.bf16.msra.mxu0 %v6488_v46 }
0x204c   :  { %6192 = vmatprep.subr.bf16.mxu0 %v8520_v35 }
0x204f   :  { %6193 = vmatpush3.bf16.msra.mxu0 %v6489_v21 }
0x2105   :  { %v5066_v14 = vpop.f32.mrb[92].mxu0  ;;  %v5107_v62 = vpop.f32.mrb[88].mxu1 }
0x2106   :  { %v5067_v11 = vadd.f32 %v5066_v14, %v4855_v54  ;;  %v5068_v9 = vpop.f32.mrb[93].mxu0  ;;  %v5109_v36 = vpop.f32.mrb[89].mxu1  ;;  %v5108_v0 = vadd.f32 %v5107_v62, %v4863_v55 }
0x2107   :  { %v5070_v45 = vpop.f32.mrb[94].mxu0  ;;  %v5111_v52 = vpop.f32.mrb[90].mxu1  ;;  %v5069_v35 = vadd.f32 %v5068_v9, %v4859_v49  ;;  %v5110_v29 = vadd.f32 %v5109_v36, %v4867_v37 }
0x2108   :  { %v5695_v2 = vmul.f32 -1.442695, %v5067_v11  ;;  %v5071_v25 = vpop.f32.mrb[95].mxu0  ;;  %v5112_v27 = vpop.f32.mrb[91].mxu1 }
0x2109   :  { %v5696_v17 = vmul.f32 -1.442695, %v5069_v35 }
0x210a   :  { %6642 = vpow2.f32 %v5695_v2 }
0x210b   :  { %6644 = vpow2.f32 %v5696_v17 }
0x2114   :  { %v6643_v10 = vpop.eup %6642 }
0x2115   :  { %v5117_v16 = vadd.f32 1.0, %v6643_v10  ;;  %v6645_v51 = vpop.eup %6644 }
0x2116   :  { %v5123_v41 = vadd.f32 1.0, %v6645_v51 }
0x2117   :  { %6646 = vrcp.f32 %v5117_v16 }
0x2118   :  { %6648 = vrcp.f32 %v5123_v41 }
0x2121   :  { %v6647_v57 = vpop.eup %6646 }
0x2122   :  { %v5126_v59 = vmul.f32 %v6647_v57, %v5110_v29  ;;  %v6649_v15 = vpop.eup %6648 }
0x2123   :  { %v5129_v3 = vsub.f32 1.0, %v6649_v15  ;;  %v5131_v1 = vmul.f32 %v6649_v15, %v8454_v34 }
0x2124   :  { %v5127_v63 = vadd.f32 %v5126_v59, %v5108_v0 }
0x2126   :  { %6650 = vtanh.f32 %v5127_v63 }
0x2130   :  { %v6651_v19 = vpop.eup %6650 }
0x2131   :  { %v5130_v20 = vmul.f32 %v6651_v19, %v5129_v3 }
0x2133   :  { %v5132_v42 = vadd.f32 %v5131_v1, %v5130_v20 }
0x2135   :  { %v5133_v28 = vpack.c.bf16 %v5132_v42, %v5132_v42 }
0x2137   :  { %6195 = vmatmul.mubr.bf16.vlgmr.msra.gmra.mrb[96].mxu0 %v5133_v28 }
0x220a   :  { %v5239_v26 = vpop.f32.mrb[96].mxu0 }
0x220b   :  { %v5240_v38 = vadd.f32 %v8441_v48, %v5239_v26  ;;  %v6196_v60 = vpop.f32.mrb[97].mxu0 }
0x220c   :  { %v5242_v24 = vpop.f32.mrb[98].mxu0 }
0x220d   :  { %v5706_v22 = vclamps-f32 %v5240_v38, 10.0  ;;  %v6197_v50 = vpop.f32.mrb[99].mxu0 }
0x220f   :  { %5707 = vst [vmem:[%s8494_s15 + $0x38] sm:$0xff] %v5706_v22 }
0x2210   :  { %5261 = vsyncpa [#allocation3], 1 }
0x2211   :  { %5262 = vsyncpa [#allocation5], 1 }
0x2212   :  { %5263 = vsyncpa [#allocation8], 1 }
0x2213   :  { %5264 = vsyncpa [#allocation11], 1 }

</bundles_post_ra>
